<compile_context>
chip_gen: v5e
topology: v5e:2x2
jax: 0.10.0
libtpu: 0.0.40
codegen_flags: <defaults>
</compile_context>

<pallas_src>
import math

import jax
import jax.numpy as jnp
from jax.experimental import pallas as pl
from jax.experimental.pallas import tpu as pltpu

HIDDEN_DIM = 32
NHEAD = 4
HEAD_DIM = HIDDEN_DIM // NHEAD
NUM_LAYERS = 3
MEL_DIM = 16
FF_DIM = 2048          # nn.TransformerDecoderLayer default dim_feedforward
FF_CHUNK = 512         # FFN chunking over dim_feedforward
EPS = 1e-5             # nn.LayerNorm default


# ------------------------------ fused kernel --------------------------------
# grid = (batch b ["parallel"], layer l ["arbitrary"])

def _decoder_layer_kernel(
    # per-batch activations
    tgt_ref, pe_ref, mem_ref,
    # shared embedding / output-projection weights
    emb_w_ref, emb_b_ref, fc_w_ref, fc_b_ref,
    # per-layer weights (leading layer dim squeezed away by the BlockSpec)
    sa_q_w_ref, sa_q_b_ref, sa_k_w_ref, sa_k_b_ref, sa_v_w_ref, sa_v_b_ref,
    sa_o_w_ref, sa_o_b_ref,
    ca_q_w_ref, ca_q_b_ref, ca_k_w_ref, ca_k_b_ref, ca_v_w_ref, ca_v_b_ref,
    ca_o_w_ref, ca_o_b_ref,
    ff1_w_ref, ff1_b_ref, ff2_w_ref, ff2_b_ref,
    ln1_g_ref, ln1_b_ref, ln2_g_ref, ln2_b_ref, ln3_g_ref, ln3_b_ref,
    # output + carried activation scratch
    out_ref, x_scr,
):
    layer = pl.program_id(1)
    scale = 1.0 / math.sqrt(HEAD_DIM)

    # ----- layer 0: embedding + positional encoding into the carried scratch -
    @pl.when(layer == 0)
    def _():
        x_scr[...] = (jnp.dot(tgt_ref[...], emb_w_ref[...],
                              preferred_element_type=jnp.float32)
                      + emb_b_ref[...] + pe_ref[...])

    def layernorm(y, g_ref, b_ref):
        mu = jnp.mean(y, axis=-1, keepdims=True)
        d = y - mu
        var = jnp.mean(d * d, axis=-1, keepdims=True)
        return d * jax.lax.rsqrt(var + EPS) * g_ref[...] + b_ref[...]

    def mha(xq, xkv, q_w, q_b, k_w, k_b, v_w, v_b, o_w, o_b):
        # xq: (Lq, H), xkv: (Lk, H).  Head-split weights: no lane-dim slicing.
        Lq = xq.shape[0]
        qs, ks, vs = [], [], []
        for h in range(NHEAD):
            qs.append(jnp.dot(xq, q_w[h], preferred_element_type=jnp.float32)
                      + q_b[h])
            ks.append(jnp.dot(xkv, k_w[h], preferred_element_type=jnp.float32)
                      + k_b[h])
            vs.append(jnp.dot(xkv, v_w[h], preferred_element_type=jnp.float32)
                      + v_b[h])
        # per-head QK^T blocks packed along sublanes -> ONE softmax for all heads
        s = jnp.concatenate(
            [jax.lax.dot_general(qs[h], ks[h], (((1,), (1,)), ((), ())),
                                 preferred_element_type=jnp.float32)
             for h in range(NHEAD)],
            axis=0) * scale                                    # (nH*Lq, Lk)
        m = jnp.max(s, axis=-1, keepdims=True)
        p = jnp.exp(s - m)
        p = p * pl.reciprocal(jnp.sum(p, axis=-1, keepdims=True), approx=True)
        # per-head PV + head-split output projection summed over heads
        res = o_b[...]                                          # (1, H) broadcast
        for h in range(NHEAD):
            ph = p[h * Lq:(h + 1) * Lq, :]                      # sublane slice
            oh = jnp.dot(ph, vs[h], preferred_element_type=jnp.float32)
            res = res + jnp.dot(oh, o_w[h], preferred_element_type=jnp.float32)
        return res                                              # (Lq, H)

    x = x_scr[...]                                              # (T, H)
    mem = mem_ref[...]                                          # (S, H)

    # --- self-attention + add & norm ---
    o = mha(x, x, sa_q_w_ref, sa_q_b_ref, sa_k_w_ref, sa_k_b_ref,
            sa_v_w_ref, sa_v_b_ref, sa_o_w_ref, sa_o_b_ref)
    x = layernorm(x + o, ln1_g_ref, ln1_b_ref)

    # --- cross-attention + add & norm ---
    o = mha(x, mem, ca_q_w_ref, ca_q_b_ref, ca_k_w_ref, ca_k_b_ref,
            ca_v_w_ref, ca_v_b_ref, ca_o_w_ref, ca_o_b_ref)
    x = layernorm(x + o, ln2_g_ref, ln2_b_ref)

    # --- feed-forward (bf16 weights, chunked over FF_DIM) + add & norm ---
    ff_dim = ff1_w_ref.shape[1]
    acc = x + ff2_b_ref[...]
    for c in range(ff_dim // FF_CHUNK):
        lo = c * FF_CHUNK
        w1 = ff1_w_ref[:, lo:lo + FF_CHUNK].astype(jnp.float32)   # (H, CH)
        b1 = ff1_b_ref[:, lo:lo + FF_CHUNK]                       # (1, CH)
        w2 = ff2_w_ref[lo:lo + FF_CHUNK, :].astype(jnp.float32)   # (CH, H)
        hdn = jnp.maximum(
            jnp.dot(x, w1, preferred_element_type=jnp.float32) + b1, 0.0)
        acc = acc + jnp.dot(hdn, w2, preferred_element_type=jnp.float32)
    x = layernorm(acc, ln3_g_ref, ln3_b_ref)

    x_scr[...] = x

    # ----- last layer: mel projection + store -----
    @pl.when(layer == pl.num_programs(1) - 1)
    def _():
        out_ref[...] = (jnp.dot(x, fc_w_ref[...],
                                preferred_element_type=jnp.float32)
                        + fc_b_ref[...]).astype(out_ref.dtype)


# ------------------------------ host wrapper ---------------------------------

def positional_encoding(length, d_model):
    pos = jnp.arange(length, dtype=jnp.float32)[:, None]
    div = jnp.exp(jnp.arange(0, d_model, 2, dtype=jnp.float32)
                  * (-math.log(10000.0) / d_model))
    pe = jnp.zeros((length, d_model), dtype=jnp.float32)
    pe = pe.at[:, 0::2].set(jnp.sin(pos * div))
    pe = pe.at[:, 1::2].set(jnp.cos(pos * div))
    return pe


_PARAM_ORDER = (
    'emb_w', 'emb_b', 'fc_w', 'fc_b',
    'sa_q_w', 'sa_q_b', 'sa_k_w', 'sa_k_b', 'sa_v_w', 'sa_v_b', 'sa_o_w', 'sa_o_b',
    'ca_q_w', 'ca_q_b', 'ca_k_w', 'ca_k_b', 'ca_v_w', 'ca_v_b', 'ca_o_w', 'ca_o_b',
    'ff1_w', 'ff1_b', 'ff2_w', 'ff2_b',
    'ln1_g', 'ln1_b', 'ln2_g', 'ln2_b', 'ln3_g', 'ln3_b',
)
_SHARED_PARAMS = frozenset({'emb_w', 'emb_b', 'fc_w', 'fc_b'})


def transformer_decoder_forward(params, tgt, memory):
    B, T, mel = tgt.shape
    S = memory.shape[1]
    H = HIDDEN_DIM

    tgt = tgt.astype(jnp.float32)
    memory = memory.astype(jnp.float32)
    pe = positional_encoding(T, H)                              # (T, H)

    # --- BlockSpec helpers (grid = (batch b, layer l)) -----------------------
    def batch_spec(shape):            # one batch slab, constant across layers
        n = len(shape) - 1
        return pl.BlockSpec((None,) + tuple(shape[1:]),
                            lambda b, l, n=n: (b,) + (0,) * n)

    def layer_spec(shape):            # one layer's weights, constant across b
        n = len(shape) - 1
        return pl.BlockSpec((None,) + tuple(shape[1:]),
                            lambda b, l, n=n: (l,) + (0,) * n)

    def shared_spec(shape):           # whole array, fetched once
        n = len(shape)
        return pl.BlockSpec(tuple(shape), lambda b, l, n=n: (0,) * n)

    param_args = tuple(params[name] for name in _PARAM_ORDER)
    param_specs = [shared_spec(params[name].shape) if name in _SHARED_PARAMS
                   else layer_spec(params[name].shape)
                   for name in _PARAM_ORDER]
    in_specs = ([batch_spec((B, T, mel)), shared_spec((T, H)),
                 batch_spec((B, S, H))] + param_specs)

    # advisory cost estimate (FFN-dominated)
    flops = int(B * NUM_LAYERS * (4 * T * H * FF_DIM            # ff1 + ff2
                                  + 16 * T * H * H              # attn projections
                                  + 4 * T * (T + S) * H)        # scores + pv
                + 4 * B * T * mel * H)                          # embedding + fc
    transcendentals = int(B * NUM_LAYERS * NHEAD * T * (T + S))
    bytes_accessed = int(B * sum(int(p.size) * p.dtype.itemsize for p in param_args)
                         + tgt.size * 4 + memory.size * 4 + B * T * mel * 4)

    out = pl.pallas_call(
        _decoder_layer_kernel,
        out_shape=jax.ShapeDtypeStruct((B, T, mel), jnp.float32),
        grid_spec=pltpu.PrefetchScalarGridSpec(
            num_scalar_prefetch=0,
            grid=(B, NUM_LAYERS),
            in_specs=in_specs,
            out_specs=batch_spec((B, T, mel)),
            scratch_shapes=[pltpu.VMEM((T, H), jnp.float32)]),   # carried x
        compiler_params=pltpu.CompilerParams(
            dimension_semantics=("parallel", "arbitrary"),
            vmem_limit_bytes=32 * 1024 * 1024),
        cost_estimate=pl.CostEstimate(
            flops=flops, transcendentals=transcendentals,
            bytes_accessed=bytes_accessed),
    )(tgt, pe, memory, *param_args)
    return out


# ------------------------- pure-JAX reference --------------------------------

def transformer_decoder_forward_ref(params, tgt, memory):
    B, T, mel = tgt.shape
    H, nH, hd = HIDDEN_DIM, NHEAD, HEAD_DIM

    def ln(y, g, b):
        mu = jnp.mean(y, -1, keepdims=True)
        d = y - mu
        var = jnp.mean(d * d, -1, keepdims=True)
        return d * jax.lax.rsqrt(var + EPS) * g + b

    def mha(xq, xkv, qw, qb, kw, kb, vw, vb, ow, ob):
        out = jnp.zeros(xq.shape[:2] + (H,), jnp.float32) + ob
        for h in range(nH):
            q = xq @ qw[h].astype(jnp.float32) + qb[h]
            k = xkv @ kw[h].astype(jnp.float32) + kb[h]
            v = xkv @ vw[h].astype(jnp.float32) + vb[h]
            s = jnp.einsum('btd,bkd->btk', q, k) / math.sqrt(hd)
            p = jax.nn.softmax(s, axis=-1)
            o = jnp.einsum('btk,bkd->btd', p, v)
            out = out + o @ ow[h].astype(jnp.float32)
        return out

    x = tgt.astype(jnp.float32) @ params['emb_w'] + params['emb_b']
    x = x + positional_encoding(T, H)[None]
    mem = memory.astype(jnp.float32)

    for l in range(NUM_LAYERS):
        o = mha(x, x,
                params['sa_q_w'][l], params['sa_q_b'][l],
                params['sa_k_w'][l], params['sa_k_b'][l],
                params['sa_v_w'][l], params['sa_v_b'][l],
                params['sa_o_w'][l], params['sa_o_b'][l])
        x = ln(x + o, params['ln1_g'][l], params['ln1_b'][l])

        o = mha(x, mem,
                params['ca_q_w'][l], params['ca_q_b'][l],
                params['ca_k_w'][l], params['ca_k_b'][l],
                params['ca_v_w'][l], params['ca_v_b'][l],
                params['ca_o_w'][l], params['ca_o_b'][l])
        x = ln(x + o, params['ln2_g'][l], params['ln2_b'][l])

        hdn = jnp.maximum(x @ params['ff1_w'][l].astype(jnp.float32)
                          + params['ff1_b'][l], 0.0)
        f = hdn @ params['ff2_w'][l].astype(jnp.float32) + params['ff2_b'][l]
        x = ln(x + f, params['ln3_g'][l], params['ln3_b'][l])

    return x @ params['fc_w'] + params['fc_b']


# ------------------------------ parameter init --------------------------------
# Attention weights are stored head-split: (L, nH, H, hd) in-projections,
# (L, nH, hd, H) out-projections.  FFN weights are bf16; everything else f32.

def init_params(key, hidden_dim=HIDDEN_DIM, mel_dim=MEL_DIM,
                ff_dim=FF_DIM, num_layers=NUM_LAYERS, nhead=NHEAD):
    H, M, F, L, nH = hidden_dim, mel_dim, ff_dim, num_layers, nhead
    hd = H // nH

    def nrm(k, shape, scale=0.05):
        return scale * jax.random.normal(k, shape, dtype=jnp.float32)

    ks = iter(jax.random.split(key, 20))
    params = {
        'emb_w': nrm(next(ks), (M, H)),
        'emb_b': jnp.zeros((1, H), jnp.float32),
        'fc_w': nrm(next(ks), (H, M)),
        'fc_b': jnp.zeros((1, M), jnp.float32),
        'sa_q_w': nrm(next(ks), (L, nH, H, hd)),
        'sa_q_b': nrm(next(ks), (L, nH, 1, hd)),
        'sa_k_w': nrm(next(ks), (L, nH, H, hd)),
        'sa_k_b': nrm(next(ks), (L, nH, 1, hd)),
        'sa_v_w': nrm(next(ks), (L, nH, H, hd)),
        'sa_v_b': nrm(next(ks), (L, nH, 1, hd)),
        'sa_o_w': nrm(next(ks), (L, nH, hd, H)),
        'sa_o_b': jnp.zeros((L, 1, H), jnp.float32),
        'ca_q_w': nrm(next(ks), (L, nH, H, hd)),
        'ca_q_b': nrm(next(ks), (L, nH, 1, hd)),
        'ca_k_w': nrm(next(ks), (L, nH, H, hd)),
        'ca_k_b': nrm(next(ks), (L, nH, 1, hd)),
        'ca_v_w': nrm(next(ks), (L, nH, H, hd)),
        'ca_v_b': nrm(next(ks), (L, nH, 1, hd)),
        'ca_o_w': nrm(next(ks), (L, nH, hd, H)),
        'ca_o_b': jnp.zeros((L, 1, H), jnp.float32),
        'ff1_w': nrm(next(ks), (L, H, F)).astype(jnp.bfloat16),   # bulk of HBM traffic
        'ff1_b': jnp.zeros((L, 1, F), jnp.float32),
        'ff2_w': nrm(next(ks), (L, F, H)).astype(jnp.bfloat16),
        'ff2_b': jnp.zeros((L, 1, H), jnp.float32),
        'ln1_g': jnp.ones((L, 1, H), jnp.float32),
        'ln1_b': jnp.zeros((L, 1, H), jnp.float32),
        'ln2_g': jnp.ones((L, 1, H), jnp.float32),
        'ln2_b': jnp.zeros((L, 1, H), jnp.float32),
        'ln3_g': jnp.ones((L, 1, H), jnp.float32),
        'ln3_b': jnp.zeros((L, 1, H), jnp.float32),
    }
    return params


# ----------------------------------- main -------------------------------------

if __name__ == "__main__":
    key = jax.random.PRNGKey(0)
    k_p, k_tgt, k_mem = jax.random.split(key, 3)

    B, T, S = 2, 8, 8
    params = init_params(k_p)
    tgt = jax.random.normal(k_tgt, (B, T, MEL_DIM), dtype=jnp.float32)
    memory = jax.random.normal(k_mem, (B, S, HIDDEN_DIM), dtype=jnp.float32)

    fwd = jax.jit(transformer_decoder_forward)
    out = jax.block_until_ready(fwd(params, tgt, memory))
    assert out.shape == (B, T, MEL_DIM), out.shape

    # sanity check against a pure-JAX reference of the same math
    ref = jax.block_until_ready(
        transformer_decoder_forward_ref(params, tgt, memory))
    assert bool(jnp.all(jnp.isfinite(out)))
    max_err = float(jnp.max(jnp.abs(out - ref)))
    assert max_err < 2e-3, max_err

    print("KERNEL_OK")
</pallas_src>

<mosaic_0001>
module attributes {stable_mosaic.version = 11 : i64} {
  func.func @_decoder_layer_kernel(%arg0: i32, %arg1: i32, %arg2: memref<1x8x16xf32, #tpu.memory_space<vmem>>, %arg3: memref<8x32xf32, #tpu.memory_space<vmem>>, %arg4: memref<1x8x32xf32, #tpu.memory_space<vmem>>, %arg5: memref<16x32xf32, #tpu.memory_space<vmem>>, %arg6: memref<1x32xf32, #tpu.memory_space<vmem>>, %arg7: memref<32x16xf32, #tpu.memory_space<vmem>>, %arg8: memref<1x16xf32, #tpu.memory_space<vmem>>, %arg9: memref<1x4x32x8xf32, #tpu.memory_space<vmem>>, %arg10: memref<1x4x1x8xf32, #tpu.memory_space<vmem>>, %arg11: memref<1x4x32x8xf32, #tpu.memory_space<vmem>>, %arg12: memref<1x4x1x8xf32, #tpu.memory_space<vmem>>, %arg13: memref<1x4x32x8xf32, #tpu.memory_space<vmem>>, %arg14: memref<1x4x1x8xf32, #tpu.memory_space<vmem>>, %arg15: memref<1x4x8x32xf32, #tpu.memory_space<vmem>>, %arg16: memref<1x1x32xf32, #tpu.memory_space<vmem>>, %arg17: memref<1x4x32x8xf32, #tpu.memory_space<vmem>>, %arg18: memref<1x4x1x8xf32, #tpu.memory_space<vmem>>, %arg19: memref<1x4x32x8xf32, #tpu.memory_space<vmem>>, %arg20: memref<1x4x1x8xf32, #tpu.memory_space<vmem>>, %arg21: memref<1x4x32x8xf32, #tpu.memory_space<vmem>>, %arg22: memref<1x4x1x8xf32, #tpu.memory_space<vmem>>, %arg23: memref<1x4x8x32xf32, #tpu.memory_space<vmem>>, %arg24: memref<1x1x32xf32, #tpu.memory_space<vmem>>, %arg25: memref<1x32x2048xbf16, #tpu.memory_space<vmem>>, %arg26: memref<1x1x2048xf32, #tpu.memory_space<vmem>>, %arg27: memref<1x2048x32xbf16, #tpu.memory_space<vmem>>, %arg28: memref<1x1x32xf32, #tpu.memory_space<vmem>>, %arg29: memref<1x1x32xf32, #tpu.memory_space<vmem>>, %arg30: memref<1x1x32xf32, #tpu.memory_space<vmem>>, %arg31: memref<1x1x32xf32, #tpu.memory_space<vmem>>, %arg32: memref<1x1x32xf32, #tpu.memory_space<vmem>>, %arg33: memref<1x1x32xf32, #tpu.memory_space<vmem>>, %arg34: memref<1x1x32xf32, #tpu.memory_space<vmem>>, %arg35: memref<1x8x16xf32, #tpu.memory_space<vmem>>, %arg36: memref<8x32xf32, #tpu.memory_space<vmem>>) attributes {dimension_semantics = [#tpu.dimension_semantics<parallel>, #tpu.dimension_semantics<arbitrary>], iteration_bounds = array<i64: 2, 3>, scalar_prefetch = 0 : i64, scratch_operands = 1 : i64, tpu.core_type = #tpu.core_type<tc>, window_params = [{transform_indices = @transform_0, window_bounds = array<i64: 1, 8, 16>}, {pipeline_mode = #tpu.pipeline_mode<synchronous>, transform_indices = @transform_1, window_bounds = array<i64: 8, 32>}, {transform_indices = @transform_2, window_bounds = array<i64: 1, 8, 32>}, {pipeline_mode = #tpu.pipeline_mode<synchronous>, transform_indices = @transform_3, window_bounds = array<i64: 16, 32>}, {pipeline_mode = #tpu.pipeline_mode<synchronous>, transform_indices = @transform_4, window_bounds = array<i64: 1, 32>}, {pipeline_mode = #tpu.pipeline_mode<synchronous>, transform_indices = @transform_5, window_bounds = array<i64: 32, 16>}, {pipeline_mode = #tpu.pipeline_mode<synchronous>, transform_indices = @transform_6, window_bounds = array<i64: 1, 16>}, {transform_indices = @transform_7, window_bounds = array<i64: 1, 4, 32, 8>}, {transform_indices = @transform_8, window_bounds = array<i64: 1, 4, 1, 8>}, {transform_indices = @transform_9, window_bounds = array<i64: 1, 4, 32, 8>}, {transform_indices = @transform_10, window_bounds = array<i64: 1, 4, 1, 8>}, {transform_indices = @transform_11, window_bounds = array<i64: 1, 4, 32, 8>}, {transform_indices = @transform_12, window_bounds = array<i64: 1, 4, 1, 8>}, {transform_indices = @transform_13, window_bounds = array<i64: 1, 4, 8, 32>}, {transform_indices = @transform_14, window_bounds = array<i64: 1, 1, 32>}, {transform_indices = @transform_15, window_bounds = array<i64: 1, 4, 32, 8>}, {transform_indices = @transform_16, window_bounds = array<i64: 1, 4, 1, 8>}, {transform_indices = @transform_17, window_bounds = array<i64: 1, 4, 32, 8>}, {transform_indices = @transform_18, window_bounds = array<i64: 1, 4, 1, 8>}, {transform_indices = @transform_19, window_bounds = array<i64: 1, 4, 32, 8>}, {transform_indices = @transform_20, window_bounds = array<i64: 1, 4, 1, 8>}, {transform_indices = @transform_21, window_bounds = array<i64: 1, 4, 8, 32>}, {transform_indices = @transform_22, window_bounds = array<i64: 1, 1, 32>}, {transform_indices = @transform_23, window_bounds = array<i64: 1, 32, 2048>}, {transform_indices = @transform_24, window_bounds = array<i64: 1, 1, 2048>}, {transform_indices = @transform_25, window_bounds = array<i64: 1, 2048, 32>}, {transform_indices = @transform_26, window_bounds = array<i64: 1, 1, 32>}, {transform_indices = @transform_27, window_bounds = array<i64: 1, 1, 32>}, {transform_indices = @transform_28, window_bounds = array<i64: 1, 1, 32>}, {transform_indices = @transform_29, window_bounds = array<i64: 1, 1, 32>}, {transform_indices = @transform_30, window_bounds = array<i64: 1, 1, 32>}, {transform_indices = @transform_31, window_bounds = array<i64: 1, 1, 32>}, {transform_indices = @transform_32, window_bounds = array<i64: 1, 1, 32>}, {transform_indices = @transform_33, window_bounds = array<i64: 1, 8, 16>}]} {
    %c0_i32 = arith.constant 0 : i32
    %0 = arith.cmpi eq, %arg1, %c0_i32 : i32
    %1 = arith.extui %0 : i1 to i32
    %c0_i32_0 = arith.constant 0 : i32
    %2 = arith.cmpi ne, %1, %c0_i32_0 : i32
    scf.if %2 {
      %c0_369 = arith.constant 0 : index
      %c0_370 = arith.constant 0 : index
      %c0_371 = arith.constant 0 : index
      %404 = vector.load %arg2[%c0_369, %c0_370, %c0_371] : memref<1x8x16xf32, #tpu.memory_space<vmem>>, vector<1x8x16xf32>
      %405 = vector.shape_cast %404 : vector<1x8x16xf32> to vector<8x16xf32>
      %c0_372 = arith.constant 0 : index
      %c0_373 = arith.constant 0 : index
      %406 = vector.load %arg5[%c0_372, %c0_373] : memref<16x32xf32, #tpu.memory_space<vmem>>, vector<16x32xf32>
      %cst_374 = arith.constant dense<0.000000e+00> : vector<8x32xf32>
      %407 = tpu.matmul %405, %406, %cst_374 {dimension_numbers = #tpu.dot_dimension_numbers<[1], [0], [0], [1], [0, 0, 1, 1], [], []>} : vector<8x16xf32>, vector<16x32xf32>, vector<8x32xf32> -> vector<8x32xf32>
      %c0_375 = arith.constant 0 : index
      %c0_376 = arith.constant 0 : index
      %408 = vector.load %arg6[%c0_375, %c0_376] : memref<1x32xf32, #tpu.memory_space<vmem>>, vector<1x32xf32>
      %409 = vector.broadcast %408 : vector<1x32xf32> to vector<8x32xf32>
      %410 = arith.addf %407, %409 : vector<8x32xf32>
      %c0_377 = arith.constant 0 : index
      %c0_378 = arith.constant 0 : index
      %411 = vector.load %arg3[%c0_377, %c0_378] : memref<8x32xf32, #tpu.memory_space<vmem>>, vector<8x32xf32>
      %412 = arith.addf %410, %411 : vector<8x32xf32>
      %c0_379 = arith.constant 0 : index
      %c0_380 = arith.constant 0 : index
      %413 = vector.load %arg36[%c0_379, %c0_380] : memref<8x32xf32, #tpu.memory_space<vmem>>, vector<8x32xf32>
      tpu.vector_store %arg36[%c0_379, %c0_380], %412 {strides = array<i32>} : memref<8x32xf32, #tpu.memory_space<vmem>>, vector<8x32xf32>,
    } else {
    }
    %c0 = arith.constant 0 : index
    %c0_1 = arith.constant 0 : index
    %3 = vector.load %arg36[%c0, %c0_1] : memref<8x32xf32, #tpu.memory_space<vmem>>, vector<8x32xf32>
    %c0_2 = arith.constant 0 : index
    %c0_3 = arith.constant 0 : index
    %c0_4 = arith.constant 0 : index
    %4 = vector.load %arg4[%c0_2, %c0_3, %c0_4] : memref<1x8x32xf32, #tpu.memory_space<vmem>>, vector<1x8x32xf32>
    %5 = vector.shape_cast %4 : vector<1x8x32xf32> to vector<8x32xf32>
    %c0_5 = arith.constant 0 : index
    %c0_6 = arith.constant 0 : index
    %c0_7 = arith.constant 0 : index
    %c0_8 = arith.constant 0 : index
    %6 = vector.load %arg9[%c0_5, %c0_6, %c0_7, %c0_8] : memref<1x4x32x8xf32, #tpu.memory_space<vmem>>, vector<1x1x32x8xf32>
    %7 = vector.shape_cast %6 : vector<1x1x32x8xf32> to vector<32x8xf32>
    %cst = arith.constant dense<0.000000e+00> : vector<8x8xf32>
    %8 = tpu.matmul %3, %7, %cst {dimension_numbers = #tpu.dot_dimension_numbers<[1], [0], [0], [1], [0, 0, 1, 1], [], []>} : vector<8x32xf32>, vector<32x8xf32>, vector<8x8xf32> -> vector<8x8xf32>
    %c0_9 = arith.constant 0 : index
    %c0_10 = arith.constant 0 : index
    %c0_11 = arith.constant 0 : index
    %c0_12 = arith.constant 0 : index
    %9 = vector.load %arg10[%c0_9, %c0_10, %c0_11, %c0_12] : memref<1x4x1x8xf32, #tpu.memory_space<vmem>>, vector<1x1x1x8xf32>
    %10 = vector.shape_cast %9 : vector<1x1x1x8xf32> to vector<1x8xf32>
    %11 = vector.broadcast %10 : vector<1x8xf32> to vector<8x8xf32>
    %12 = arith.addf %8, %11 : vector<8x8xf32>
    %c0_13 = arith.constant 0 : index
    %c0_14 = arith.constant 0 : index
    %c0_15 = arith.constant 0 : index
    %c0_16 = arith.constant 0 : index
    %13 = vector.load %arg11[%c0_13, %c0_14, %c0_15, %c0_16] : memref<1x4x32x8xf32, #tpu.memory_space<vmem>>, vector<1x1x32x8xf32>
    %14 = vector.shape_cast %13 : vector<1x1x32x8xf32> to vector<32x8xf32>
    %cst_17 = arith.constant dense<0.000000e+00> : vector<8x8xf32>
    %15 = tpu.matmul %3, %14, %cst_17 {dimension_numbers = #tpu.dot_dimension_numbers<[1], [0], [0], [1], [0, 0, 1, 1], [], []>} : vector<8x32xf32>, vector<32x8xf32>, vector<8x8xf32> -> vector<8x8xf32>
    %c0_18 = arith.constant 0 : index
    %c0_19 = arith.constant 0 : index
    %c0_20 = arith.constant 0 : index
    %c0_21 = arith.constant 0 : index
    %16 = vector.load %arg12[%c0_18, %c0_19, %c0_20, %c0_21] : memref<1x4x1x8xf32, #tpu.memory_space<vmem>>, vector<1x1x1x8xf32>
    %17 = vector.shape_cast %16 : vector<1x1x1x8xf32> to vector<1x8xf32>
    %18 = vector.broadcast %17 : vector<1x8xf32> to vector<8x8xf32>
    %19 = arith.addf %15, %18 : vector<8x8xf32>
    %c0_22 = arith.constant 0 : index
    %c0_23 = arith.constant 0 : index
    %c0_24 = arith.constant 0 : index
    %c0_25 = arith.constant 0 : index
    %20 = vector.load %arg13[%c0_22, %c0_23, %c0_24, %c0_25] : memref<1x4x32x8xf32, #tpu.memory_space<vmem>>, vector<1x1x32x8xf32>
    %21 = vector.shape_cast %20 : vector<1x1x32x8xf32> to vector<32x8xf32>
    %cst_26 = arith.constant dense<0.000000e+00> : vector<8x8xf32>
    %22 = tpu.matmul %3, %21, %cst_26 {dimension_numbers = #tpu.dot_dimension_numbers<[1], [0], [0], [1], [0, 0, 1, 1], [], []>} : vector<8x32xf32>, vector<32x8xf32>, vector<8x8xf32> -> vector<8x8xf32>
    %c0_27 = arith.constant 0 : index
    %c0_28 = arith.constant 0 : index
    %c0_29 = arith.constant 0 : index
    %c0_30 = arith.constant 0 : index
    %23 = vector.load %arg14[%c0_27, %c0_28, %c0_29, %c0_30] : memref<1x4x1x8xf32, #tpu.memory_space<vmem>>, vector<1x1x1x8xf32>
    %24 = vector.shape_cast %23 : vector<1x1x1x8xf32> to vector<1x8xf32>
    %25 = vector.broadcast %24 : vector<1x8xf32> to vector<8x8xf32>
    %26 = arith.addf %22, %25 : vector<8x8xf32>
    %c0_31 = arith.constant 0 : index
    %c1 = arith.constant 1 : index
    %c0_32 = arith.constant 0 : index
    %c0_33 = arith.constant 0 : index
    %27 = vector.load %arg9[%c0_31, %c1, %c0_32, %c0_33] : memref<1x4x32x8xf32, #tpu.memory_space<vmem>>, vector<1x1x32x8xf32>
    %28 = vector.shape_cast %27 : vector<1x1x32x8xf32> to vector<32x8xf32>
    %cst_34 = arith.constant dense<0.000000e+00> : vector<8x8xf32>
    %29 = tpu.matmul %3, %28, %cst_34 {dimension_numbers = #tpu.dot_dimension_numbers<[1], [0], [0], [1], [0, 0, 1, 1], [], []>} : vector<8x32xf32>, vector<32x8xf32>, vector<8x8xf32> -> vector<8x8xf32>
    %c0_35 = arith.constant 0 : index
    %c1_36 = arith.constant 1 : index
    %c0_37 = arith.constant 0 : index
    %c0_38 = arith.constant 0 : index
    %30 = vector.load %arg10[%c0_35, %c1_36, %c0_37, %c0_38] : memref<1x4x1x8xf32, #tpu.memory_space<vmem>>, vector<1x1x1x8xf32>
    %31 = vector.shape_cast %30 : vector<1x1x1x8xf32> to vector<1x8xf32>
    %32 = vector.broadcast %31 : vector<1x8xf32> to vector<8x8xf32>
    %33 = arith.addf %29, %32 : vector<8x8xf32>
    %c0_39 = arith.constant 0 : index
    %c1_40 = arith.constant 1 : index
    %c0_41 = arith.constant 0 : index
    %c0_42 = arith.constant 0 : index
    %34 = vector.load %arg11[%c0_39, %c1_40, %c0_41, %c0_42] : memref<1x4x32x8xf32, #tpu.memory_space<vmem>>, vector<1x1x32x8xf32>
    %35 = vector.shape_cast %34 : vector<1x1x32x8xf32> to vector<32x8xf32>
    %cst_43 = arith.constant dense<0.000000e+00> : vector<8x8xf32>
    %36 = tpu.matmul %3, %35, %cst_43 {dimension_numbers = #tpu.dot_dimension_numbers<[1], [0], [0], [1], [0, 0, 1, 1], [], []>} : vector<8x32xf32>, vector<32x8xf32>, vector<8x8xf32> -> vector<8x8xf32>
    %c0_44 = arith.constant 0 : index
    %c1_45 = arith.constant 1 : index
    %c0_46 = arith.constant 0 : index
    %c0_47 = arith.constant 0 : index
    %37 = vector.load %arg12[%c0_44, %c1_45, %c0_46, %c0_47] : memref<1x4x1x8xf32, #tpu.memory_space<vmem>>, vector<1x1x1x8xf32>
    %38 = vector.shape_cast %37 : vector<1x1x1x8xf32> to vector<1x8xf32>
    %39 = vector.broadcast %38 : vector<1x8xf32> to vector<8x8xf32>
    %40 = arith.addf %36, %39 : vector<8x8xf32>
    %c0_48 = arith.constant 0 : index
    %c1_49 = arith.constant 1 : index
    %c0_50 = arith.constant 0 : index
    %c0_51 = arith.constant 0 : index
    %41 = vector.load %arg13[%c0_48, %c1_49, %c0_50, %c0_51] : memref<1x4x32x8xf32, #tpu.memory_space<vmem>>, vector<1x1x32x8xf32>
    %42 = vector.shape_cast %41 : vector<1x1x32x8xf32> to vector<32x8xf32>
    %cst_52 = arith.constant dense<0.000000e+00> : vector<8x8xf32>
    %43 = tpu.matmul %3, %42, %cst_52 {dimension_numbers = #tpu.dot_dimension_numbers<[1], [0], [0], [1], [0, 0, 1, 1], [], []>} : vector<8x32xf32>, vector<32x8xf32>, vector<8x8xf32> -> vector<8x8xf32>
    %c0_53 = arith.constant 0 : index
    %c1_54 = arith.constant 1 : index
    %c0_55 = arith.constant 0 : index
    %c0_56 = arith.constant 0 : index
    %44 = vector.load %arg14[%c0_53, %c1_54, %c0_55, %c0_56] : memref<1x4x1x8xf32, #tpu.memory_space<vmem>>, vector<1x1x1x8xf32>
    %45 = vector.shape_cast %44 : vector<1x1x1x8xf32> to vector<1x8xf32>
    %46 = vector.broadcast %45 : vector<1x8xf32> to vector<8x8xf32>
    %47 = arith.addf %43, %46 : vector<8x8xf32>
    %c0_57 = arith.constant 0 : index
    %c2 = arith.constant 2 : index
    %c0_58 = arith.constant 0 : index
    %c0_59 = arith.constant 0 : index
    %48 = vector.load %arg9[%c0_57, %c2, %c0_58, %c0_59] : memref<1x4x32x8xf32, #tpu.memory_space<vmem>>, vector<1x1x32x8xf32>
    %49 = vector.shape_cast %48 : vector<1x1x32x8xf32> to vector<32x8xf32>
    %cst_60 = arith.constant dense<0.000000e+00> : vector<8x8xf32>
    %50 = tpu.matmul %3, %49, %cst_60 {dimension_numbers = #tpu.dot_dimension_numbers<[1], [0], [0], [1], [0, 0, 1, 1], [], []>} : vector<8x32xf32>, vector<32x8xf32>, vector<8x8xf32> -> vector<8x8xf32>
    %c0_61 = arith.constant 0 : index
    %c2_62 = arith.constant 2 : index
    %c0_63 = arith.constant 0 : index
    %c0_64 = arith.constant 0 : index
    %51 = vector.load %arg10[%c0_61, %c2_62, %c0_63, %c0_64] : memref<1x4x1x8xf32, #tpu.memory_space<vmem>>, vector<1x1x1x8xf32>
    %52 = vector.shape_cast %51 : vector<1x1x1x8xf32> to vector<1x8xf32>
    %53 = vector.broadcast %52 : vector<1x8xf32> to vector<8x8xf32>
    %54 = arith.addf %50, %53 : vector<8x8xf32>
    %c0_65 = arith.constant 0 : index
    %c2_66 = arith.constant 2 : index
    %c0_67 = arith.constant 0 : index
    %c0_68 = arith.constant 0 : index
    %55 = vector.load %arg11[%c0_65, %c2_66, %c0_67, %c0_68] : memref<1x4x32x8xf32, #tpu.memory_space<vmem>>, vector<1x1x32x8xf32>
    %56 = vector.shape_cast %55 : vector<1x1x32x8xf32> to vector<32x8xf32>
    %cst_69 = arith.constant dense<0.000000e+00> : vector<8x8xf32>
    %57 = tpu.matmul %3, %56, %cst_69 {dimension_numbers = #tpu.dot_dimension_numbers<[1], [0], [0], [1], [0, 0, 1, 1], [], []>} : vector<8x32xf32>, vector<32x8xf32>, vector<8x8xf32> -> vector<8x8xf32>
    %c0_70 = arith.constant 0 : index
    %c2_71 = arith.constant 2 : index
    %c0_72 = arith.constant 0 : index
    %c0_73 = arith.constant 0 : index
    %58 = vector.load %arg12[%c0_70, %c2_71, %c0_72, %c0_73] : memref<1x4x1x8xf32, #tpu.memory_space<vmem>>, vector<1x1x1x8xf32>
    %59 = vector.shape_cast %58 : vector<1x1x1x8xf32> to vector<1x8xf32>
    %60 = vector.broadcast %59 : vector<1x8xf32> to vector<8x8xf32>
    %61 = arith.addf %57, %60 : vector<8x8xf32>
    %c0_74 = arith.constant 0 : index
    %c2_75 = arith.constant 2 : index
    %c0_76 = arith.constant 0 : index
    %c0_77 = arith.constant 0 : index
    %62 = vector.load %arg13[%c0_74, %c2_75, %c0_76, %c0_77] : memref<1x4x32x8xf32, #tpu.memory_space<vmem>>, vector<1x1x32x8xf32>
    %63 = vector.shape_cast %62 : vector<1x1x32x8xf32> to vector<32x8xf32>
    %cst_78 = arith.constant dense<0.000000e+00> : vector<8x8xf32>
    %64 = tpu.matmul %3, %63, %cst_78 {dimension_numbers = #tpu.dot_dimension_numbers<[1], [0], [0], [1], [0, 0, 1, 1], [], []>} : vector<8x32xf32>, vector<32x8xf32>, vector<8x8xf32> -> vector<8x8xf32>
    %c0_79 = arith.constant 0 : index
    %c2_80 = arith.constant 2 : index
    %c0_81 = arith.constant 0 : index
    %c0_82 = arith.constant 0 : index
    %65 = vector.load %arg14[%c0_79, %c2_80, %c0_81, %c0_82] : memref<1x4x1x8xf32, #tpu.memory_space<vmem>>, vector<1x1x1x8xf32>
    %66 = vector.shape_cast %65 : vector<1x1x1x8xf32> to vector<1x8xf32>
    %67 = vector.broadcast %66 : vector<1x8xf32> to vector<8x8xf32>
    %68 = arith.addf %64, %67 : vector<8x8xf32>
    %c0_83 = arith.constant 0 : index
    %c3 = arith.constant 3 : index
    %c0_84 = arith.constant 0 : index
    %c0_85 = arith.constant 0 : index
    %69 = vector.load %arg9[%c0_83, %c3, %c0_84, %c0_85] : memref<1x4x32x8xf32, #tpu.memory_space<vmem>>, vector<1x1x32x8xf32>
    %70 = vector.shape_cast %69 : vector<1x1x32x8xf32> to vector<32x8xf32>
    %cst_86 = arith.constant dense<0.000000e+00> : vector<8x8xf32>
    %71 = tpu.matmul %3, %70, %cst_86 {dimension_numbers = #tpu.dot_dimension_numbers<[1], [0], [0], [1], [0, 0, 1, 1], [], []>} : vector<8x32xf32>, vector<32x8xf32>, vector<8x8xf32> -> vector<8x8xf32>
    %c0_87 = arith.constant 0 : index
    %c3_88 = arith.constant 3 : index
    %c0_89 = arith.constant 0 : index
    %c0_90 = arith.constant 0 : index
    %72 = vector.load %arg10[%c0_87, %c3_88, %c0_89, %c0_90] : memref<1x4x1x8xf32, #tpu.memory_space<vmem>>, vector<1x1x1x8xf32>
    %73 = vector.shape_cast %72 : vector<1x1x1x8xf32> to vector<1x8xf32>
    %74 = vector.broadcast %73 : vector<1x8xf32> to vector<8x8xf32>
    %75 = arith.addf %71, %74 : vector<8x8xf32>
    %c0_91 = arith.constant 0 : index
    %c3_92 = arith.constant 3 : index
    %c0_93 = arith.constant 0 : index
    %c0_94 = arith.constant 0 : index
    %76 = vector.load %arg11[%c0_91, %c3_92, %c0_93, %c0_94] : memref<1x4x32x8xf32, #tpu.memory_space<vmem>>, vector<1x1x32x8xf32>
    %77 = vector.shape_cast %76 : vector<1x1x32x8xf32> to vector<32x8xf32>
    %cst_95 = arith.constant dense<0.000000e+00> : vector<8x8xf32>
    %78 = tpu.matmul %3, %77, %cst_95 {dimension_numbers = #tpu.dot_dimension_numbers<[1], [0], [0], [1], [0, 0, 1, 1], [], []>} : vector<8x32xf32>, vector<32x8xf32>, vector<8x8xf32> -> vector<8x8xf32>
    %c0_96 = arith.constant 0 : index
    %c3_97 = arith.constant 3 : index
    %c0_98 = arith.constant 0 : index
    %c0_99 = arith.constant 0 : index
    %79 = vector.load %arg12[%c0_96, %c3_97, %c0_98, %c0_99] : memref<1x4x1x8xf32, #tpu.memory_space<vmem>>, vector<1x1x1x8xf32>
    %80 = vector.shape_cast %79 : vector<1x1x1x8xf32> to vector<1x8xf32>
    %81 = vector.broadcast %80 : vector<1x8xf32> to vector<8x8xf32>
    %82 = arith.addf %78, %81 : vector<8x8xf32>
    %c0_100 = arith.constant 0 : index
    %c3_101 = arith.constant 3 : index
    %c0_102 = arith.constant 0 : index
    %c0_103 = arith.constant 0 : index
    %83 = vector.load %arg13[%c0_100, %c3_101, %c0_102, %c0_103] : memref<1x4x32x8xf32, #tpu.memory_space<vmem>>, vector<1x1x32x8xf32>
    %84 = vector.shape_cast %83 : vector<1x1x32x8xf32> to vector<32x8xf32>
    %cst_104 = arith.constant dense<0.000000e+00> : vector<8x8xf32>
    %85 = tpu.matmul %3, %84, %cst_104 {dimension_numbers = #tpu.dot_dimension_numbers<[1], [0], [0], [1], [0, 0, 1, 1], [], []>} : vector<8x32xf32>, vector<32x8xf32>, vector<8x8xf32> -> vector<8x8xf32>
    %c0_105 = arith.constant 0 : index
    %c3_106 = arith.constant 3 : index
    %c0_107 = arith.constant 0 : index
    %c0_108 = arith.constant 0 : index
    %86 = vector.load %arg14[%c0_105, %c3_106, %c0_107, %c0_108] : memref<1x4x1x8xf32, #tpu.memory_space<vmem>>, vector<1x1x1x8xf32>
    %87 = vector.shape_cast %86 : vector<1x1x1x8xf32> to vector<1x8xf32>
    %88 = vector.broadcast %87 : vector<1x8xf32> to vector<8x8xf32>
    %89 = arith.addf %85, %88 : vector<8x8xf32>
    %cst_109 = arith.constant dense<0.000000e+00> : vector<8x8xf32>
    %90 = tpu.matmul %12, %19, %cst_109 {dimension_numbers = #tpu.dot_dimension_numbers<[1], [1], [0], [0], [0, 0, 1, 0], [], []>} : vector<8x8xf32>, vector<8x8xf32>, vector<8x8xf32> -> vector<8x8xf32>
    %cst_110 = arith.constant dense<0.000000e+00> : vector<8x8xf32>
    %91 = tpu.matmul %33, %40, %cst_110 {dimension_numbers = #tpu.dot_dimension_numbers<[1], [1], [0], [0], [0, 0, 1, 0], [], []>} : vector<8x8xf32>, vector<8x8xf32>, vector<8x8xf32> -> vector<8x8xf32>
    %cst_111 = arith.constant dense<0.000000e+00> : vector<8x8xf32>
    %92 = tpu.matmul %54, %61, %cst_111 {dimension_numbers = #tpu.dot_dimension_numbers<[1], [1], [0], [0], [0, 0, 1, 0], [], []>} : vector<8x8xf32>, vector<8x8xf32>, vector<8x8xf32> -> vector<8x8xf32>
    %cst_112 = arith.constant dense<0.000000e+00> : vector<8x8xf32>
    %93 = tpu.matmul %75, %82, %cst_112 {dimension_numbers = #tpu.dot_dimension_numbers<[1], [1], [0], [0], [0, 0, 1, 0], [], []>} : vector<8x8xf32>, vector<8x8xf32>, vector<8x8xf32> -> vector<8x8xf32>
    %94 = tpu.concatenate %90, %91, %92, %93 in 0 : vector<8x8xf32>, vector<8x8xf32>, vector<8x8xf32>, vector<8x8xf32> -> vector<32x8xf32>
    %cst_113 = arith.constant 0.353553385 : f32
    %95 = vector.broadcast %cst_113 : f32 to vector<32x8xf32>
    %96 = arith.mulf %94, %95 : vector<32x8xf32>
    %cst_114 = arith.constant dense<0xFF800000> : vector<32xf32>
    %97 = vector.multi_reduction <maximumf>, %96, %cst_114 [1] : vector<32x8xf32> to vector<32xf32>
    %98 = vector.shape_cast %97 : vector<32xf32> to vector<32x1xf32>
    %99 = vector.broadcast %98 : vector<32x1xf32> to vector<32x8xf32>
    %100 = arith.subf %96, %99 : vector<32x8xf32>
    %101 = math.exp %100 : vector<32x8xf32>
    %cst_115 = arith.constant dense<0.000000e+00> : vector<32xf32>
    %102 = vector.multi_reduction <add>, %101, %cst_115 [1] : vector<32x8xf32> to vector<32xf32>
    %103 = vector.shape_cast %102 : vector<32xf32> to vector<32x1xf32>
    %104 = tpu.reciprocal %103 {approx = true} : vector<32x1xf32> -> vector<32x1xf32>
    %105 = vector.broadcast %104 : vector<32x1xf32> to vector<32x8xf32>
    %106 = arith.mulf %101, %105 : vector<32x8xf32>
    %c0_116 = arith.constant 0 : index
    %c0_117 = arith.constant 0 : index
    %c0_118 = arith.constant 0 : index
    %107 = vector.load %arg16[%c0_116, %c0_117, %c0_118] : memref<1x1x32xf32, #tpu.memory_space<vmem>>, vector<1x1x32xf32>
    %108 = vector.shape_cast %107 : vector<1x1x32xf32> to vector<1x32xf32>
    %109 = vector.extract_strided_slice %106 {offsets = [0, 0], sizes = [8, 8], strides = [1, 1]} : vector<32x8xf32> to vector<8x8xf32>
    %cst_119 = arith.constant dense<0.000000e+00> : vector<8x8xf32>
    %110 = tpu.matmul %109, %26, %cst_119 {dimension_numbers = #tpu.dot_dimension_numbers<[1], [0], [0], [1], [0, 0, 1, 1], [], []>} : vector<8x8xf32>, vector<8x8xf32>, vector<8x8xf32> -> vector<8x8xf32>
    %c0_120 = arith.constant 0 : index
    %c0_121 = arith.constant 0 : index
    %c0_122 = arith.constant 0 : index
    %c0_123 = arith.constant 0 : index
    %111 = vector.load %arg15[%c0_120, %c0_121, %c0_122, %c0_123] : memref<1x4x8x32xf32, #tpu.memory_space<vmem>>, vector<1x1x8x32xf32>
    %112 = vector.shape_cast %111 : vector<1x1x8x32xf32> to vector<8x32xf32>
    %cst_124 = arith.constant dense<0.000000e+00> : vector<8x32xf32>
    %113 = tpu.matmul %110, %112, %cst_124 {dimension_numbers = #tpu.dot_dimension_numbers<[1], [0], [0], [1], [0, 0, 1, 1], [], []>} : vector<8x8xf32>, vector<8x32xf32>, vector<8x32xf32> -> vector<8x32xf32>
    %114 = vector.broadcast %108 : vector<1x32xf32> to vector<8x32xf32>
    %115 = arith.addf %114, %113 : vector<8x32xf32>
    %116 = vector.extract_strided_slice %106 {offsets = [8, 0], sizes = [8, 8], strides = [1, 1]} : vector<32x8xf32> to vector<8x8xf32>
    %cst_125 = arith.constant dense<0.000000e+00> : vector<8x8xf32>
    %117 = tpu.matmul %116, %47, %cst_125 {dimension_numbers = #tpu.dot_dimension_numbers<[1], [0], [0], [1], [0, 0, 1, 1], [], []>} : vector<8x8xf32>, vector<8x8xf32>, vector<8x8xf32> -> vector<8x8xf32>
    %c0_126 = arith.constant 0 : index
    %c1_127 = arith.constant 1 : index
    %c0_128 = arith.constant 0 : index
    %c0_129 = arith.constant 0 : index
    %118 = vector.load %arg15[%c0_126, %c1_127, %c0_128, %c0_129] : memref<1x4x8x32xf32, #tpu.memory_space<vmem>>, vector<1x1x8x32xf32>
    %119 = vector.shape_cast %118 : vector<1x1x8x32xf32> to vector<8x32xf32>
    %cst_130 = arith.constant dense<0.000000e+00> : vector<8x32xf32>
    %120 = tpu.matmul %117, %119, %cst_130 {dimension_numbers = #tpu.dot_dimension_numbers<[1], [0], [0], [1], [0, 0, 1, 1], [], []>} : vector<8x8xf32>, vector<8x32xf32>, vector<8x32xf32> -> vector<8x32xf32>
    %121 = arith.addf %115, %120 : vector<8x32xf32>
    %122 = vector.extract_strided_slice %106 {offsets = [16, 0], sizes = [8, 8], strides = [1, 1]} : vector<32x8xf32> to vector<8x8xf32>
    %cst_131 = arith.constant dense<0.000000e+00> : vector<8x8xf32>
    %123 = tpu.matmul %122, %68, %cst_131 {dimension_numbers = #tpu.dot_dimension_numbers<[1], [0], [0], [1], [0, 0, 1, 1], [], []>} : vector<8x8xf32>, vector<8x8xf32>, vector<8x8xf32> -> vector<8x8xf32>
    %c0_132 = arith.constant 0 : index
    %c2_133 = arith.constant 2 : index
    %c0_134 = arith.constant 0 : index
    %c0_135 = arith.constant 0 : index
    %124 = vector.load %arg15[%c0_132, %c2_133, %c0_134, %c0_135] : memref<1x4x8x32xf32, #tpu.memory_space<vmem>>, vector<1x1x8x32xf32>
    %125 = vector.shape_cast %124 : vector<1x1x8x32xf32> to vector<8x32xf32>
    %cst_136 = arith.constant dense<0.000000e+00> : vector<8x32xf32>
    %126 = tpu.matmul %123, %125, %cst_136 {dimension_numbers = #tpu.dot_dimension_numbers<[1], [0], [0], [1], [0, 0, 1, 1], [], []>} : vector<8x8xf32>, vector<8x32xf32>, vector<8x32xf32> -> vector<8x32xf32>
    %127 = arith.addf %121, %126 : vector<8x32xf32>
    %128 = vector.extract_strided_slice %106 {offsets = [24, 0], sizes = [8, 8], strides = [1, 1]} : vector<32x8xf32> to vector<8x8xf32>
    %cst_137 = arith.constant dense<0.000000e+00> : vector<8x8xf32>
    %129 = tpu.matmul %128, %89, %cst_137 {dimension_numbers = #tpu.dot_dimension_numbers<[1], [0], [0], [1], [0, 0, 1, 1], [], []>} : vector<8x8xf32>, vector<8x8xf32>, vector<8x8xf32> -> vector<8x8xf32>
    %c0_138 = arith.constant 0 : index
    %c3_139 = arith.constant 3 : index
    %c0_140 = arith.constant 0 : index
    %c0_141 = arith.constant 0 : index
    %130 = vector.load %arg15[%c0_138, %c3_139, %c0_140, %c0_141] : memref<1x4x8x32xf32, #tpu.memory_space<vmem>>, vector<1x1x8x32xf32>
    %131 = vector.shape_cast %130 : vector<1x1x8x32xf32> to vector<8x32xf32>
    %cst_142 = arith.constant dense<0.000000e+00> : vector<8x32xf32>
    %132 = tpu.matmul %129, %131, %cst_142 {dimension_numbers = #tpu.dot_dimension_numbers<[1], [0], [0], [1], [0, 0, 1, 1], [], []>} : vector<8x8xf32>, vector<8x32xf32>, vector<8x32xf32> -> vector<8x32xf32>
    %133 = arith.addf %127, %132 : vector<8x32xf32>
    %134 = arith.addf %3, %133 : vector<8x32xf32>
    %cst_143 = arith.constant dense<0.000000e+00> : vector<8xf32>
    %135 = vector.multi_reduction <add>, %134, %cst_143 [1] : vector<8x32xf32> to vector<8xf32>
    %136 = vector.shape_cast %135 : vector<8xf32> to vector<8x1xf32>
    %cst_144 = arith.constant 3.200000e+01 : f32
    %137 = vector.broadcast %cst_144 : f32 to vector<8x1xf32>
    %138 = arith.divf %136, %137 : vector<8x1xf32>
    %139 = vector.broadcast %138 : vector<8x1xf32> to vector<8x32xf32>
    %140 = arith.subf %134, %139 : vector<8x32xf32>
    %141 = arith.mulf %140, %140 : vector<8x32xf32>
    %cst_145 = arith.constant dense<0.000000e+00> : vector<8xf32>
    %142 = vector.multi_reduction <add>, %141, %cst_145 [1] : vector<8x32xf32> to vector<8xf32>
    %143 = vector.shape_cast %142 : vector<8xf32> to vector<8x1xf32>
    %cst_146 = arith.constant 3.200000e+01 : f32
    %144 = vector.broadcast %cst_146 : f32 to vector<8x1xf32>
    %145 = arith.divf %143, %144 : vector<8x1xf32>
    %cst_147 = arith.constant 9.99999974E-6 : f32
    %146 = vector.broadcast %cst_147 : f32 to vector<8x1xf32>
    %147 = arith.addf %145, %146 : vector<8x1xf32>
    %148 = math.rsqrt %147 : vector<8x1xf32>
    %149 = vector.broadcast %148 : vector<8x1xf32> to vector<8x32xf32>
    %150 = arith.mulf %140, %149 : vector<8x32xf32>
    %c0_148 = arith.constant 0 : index
    %c0_149 = arith.constant 0 : index
    %c0_150 = arith.constant 0 : index
    %151 = vector.load %arg29[%c0_148, %c0_149, %c0_150] : memref<1x1x32xf32, #tpu.memory_space<vmem>>, vector<1x1x32xf32>
    %152 = vector.shape_cast %151 : vector<1x1x32xf32> to vector<1x32xf32>
    %153 = vector.broadcast %152 : vector<1x32xf32> to vector<8x32xf32>
    %154 = arith.mulf %150, %153 : vector<8x32xf32>
    %c0_151 = arith.constant 0 : index
    %c0_152 = arith.constant 0 : index
    %c0_153 = arith.constant 0 : index
    %155 = vector.load %arg30[%c0_151, %c0_152, %c0_153] : memref<1x1x32xf32, #tpu.memory_space<vmem>>, vector<1x1x32xf32>
    %156 = vector.shape_cast %155 : vector<1x1x32xf32> to vector<1x32xf32>
    %157 = vector.broadcast %156 : vector<1x32xf32> to vector<8x32xf32>
    %158 = arith.addf %154, %157 : vector<8x32xf32>
    %c0_154 = arith.constant 0 : index
    %c0_155 = arith.constant 0 : index
    %c0_156 = arith.constant 0 : index
    %c0_157 = arith.constant 0 : index
    %159 = vector.load %arg17[%c0_154, %c0_155, %c0_156, %c0_157] : memref<1x4x32x8xf32, #tpu.memory_space<vmem>>, vector<1x1x32x8xf32>
    %160 = vector.shape_cast %159 : vector<1x1x32x8xf32> to vector<32x8xf32>
    %cst_158 = arith.constant dense<0.000000e+00> : vector<8x8xf32>
    %161 = tpu.matmul %158, %160, %cst_158 {dimension_numbers = #tpu.dot_dimension_numbers<[1], [0], [0], [1], [0, 0, 1, 1], [], []>} : vector<8x32xf32>, vector<32x8xf32>, vector<8x8xf32> -> vector<8x8xf32>
    %c0_159 = arith.constant 0 : index
    %c0_160 = arith.constant 0 : index
    %c0_161 = arith.constant 0 : index
    %c0_162 = arith.constant 0 : index
    %162 = vector.load %arg18[%c0_159, %c0_160, %c0_161, %c0_162] : memref<1x4x1x8xf32, #tpu.memory_space<vmem>>, vector<1x1x1x8xf32>
    %163 = vector.shape_cast %162 : vector<1x1x1x8xf32> to vector<1x8xf32>
    %164 = vector.broadcast %163 : vector<1x8xf32> to vector<8x8xf32>
    %165 = arith.addf %161, %164 : vector<8x8xf32>
    %c0_163 = arith.constant 0 : index
    %c0_164 = arith.constant 0 : index
    %c0_165 = arith.constant 0 : index
    %c0_166 = arith.constant 0 : index
    %166 = vector.load %arg19[%c0_163, %c0_164, %c0_165, %c0_166] : memref<1x4x32x8xf32, #tpu.memory_space<vmem>>, vector<1x1x32x8xf32>
    %167 = vector.shape_cast %166 : vector<1x1x32x8xf32> to vector<32x8xf32>
    %cst_167 = arith.constant dense<0.000000e+00> : vector<8x8xf32>
    %168 = tpu.matmul %5, %167, %cst_167 {dimension_numbers = #tpu.dot_dimension_numbers<[1], [0], [0], [1], [0, 0, 1, 1], [], []>} : vector<8x32xf32>, vector<32x8xf32>, vector<8x8xf32> -> vector<8x8xf32>
    %c0_168 = arith.constant 0 : index
    %c0_169 = arith.constant 0 : index
    %c0_170 = arith.constant 0 : index
    %c0_171 = arith.constant 0 : index
    %169 = vector.load %arg20[%c0_168, %c0_169, %c0_170, %c0_171] : memref<1x4x1x8xf32, #tpu.memory_space<vmem>>, vector<1x1x1x8xf32>
    %170 = vector.shape_cast %169 : vector<1x1x1x8xf32> to vector<1x8xf32>
    %171 = vector.broadcast %170 : vector<1x8xf32> to vector<8x8xf32>
    %172 = arith.addf %168, %171 : vector<8x8xf32>
    %c0_172 = arith.constant 0 : index
    %c0_173 = arith.constant 0 : index
    %c0_174 = arith.constant 0 : index
    %c0_175 = arith.constant 0 : index
    %173 = vector.load %arg21[%c0_172, %c0_173, %c0_174, %c0_175] : memref<1x4x32x8xf32, #tpu.memory_space<vmem>>, vector<1x1x32x8xf32>
    %174 = vector.shape_cast %173 : vector<1x1x32x8xf32> to vector<32x8xf32>
    %cst_176 = arith.constant dense<0.000000e+00> : vector<8x8xf32>
    %175 = tpu.matmul %5, %174, %cst_176 {dimension_numbers = #tpu.dot_dimension_numbers<[1], [0], [0], [1], [0, 0, 1, 1], [], []>} : vector<8x32xf32>, vector<32x8xf32>, vector<8x8xf32> -> vector<8x8xf32>
    %c0_177 = arith.constant 0 : index
    %c0_178 = arith.constant 0 : index
    %c0_179 = arith.constant 0 : index
    %c0_180 = arith.constant 0 : index
    %176 = vector.load %arg22[%c0_177, %c0_178, %c0_179, %c0_180] : memref<1x4x1x8xf32, #tpu.memory_space<vmem>>, vector<1x1x1x8xf32>
    %177 = vector.shape_cast %176 : vector<1x1x1x8xf32> to vector<1x8xf32>
    %178 = vector.broadcast %177 : vector<1x8xf32> to vector<8x8xf32>
    %179 = arith.addf %175, %178 : vector<8x8xf32>
    %c0_181 = arith.constant 0 : index
    %c1_182 = arith.constant 1 : index
    %c0_183 = arith.constant 0 : index
    %c0_184 = arith.constant 0 : index
    %180 = vector.load %arg17[%c0_181, %c1_182, %c0_183, %c0_184] : memref<1x4x32x8xf32, #tpu.memory_space<vmem>>, vector<1x1x32x8xf32>
    %181 = vector.shape_cast %180 : vector<1x1x32x8xf32> to vector<32x8xf32>
    %cst_185 = arith.constant dense<0.000000e+00> : vector<8x8xf32>
    %182 = tpu.matmul %158, %181, %cst_185 {dimension_numbers = #tpu.dot_dimension_numbers<[1], [0], [0], [1], [0, 0, 1, 1], [], []>} : vector<8x32xf32>, vector<32x8xf32>, vector<8x8xf32> -> vector<8x8xf32>
    %c0_186 = arith.constant 0 : index
    %c1_187 = arith.constant 1 : index
    %c0_188 = arith.constant 0 : index
    %c0_189 = arith.constant 0 : index
    %183 = vector.load %arg18[%c0_186, %c1_187, %c0_188, %c0_189] : memref<1x4x1x8xf32, #tpu.memory_space<vmem>>, vector<1x1x1x8xf32>
    %184 = vector.shape_cast %183 : vector<1x1x1x8xf32> to vector<1x8xf32>
    %185 = vector.broadcast %184 : vector<1x8xf32> to vector<8x8xf32>
    %186 = arith.addf %182, %185 : vector<8x8xf32>
    %c0_190 = arith.constant 0 : index
    %c1_191 = arith.constant 1 : index
    %c0_192 = arith.constant 0 : index
    %c0_193 = arith.constant 0 : index
    %187 = vector.load %arg19[%c0_190, %c1_191, %c0_192, %c0_193] : memref<1x4x32x8xf32, #tpu.memory_space<vmem>>, vector<1x1x32x8xf32>
    %188 = vector.shape_cast %187 : vector<1x1x32x8xf32> to vector<32x8xf32>
    %cst_194 = arith.constant dense<0.000000e+00> : vector<8x8xf32>
    %189 = tpu.matmul %5, %188, %cst_194 {dimension_numbers = #tpu.dot_dimension_numbers<[1], [0], [0], [1], [0, 0, 1, 1], [], []>} : vector<8x32xf32>, vector<32x8xf32>, vector<8x8xf32> -> vector<8x8xf32>
    %c0_195 = arith.constant 0 : index
    %c1_196 = arith.constant 1 : index
    %c0_197 = arith.constant 0 : index
    %c0_198 = arith.constant 0 : index
    %190 = vector.load %arg20[%c0_195, %c1_196, %c0_197, %c0_198] : memref<1x4x1x8xf32, #tpu.memory_space<vmem>>, vector<1x1x1x8xf32>
    %191 = vector.shape_cast %190 : vector<1x1x1x8xf32> to vector<1x8xf32>
    %192 = vector.broadcast %191 : vector<1x8xf32> to vector<8x8xf32>
    %193 = arith.addf %189, %192 : vector<8x8xf32>
    %c0_199 = arith.constant 0 : index
    %c1_200 = arith.constant 1 : index
    %c0_201 = arith.constant 0 : index
    %c0_202 = arith.constant 0 : index
    %194 = vector.load %arg21[%c0_199, %c1_200, %c0_201, %c0_202] : memref<1x4x32x8xf32, #tpu.memory_space<vmem>>, vector<1x1x32x8xf32>
    %195 = vector.shape_cast %194 : vector<1x1x32x8xf32> to vector<32x8xf32>
    %cst_203 = arith.constant dense<0.000000e+00> : vector<8x8xf32>
    %196 = tpu.matmul %5, %195, %cst_203 {dimension_numbers = #tpu.dot_dimension_numbers<[1], [0], [0], [1], [0, 0, 1, 1], [], []>} : vector<8x32xf32>, vector<32x8xf32>, vector<8x8xf32> -> vector<8x8xf32>
    %c0_204 = arith.constant 0 : index
    %c1_205 = arith.constant 1 : index
    %c0_206 = arith.constant 0 : index
    %c0_207 = arith.constant 0 : index
    %197 = vector.load %arg22[%c0_204, %c1_205, %c0_206, %c0_207] : memref<1x4x1x8xf32, #tpu.memory_space<vmem>>, vector<1x1x1x8xf32>
    %198 = vector.shape_cast %197 : vector<1x1x1x8xf32> to vector<1x8xf32>
    %199 = vector.broadcast %198 : vector<1x8xf32> to vector<8x8xf32>
    %200 = arith.addf %196, %199 : vector<8x8xf32>
    %c0_208 = arith.constant 0 : index
    %c2_209 = arith.constant 2 : index
    %c0_210 = arith.constant 0 : index
    %c0_211 = arith.constant 0 : index
    %201 = vector.load %arg17[%c0_208, %c2_209, %c0_210, %c0_211] : memref<1x4x32x8xf32, #tpu.memory_space<vmem>>, vector<1x1x32x8xf32>
    %202 = vector.shape_cast %201 : vector<1x1x32x8xf32> to vector<32x8xf32>
    %cst_212 = arith.constant dense<0.000000e+00> : vector<8x8xf32>
    %203 = tpu.matmul %158, %202, %cst_212 {dimension_numbers = #tpu.dot_dimension_numbers<[1], [0], [0], [1], [0, 0, 1, 1], [], []>} : vector<8x32xf32>, vector<32x8xf32>, vector<8x8xf32> -> vector<8x8xf32>
    %c0_213 = arith.constant 0 : index
    %c2_214 = arith.constant 2 : index
    %c0_215 = arith.constant 0 : index
    %c0_216 = arith.constant 0 : index
    %204 = vector.load %arg18[%c0_213, %c2_214, %c0_215, %c0_216] : memref<1x4x1x8xf32, #tpu.memory_space<vmem>>, vector<1x1x1x8xf32>
    %205 = vector.shape_cast %204 : vector<1x1x1x8xf32> to vector<1x8xf32>
    %206 = vector.broadcast %205 : vector<1x8xf32> to vector<8x8xf32>
    %207 = arith.addf %203, %206 : vector<8x8xf32>
    %c0_217 = arith.constant 0 : index
    %c2_218 = arith.constant 2 : index
    %c0_219 = arith.constant 0 : index
    %c0_220 = arith.constant 0 : index
    %208 = vector.load %arg19[%c0_217, %c2_218, %c0_219, %c0_220] : memref<1x4x32x8xf32, #tpu.memory_space<vmem>>, vector<1x1x32x8xf32>
    %209 = vector.shape_cast %208 : vector<1x1x32x8xf32> to vector<32x8xf32>
    %cst_221 = arith.constant dense<0.000000e+00> : vector<8x8xf32>
    %210 = tpu.matmul %5, %209, %cst_221 {dimension_numbers = #tpu.dot_dimension_numbers<[1], [0], [0], [1], [0, 0, 1, 1], [], []>} : vector<8x32xf32>, vector<32x8xf32>, vector<8x8xf32> -> vector<8x8xf32>
    %c0_222 = arith.constant 0 : index
    %c2_223 = arith.constant 2 : index
    %c0_224 = arith.constant 0 : index
    %c0_225 = arith.constant 0 : index
    %211 = vector.load %arg20[%c0_222, %c2_223, %c0_224, %c0_225] : memref<1x4x1x8xf32, #tpu.memory_space<vmem>>, vector<1x1x1x8xf32>
    %212 = vector.shape_cast %211 : vector<1x1x1x8xf32> to vector<1x8xf32>
    %213 = vector.broadcast %212 : vector<1x8xf32> to vector<8x8xf32>
    %214 = arith.addf %210, %213 : vector<8x8xf32>
    %c0_226 = arith.constant 0 : index
    %c2_227 = arith.constant 2 : index
    %c0_228 = arith.constant 0 : index
    %c0_229 = arith.constant 0 : index
    %215 = vector.load %arg21[%c0_226, %c2_227, %c0_228, %c0_229] : memref<1x4x32x8xf32, #tpu.memory_space<vmem>>, vector<1x1x32x8xf32>
    %216 = vector.shape_cast %215 : vector<1x1x32x8xf32> to vector<32x8xf32>
    %cst_230 = arith.constant dense<0.000000e+00> : vector<8x8xf32>
    %217 = tpu.matmul %5, %216, %cst_230 {dimension_numbers = #tpu.dot_dimension_numbers<[1], [0], [0], [1], [0, 0, 1, 1], [], []>} : vector<8x32xf32>, vector<32x8xf32>, vector<8x8xf32> -> vector<8x8xf32>
    %c0_231 = arith.constant 0 : index
    %c2_232 = arith.constant 2 : index
    %c0_233 = arith.constant 0 : index
    %c0_234 = arith.constant 0 : index
    %218 = vector.load %arg22[%c0_231, %c2_232, %c0_233, %c0_234] : memref<1x4x1x8xf32, #tpu.memory_space<vmem>>, vector<1x1x1x8xf32>
    %219 = vector.shape_cast %218 : vector<1x1x1x8xf32> to vector<1x8xf32>
    %220 = vector.broadcast %219 : vector<1x8xf32> to vector<8x8xf32>
    %221 = arith.addf %217, %220 : vector<8x8xf32>
    %c0_235 = arith.constant 0 : index
    %c3_236 = arith.constant 3 : index
    %c0_237 = arith.constant 0 : index
    %c0_238 = arith.constant 0 : index
    %222 = vector.load %arg17[%c0_235, %c3_236, %c0_237, %c0_238] : memref<1x4x32x8xf32, #tpu.memory_space<vmem>>, vector<1x1x32x8xf32>
    %223 = vector.shape_cast %222 : vector<1x1x32x8xf32> to vector<32x8xf32>
    %cst_239 = arith.constant dense<0.000000e+00> : vector<8x8xf32>
    %224 = tpu.matmul %158, %223, %cst_239 {dimension_numbers = #tpu.dot_dimension_numbers<[1], [0], [0], [1], [0, 0, 1, 1], [], []>} : vector<8x32xf32>, vector<32x8xf32>, vector<8x8xf32> -> vector<8x8xf32>
    %c0_240 = arith.constant 0 : index
    %c3_241 = arith.constant 3 : index
    %c0_242 = arith.constant 0 : index
    %c0_243 = arith.constant 0 : index
    %225 = vector.load %arg18[%c0_240, %c3_241, %c0_242, %c0_243] : memref<1x4x1x8xf32, #tpu.memory_space<vmem>>, vector<1x1x1x8xf32>
    %226 = vector.shape_cast %225 : vector<1x1x1x8xf32> to vector<1x8xf32>
    %227 = vector.broadcast %226 : vector<1x8xf32> to vector<8x8xf32>
    %228 = arith.addf %224, %227 : vector<8x8xf32>
    %c0_244 = arith.constant 0 : index
    %c3_245 = arith.constant 3 : index
    %c0_246 = arith.constant 0 : index
    %c0_247 = arith.constant 0 : index
    %229 = vector.load %arg19[%c0_244, %c3_245, %c0_246, %c0_247] : memref<1x4x32x8xf32, #tpu.memory_space<vmem>>, vector<1x1x32x8xf32>
    %230 = vector.shape_cast %229 : vector<1x1x32x8xf32> to vector<32x8xf32>
    %cst_248 = arith.constant dense<0.000000e+00> : vector<8x8xf32>
    %231 = tpu.matmul %5, %230, %cst_248 {dimension_numbers = #tpu.dot_dimension_numbers<[1], [0], [0], [1], [0, 0, 1, 1], [], []>} : vector<8x32xf32>, vector<32x8xf32>, vector<8x8xf32> -> vector<8x8xf32>
    %c0_249 = arith.constant 0 : index
    %c3_250 = arith.constant 3 : index
    %c0_251 = arith.constant 0 : index
    %c0_252 = arith.constant 0 : index
    %232 = vector.load %arg20[%c0_249, %c3_250, %c0_251, %c0_252] : memref<1x4x1x8xf32, #tpu.memory_space<vmem>>, vector<1x1x1x8xf32>
    %233 = vector.shape_cast %232 : vector<1x1x1x8xf32> to vector<1x8xf32>
    %234 = vector.broadcast %233 : vector<1x8xf32> to vector<8x8xf32>
    %235 = arith.addf %231, %234 : vector<8x8xf32>
    %c0_253 = arith.constant 0 : index
    %c3_254 = arith.constant 3 : index
    %c0_255 = arith.constant 0 : index
    %c0_256 = arith.constant 0 : index
    %236 = vector.load %arg21[%c0_253, %c3_254, %c0_255, %c0_256] : memref<1x4x32x8xf32, #tpu.memory_space<vmem>>, vector<1x1x32x8xf32>
    %237 = vector.shape_cast %236 : vector<1x1x32x8xf32> to vector<32x8xf32>
    %cst_257 = arith.constant dense<0.000000e+00> : vector<8x8xf32>
    %238 = tpu.matmul %5, %237, %cst_257 {dimension_numbers = #tpu.dot_dimension_numbers<[1], [0], [0], [1], [0, 0, 1, 1], [], []>} : vector<8x32xf32>, vector<32x8xf32>, vector<8x8xf32> -> vector<8x8xf32>
    %c0_258 = arith.constant 0 : index
    %c3_259 = arith.constant 3 : index
    %c0_260 = arith.constant 0 : index
    %c0_261 = arith.constant 0 : index
    %239 = vector.load %arg22[%c0_258, %c3_259, %c0_260, %c0_261] : memref<1x4x1x8xf32, #tpu.memory_space<vmem>>, vector<1x1x1x8xf32>
    %240 = vector.shape_cast %239 : vector<1x1x1x8xf32> to vector<1x8xf32>
    %241 = vector.broadcast %240 : vector<1x8xf32> to vector<8x8xf32>
    %242 = arith.addf %238, %241 : vector<8x8xf32>
    %cst_262 = arith.constant dense<0.000000e+00> : vector<8x8xf32>
    %243 = tpu.matmul %165, %172, %cst_262 {dimension_numbers = #tpu.dot_dimension_numbers<[1], [1], [0], [0], [0, 0, 1, 0], [], []>} : vector<8x8xf32>, vector<8x8xf32>, vector<8x8xf32> -> vector<8x8xf32>
    %cst_263 = arith.constant dense<0.000000e+00> : vector<8x8xf32>
    %244 = tpu.matmul %186, %193, %cst_263 {dimension_numbers = #tpu.dot_dimension_numbers<[1], [1], [0], [0], [0, 0, 1, 0], [], []>} : vector<8x8xf32>, vector<8x8xf32>, vector<8x8xf32> -> vector<8x8xf32>
    %cst_264 = arith.constant dense<0.000000e+00> : vector<8x8xf32>
    %245 = tpu.matmul %207, %214, %cst_264 {dimension_numbers = #tpu.dot_dimension_numbers<[1], [1], [0], [0], [0, 0, 1, 0], [], []>} : vector<8x8xf32>, vector<8x8xf32>, vector<8x8xf32> -> vector<8x8xf32>
    %cst_265 = arith.constant dense<0.000000e+00> : vector<8x8xf32>
    %246 = tpu.matmul %228, %235, %cst_265 {dimension_numbers = #tpu.dot_dimension_numbers<[1], [1], [0], [0], [0, 0, 1, 0], [], []>} : vector<8x8xf32>, vector<8x8xf32>, vector<8x8xf32> -> vector<8x8xf32>
    %247 = tpu.concatenate %243, %244, %245, %246 in 0 : vector<8x8xf32>, vector<8x8xf32>, vector<8x8xf32>, vector<8x8xf32> -> vector<32x8xf32>
    %cst_266 = arith.constant 0.353553385 : f32
    %248 = vector.broadcast %cst_266 : f32 to vector<32x8xf32>
    %249 = arith.mulf %247, %248 : vector<32x8xf32>
    %cst_267 = arith.constant dense<0xFF800000> : vector<32xf32>
    %250 = vector.multi_reduction <maximumf>, %249, %cst_267 [1] : vector<32x8xf32> to vector<32xf32>
    %251 = vector.shape_cast %250 : vector<32xf32> to vector<32x1xf32>
    %252 = vector.broadcast %251 : vector<32x1xf32> to vector<32x8xf32>
    %253 = arith.subf %249, %252 : vector<32x8xf32>
    %254 = math.exp %253 : vector<32x8xf32>
    %cst_268 = arith.constant dense<0.000000e+00> : vector<32xf32>
    %255 = vector.multi_reduction <add>, %254, %cst_268 [1] : vector<32x8xf32> to vector<32xf32>
    %256 = vector.shape_cast %255 : vector<32xf32> to vector<32x1xf32>
    %257 = tpu.reciprocal %256 {approx = true} : vector<32x1xf32> -> vector<32x1xf32>
    %258 = vector.broadcast %257 : vector<32x1xf32> to vector<32x8xf32>
    %259 = arith.mulf %254, %258 : vector<32x8xf32>
    %c0_269 = arith.constant 0 : index
    %c0_270 = arith.constant 0 : index
    %c0_271 = arith.constant 0 : index
    %260 = vector.load %arg24[%c0_269, %c0_270, %c0_271] : memref<1x1x32xf32, #tpu.memory_space<vmem>>, vector<1x1x32xf32>
    %261 = vector.shape_cast %260 : vector<1x1x32xf32> to vector<1x32xf32>
    %262 = vector.extract_strided_slice %259 {offsets = [0, 0], sizes = [8, 8], strides = [1, 1]} : vector<32x8xf32> to vector<8x8xf32>
    %cst_272 = arith.constant dense<0.000000e+00> : vector<8x8xf32>
    %263 = tpu.matmul %262, %179, %cst_272 {dimension_numbers = #tpu.dot_dimension_numbers<[1], [0], [0], [1], [0, 0, 1, 1], [], []>} : vector<8x8xf32>, vector<8x8xf32>, vector<8x8xf32> -> vector<8x8xf32>
    %c0_273 = arith.constant 0 : index
    %c0_274 = arith.constant 0 : index
    %c0_275 = arith.constant 0 : index
    %c0_276 = arith.constant 0 : index
    %264 = vector.load %arg23[%c0_273, %c0_274, %c0_275, %c0_276] : memref<1x4x8x32xf32, #tpu.memory_space<vmem>>, vector<1x1x8x32xf32>
    %265 = vector.shape_cast %264 : vector<1x1x8x32xf32> to vector<8x32xf32>
    %cst_277 = arith.constant dense<0.000000e+00> : vector<8x32xf32>
    %266 = tpu.matmul %263, %265, %cst_277 {dimension_numbers = #tpu.dot_dimension_numbers<[1], [0], [0], [1], [0, 0, 1, 1], [], []>} : vector<8x8xf32>, vector<8x32xf32>, vector<8x32xf32> -> vector<8x32xf32>
    %267 = vector.broadcast %261 : vector<1x32xf32> to vector<8x32xf32>
    %268 = arith.addf %267, %266 : vector<8x32xf32>
    %269 = vector.extract_strided_slice %259 {offsets = [8, 0], sizes = [8, 8], strides = [1, 1]} : vector<32x8xf32> to vector<8x8xf32>
    %cst_278 = arith.constant dense<0.000000e+00> : vector<8x8xf32>
    %270 = tpu.matmul %269, %200, %cst_278 {dimension_numbers = #tpu.dot_dimension_numbers<[1], [0], [0], [1], [0, 0, 1, 1], [], []>} : vector<8x8xf32>, vector<8x8xf32>, vector<8x8xf32> -> vector<8x8xf32>
    %c0_279 = arith.constant 0 : index
    %c1_280 = arith.constant 1 : index
    %c0_281 = arith.constant 0 : index
    %c0_282 = arith.constant 0 : index
    %271 = vector.load %arg23[%c0_279, %c1_280, %c0_281, %c0_282] : memref<1x4x8x32xf32, #tpu.memory_space<vmem>>, vector<1x1x8x32xf32>
    %272 = vector.shape_cast %271 : vector<1x1x8x32xf32> to vector<8x32xf32>
    %cst_283 = arith.constant dense<0.000000e+00> : vector<8x32xf32>
    %273 = tpu.matmul %270, %272, %cst_283 {dimension_numbers = #tpu.dot_dimension_numbers<[1], [0], [0], [1], [0, 0, 1, 1], [], []>} : vector<8x8xf32>, vector<8x32xf32>, vector<8x32xf32> -> vector<8x32xf32>
    %274 = arith.addf %268, %273 : vector<8x32xf32>
    %275 = vector.extract_strided_slice %259 {offsets = [16, 0], sizes = [8, 8], strides = [1, 1]} : vector<32x8xf32> to vector<8x8xf32>
    %cst_284 = arith.constant dense<0.000000e+00> : vector<8x8xf32>
    %276 = tpu.matmul %275, %221, %cst_284 {dimension_numbers = #tpu.dot_dimension_numbers<[1], [0], [0], [1], [0, 0, 1, 1], [], []>} : vector<8x8xf32>, vector<8x8xf32>, vector<8x8xf32> -> vector<8x8xf32>
    %c0_285 = arith.constant 0 : index
    %c2_286 = arith.constant 2 : index
    %c0_287 = arith.constant 0 : index
    %c0_288 = arith.constant 0 : index
    %277 = vector.load %arg23[%c0_285, %c2_286, %c0_287, %c0_288] : memref<1x4x8x32xf32, #tpu.memory_space<vmem>>, vector<1x1x8x32xf32>
    %278 = vector.shape_cast %277 : vector<1x1x8x32xf32> to vector<8x32xf32>
    %cst_289 = arith.constant dense<0.000000e+00> : vector<8x32xf32>
    %279 = tpu.matmul %276, %278, %cst_289 {dimension_numbers = #tpu.dot_dimension_numbers<[1], [0], [0], [1], [0, 0, 1, 1], [], []>} : vector<8x8xf32>, vector<8x32xf32>, vector<8x32xf32> -> vector<8x32xf32>
    %280 = arith.addf %274, %279 : vector<8x32xf32>
    %281 = vector.extract_strided_slice %259 {offsets = [24, 0], sizes = [8, 8], strides = [1, 1]} : vector<32x8xf32> to vector<8x8xf32>
    %cst_290 = arith.constant dense<0.000000e+00> : vector<8x8xf32>
    %282 = tpu.matmul %281, %242, %cst_290 {dimension_numbers = #tpu.dot_dimension_numbers<[1], [0], [0], [1], [0, 0, 1, 1], [], []>} : vector<8x8xf32>, vector<8x8xf32>, vector<8x8xf32> -> vector<8x8xf32>
    %c0_291 = arith.constant 0 : index
    %c3_292 = arith.constant 3 : index
    %c0_293 = arith.constant 0 : index
    %c0_294 = arith.constant 0 : index
    %283 = vector.load %arg23[%c0_291, %c3_292, %c0_293, %c0_294] : memref<1x4x8x32xf32, #tpu.memory_space<vmem>>, vector<1x1x8x32xf32>
    %284 = vector.shape_cast %283 : vector<1x1x8x32xf32> to vector<8x32xf32>
    %cst_295 = arith.constant dense<0.000000e+00> : vector<8x32xf32>
    %285 = tpu.matmul %282, %284, %cst_295 {dimension_numbers = #tpu.dot_dimension_numbers<[1], [0], [0], [1], [0, 0, 1, 1], [], []>} : vector<8x8xf32>, vector<8x32xf32>, vector<8x32xf32> -> vector<8x32xf32>
    %286 = arith.addf %280, %285 : vector<8x32xf32>
    %287 = arith.addf %158, %286 : vector<8x32xf32>
    %cst_296 = arith.constant dense<0.000000e+00> : vector<8xf32>
    %288 = vector.multi_reduction <add>, %287, %cst_296 [1] : vector<8x32xf32> to vector<8xf32>
    %289 = vector.shape_cast %288 : vector<8xf32> to vector<8x1xf32>
    %cst_297 = arith.constant 3.200000e+01 : f32
    %290 = vector.broadcast %cst_297 : f32 to vector<8x1xf32>
    %291 = arith.divf %289, %290 : vector<8x1xf32>
    %292 = vector.broadcast %291 : vector<8x1xf32> to vector<8x32xf32>
    %293 = arith.subf %287, %292 : vector<8x32xf32>
    %294 = arith.mulf %293, %293 : vector<8x32xf32>
    %cst_298 = arith.constant dense<0.000000e+00> : vector<8xf32>
    %295 = vector.multi_reduction <add>, %294, %cst_298 [1] : vector<8x32xf32> to vector<8xf32>
    %296 = vector.shape_cast %295 : vector<8xf32> to vector<8x1xf32>
    %cst_299 = arith.constant 3.200000e+01 : f32
    %297 = vector.broadcast %cst_299 : f32 to vector<8x1xf32>
    %298 = arith.divf %296, %297 : vector<8x1xf32>
    %cst_300 = arith.constant 9.99999974E-6 : f32
    %299 = vector.broadcast %cst_300 : f32 to vector<8x1xf32>
    %300 = arith.addf %298, %299 : vector<8x1xf32>
    %301 = math.rsqrt %300 : vector<8x1xf32>
    %302 = vector.broadcast %301 : vector<8x1xf32> to vector<8x32xf32>
    %303 = arith.mulf %293, %302 : vector<8x32xf32>
    %c0_301 = arith.constant 0 : index
    %c0_302 = arith.constant 0 : index
    %c0_303 = arith.constant 0 : index
    %304 = vector.load %arg31[%c0_301, %c0_302, %c0_303] : memref<1x1x32xf32, #tpu.memory_space<vmem>>, vector<1x1x32xf32>
    %305 = vector.shape_cast %304 : vector<1x1x32xf32> to vector<1x32xf32>
    %306 = vector.broadcast %305 : vector<1x32xf32> to vector<8x32xf32>
    %307 = arith.mulf %303, %306 : vector<8x32xf32>
    %c0_304 = arith.constant 0 : index
    %c0_305 = arith.constant 0 : index
    %c0_306 = arith.constant 0 : index
    %308 = vector.load %arg32[%c0_304, %c0_305, %c0_306] : memref<1x1x32xf32, #tpu.memory_space<vmem>>, vector<1x1x32xf32>
    %309 = vector.shape_cast %308 : vector<1x1x32xf32> to vector<1x32xf32>
    %310 = vector.broadcast %309 : vector<1x32xf32> to vector<8x32xf32>
    %311 = arith.addf %307, %310 : vector<8x32xf32>
    %c0_307 = arith.constant 0 : index
    %c0_308 = arith.constant 0 : index
    %c0_309 = arith.constant 0 : index
    %312 = vector.load %arg28[%c0_307, %c0_308, %c0_309] : memref<1x1x32xf32, #tpu.memory_space<vmem>>, vector<1x1x32xf32>
    %313 = vector.shape_cast %312 : vector<1x1x32xf32> to vector<1x32xf32>
    %314 = vector.broadcast %313 : vector<1x32xf32> to vector<8x32xf32>
    %315 = arith.addf %311, %314 : vector<8x32xf32>
    %c0_310 = arith.constant 0 : index
    %c0_311 = arith.constant 0 : index
    %c0_312 = arith.constant 0 : index
    %316 = vector.load %arg25[%c0_310, %c0_311, %c0_312] : memref<1x32x2048xbf16, #tpu.memory_space<vmem>>, vector<1x32x512xbf16>
    %317 = vector.shape_cast %316 : vector<1x32x512xbf16> to vector<32x512xbf16>
    %318 = arith.extf %317 : vector<32x512xbf16> to vector<32x512xf32>
    %c0_313 = arith.constant 0 : index
    %c0_314 = arith.constant 0 : index
    %c0_315 = arith.constant 0 : index
    %319 = vector.load %arg26[%c0_313, %c0_314, %c0_315] : memref<1x1x2048xf32, #tpu.memory_space<vmem>>, vector<1x1x512xf32>
    %320 = vector.shape_cast %319 : vector<1x1x512xf32> to vector<1x512xf32>
    %c0_316 = arith.constant 0 : index
    %c0_317 = arith.constant 0 : index
    %c0_318 = arith.constant 0 : index
    %321 = vector.load %arg27[%c0_316, %c0_317, %c0_318] : memref<1x2048x32xbf16, #tpu.memory_space<vmem>>, vector<1x512x32xbf16>
    %322 = vector.shape_cast %321 : vector<1x512x32xbf16> to vector<512x32xbf16>
    %323 = arith.extf %322 : vector<512x32xbf16> to vector<512x32xf32>
    %cst_319 = arith.constant dense<0.000000e+00> : vector<8x512xf32>
    %324 = tpu.matmul %311, %318, %cst_319 {dimension_numbers = #tpu.dot_dimension_numbers<[1], [0], [0], [1], [0, 0, 1, 1], [], []>} : vector<8x32xf32>, vector<32x512xf32>, vector<8x512xf32> -> vector<8x512xf32>
    %325 = vector.broadcast %320 : vector<1x512xf32> to vector<8x512xf32>
    %326 = arith.addf %324, %325 : vector<8x512xf32>
    %cst_320 = arith.constant 0.000000e+00 : f32
    %327 = vector.broadcast %cst_320 : f32 to vector<8x512xf32>
    %328 = arith.maximumf %326, %327 : vector<8x512xf32>
    %cst_321 = arith.constant dense<0.000000e+00> : vector<8x32xf32>
    %329 = tpu.matmul %328, %323, %cst_321 {dimension_numbers = #tpu.dot_dimension_numbers<[1], [0], [0], [1], [0, 0, 1, 1], [], []>} : vector<8x512xf32>, vector<512x32xf32>, vector<8x32xf32> -> vector<8x32xf32>
    %330 = arith.addf %315, %329 : vector<8x32xf32>
    %c0_322 = arith.constant 0 : index
    %c0_323 = arith.constant 0 : index
    %c512 = arith.constant 512 : index
    %331 = vector.load %arg25[%c0_322, %c0_323, %c512] : memref<1x32x2048xbf16, #tpu.memory_space<vmem>>, vector<1x32x512xbf16>
    %332 = vector.shape_cast %331 : vector<1x32x512xbf16> to vector<32x512xbf16>
    %333 = arith.extf %332 : vector<32x512xbf16> to vector<32x512xf32>
    %c0_324 = arith.constant 0 : index
    %c0_325 = arith.constant 0 : index
    %c512_326 = arith.constant 512 : index
    %334 = vector.load %arg26[%c0_324, %c0_325, %c512_326] : memref<1x1x2048xf32, #tpu.memory_space<vmem>>, vector<1x1x512xf32>
    %335 = vector.shape_cast %334 : vector<1x1x512xf32> to vector<1x512xf32>
    %c0_327 = arith.constant 0 : index
    %c512_328 = arith.constant 512 : index
    %c0_329 = arith.constant 0 : index
    %336 = vector.load %arg27[%c0_327, %c512_328, %c0_329] : memref<1x2048x32xbf16, #tpu.memory_space<vmem>>, vector<1x512x32xbf16>
    %337 = vector.shape_cast %336 : vector<1x512x32xbf16> to vector<512x32xbf16>
    %338 = arith.extf %337 : vector<512x32xbf16> to vector<512x32xf32>
    %cst_330 = arith.constant dense<0.000000e+00> : vector<8x512xf32>
    %339 = tpu.matmul %311, %333, %cst_330 {dimension_numbers = #tpu.dot_dimension_numbers<[1], [0], [0], [1], [0, 0, 1, 1], [], []>} : vector<8x32xf32>, vector<32x512xf32>, vector<8x512xf32> -> vector<8x512xf32>
    %340 = vector.broadcast %335 : vector<1x512xf32> to vector<8x512xf32>
    %341 = arith.addf %339, %340 : vector<8x512xf32>
    %cst_331 = arith.constant 0.000000e+00 : f32
    %342 = vector.broadcast %cst_331 : f32 to vector<8x512xf32>
    %343 = arith.maximumf %341, %342 : vector<8x512xf32>
    %cst_332 = arith.constant dense<0.000000e+00> : vector<8x32xf32>
    %344 = tpu.matmul %343, %338, %cst_332 {dimension_numbers = #tpu.dot_dimension_numbers<[1], [0], [0], [1], [0, 0, 1, 1], [], []>} : vector<8x512xf32>, vector<512x32xf32>, vector<8x32xf32> -> vector<8x32xf32>
    %345 = arith.addf %330, %344 : vector<8x32xf32>
    %c0_333 = arith.constant 0 : index
    %c0_334 = arith.constant 0 : index
    %c1024 = arith.constant 1024 : index
    %346 = vector.load %arg25[%c0_333, %c0_334, %c1024] : memref<1x32x2048xbf16, #tpu.memory_space<vmem>>, vector<1x32x512xbf16>
    %347 = vector.shape_cast %346 : vector<1x32x512xbf16> to vector<32x512xbf16>
    %348 = arith.extf %347 : vector<32x512xbf16> to vector<32x512xf32>
    %c0_335 = arith.constant 0 : index
    %c0_336 = arith.constant 0 : index
    %c1024_337 = arith.constant 1024 : index
    %349 = vector.load %arg26[%c0_335, %c0_336, %c1024_337] : memref<1x1x2048xf32, #tpu.memory_space<vmem>>, vector<1x1x512xf32>
    %350 = vector.shape_cast %349 : vector<1x1x512xf32> to vector<1x512xf32>
    %c0_338 = arith.constant 0 : index
    %c1024_339 = arith.constant 1024 : index
    %c0_340 = arith.constant 0 : index
    %351 = vector.load %arg27[%c0_338, %c1024_339, %c0_340] : memref<1x2048x32xbf16, #tpu.memory_space<vmem>>, vector<1x512x32xbf16>
    %352 = vector.shape_cast %351 : vector<1x512x32xbf16> to vector<512x32xbf16>
    %353 = arith.extf %352 : vector<512x32xbf16> to vector<512x32xf32>
    %cst_341 = arith.constant dense<0.000000e+00> : vector<8x512xf32>
    %354 = tpu.matmul %311, %348, %cst_341 {dimension_numbers = #tpu.dot_dimension_numbers<[1], [0], [0], [1], [0, 0, 1, 1], [], []>} : vector<8x32xf32>, vector<32x512xf32>, vector<8x512xf32> -> vector<8x512xf32>
    %355 = vector.broadcast %350 : vector<1x512xf32> to vector<8x512xf32>
    %356 = arith.addf %354, %355 : vector<8x512xf32>
    %cst_342 = arith.constant 0.000000e+00 : f32
    %357 = vector.broadcast %cst_342 : f32 to vector<8x512xf32>
    %358 = arith.maximumf %356, %357 : vector<8x512xf32>
    %cst_343 = arith.constant dense<0.000000e+00> : vector<8x32xf32>
    %359 = tpu.matmul %358, %353, %cst_343 {dimension_numbers = #tpu.dot_dimension_numbers<[1], [0], [0], [1], [0, 0, 1, 1], [], []>} : vector<8x512xf32>, vector<512x32xf32>, vector<8x32xf32> -> vector<8x32xf32>
    %360 = arith.addf %345, %359 : vector<8x32xf32>
    %c0_344 = arith.constant 0 : index
    %c0_345 = arith.constant 0 : index
    %c1536 = arith.constant 1536 : index
    %361 = vector.load %arg25[%c0_344, %c0_345, %c1536] : memref<1x32x2048xbf16, #tpu.memory_space<vmem>>, vector<1x32x512xbf16>
    %362 = vector.shape_cast %361 : vector<1x32x512xbf16> to vector<32x512xbf16>
    %363 = arith.extf %362 : vector<32x512xbf16> to vector<32x512xf32>
    %c0_346 = arith.constant 0 : index
    %c0_347 = arith.constant 0 : index
    %c1536_348 = arith.constant 1536 : index
    %364 = vector.load %arg26[%c0_346, %c0_347, %c1536_348] : memref<1x1x2048xf32, #tpu.memory_space<vmem>>, vector<1x1x512xf32>
    %365 = vector.shape_cast %364 : vector<1x1x512xf32> to vector<1x512xf32>
    %c0_349 = arith.constant 0 : index
    %c1536_350 = arith.constant 1536 : index
    %c0_351 = arith.constant 0 : index
    %366 = vector.load %arg27[%c0_349, %c1536_350, %c0_351] : memref<1x2048x32xbf16, #tpu.memory_space<vmem>>, vector<1x512x32xbf16>
    %367 = vector.shape_cast %366 : vector<1x512x32xbf16> to vector<512x32xbf16>
    %368 = arith.extf %367 : vector<512x32xbf16> to vector<512x32xf32>
    %cst_352 = arith.constant dense<0.000000e+00> : vector<8x512xf32>
    %369 = tpu.matmul %311, %363, %cst_352 {dimension_numbers = #tpu.dot_dimension_numbers<[1], [0], [0], [1], [0, 0, 1, 1], [], []>} : vector<8x32xf32>, vector<32x512xf32>, vector<8x512xf32> -> vector<8x512xf32>
    %370 = vector.broadcast %365 : vector<1x512xf32> to vector<8x512xf32>
    %371 = arith.addf %369, %370 : vector<8x512xf32>
    %cst_353 = arith.constant 0.000000e+00 : f32
    %372 = vector.broadcast %cst_353 : f32 to vector<8x512xf32>
    %373 = arith.maximumf %371, %372 : vector<8x512xf32>
    %cst_354 = arith.constant dense<0.000000e+00> : vector<8x32xf32>
    %374 = tpu.matmul %373, %368, %cst_354 {dimension_numbers = #tpu.dot_dimension_numbers<[1], [0], [0], [1], [0, 0, 1, 1], [], []>} : vector<8x512xf32>, vector<512x32xf32>, vector<8x32xf32> -> vector<8x32xf32>
    %375 = arith.addf %360, %374 : vector<8x32xf32>
    %cst_355 = arith.constant dense<0.000000e+00> : vector<8xf32>
    %376 = vector.multi_reduction <add>, %375, %cst_355 [1] : vector<8x32xf32> to vector<8xf32>
    %377 = vector.shape_cast %376 : vector<8xf32> to vector<8x1xf32>
    %cst_356 = arith.constant 3.200000e+01 : f32
    %378 = vector.broadcast %cst_356 : f32 to vector<8x1xf32>
    %379 = arith.divf %377, %378 : vector<8x1xf32>
    %380 = vector.broadcast %379 : vector<8x1xf32> to vector<8x32xf32>
    %381 = arith.subf %375, %380 : vector<8x32xf32>
    %382 = arith.mulf %381, %381 : vector<8x32xf32>
    %cst_357 = arith.constant dense<0.000000e+00> : vector<8xf32>
    %383 = vector.multi_reduction <add>, %382, %cst_357 [1] : vector<8x32xf32> to vector<8xf32>
    %384 = vector.shape_cast %383 : vector<8xf32> to vector<8x1xf32>
    %cst_358 = arith.constant 3.200000e+01 : f32
    %385 = vector.broadcast %cst_358 : f32 to vector<8x1xf32>
    %386 = arith.divf %384, %385 : vector<8x1xf32>
    %cst_359 = arith.constant 9.99999974E-6 : f32
    %387 = vector.broadcast %cst_359 : f32 to vector<8x1xf32>
    %388 = arith.addf %386, %387 : vector<8x1xf32>
    %389 = math.rsqrt %388 : vector<8x1xf32>
    %390 = vector.broadcast %389 : vector<8x1xf32> to vector<8x32xf32>
    %391 = arith.mulf %381, %390 : vector<8x32xf32>
    %c0_360 = arith.constant 0 : index
    %c0_361 = arith.constant 0 : index
    %c0_362 = arith.constant 0 : index
    %392 = vector.load %arg33[%c0_360, %c0_361, %c0_362] : memref<1x1x32xf32, #tpu.memory_space<vmem>>, vector<1x1x32xf32>
    %393 = vector.shape_cast %392 : vector<1x1x32xf32> to vector<1x32xf32>
    %394 = vector.broadcast %393 : vector<1x32xf32> to vector<8x32xf32>
    %395 = arith.mulf %391, %394 : vector<8x32xf32>
    %c0_363 = arith.constant 0 : index
    %c0_364 = arith.constant 0 : index
    %c0_365 = arith.constant 0 : index
    %396 = vector.load %arg34[%c0_363, %c0_364, %c0_365] : memref<1x1x32xf32, #tpu.memory_space<vmem>>, vector<1x1x32xf32>
    %397 = vector.shape_cast %396 : vector<1x1x32xf32> to vector<1x32xf32>
    %398 = vector.broadcast %397 : vector<1x32xf32> to vector<8x32xf32>
    %399 = arith.addf %395, %398 : vector<8x32xf32>
    %c0_366 = arith.constant 0 : index
    %c0_367 = arith.constant 0 : index
    %400 = vector.load %arg36[%c0_366, %c0_367] : memref<8x32xf32, #tpu.memory_space<vmem>>, vector<8x32xf32>
    tpu.vector_store %arg36[%c0_366, %c0_367], %399 {strides = array<i32>} : memref<8x32xf32, #tpu.memory_space<vmem>>, vector<8x32xf32>,
    %c2_i32 = arith.constant 2 : i32
    %401 = arith.cmpi eq, %arg1, %c2_i32 : i32
    %402 = arith.extui %401 : i1 to i32
    %c0_i32_368 = arith.constant 0 : i32
    %403 = arith.cmpi ne, %402, %c0_i32_368 : i32
    scf.if %403 {
      %c0_369 = arith.constant 0 : index
      %c0_370 = arith.constant 0 : index
      %404 = vector.load %arg7[%c0_369, %c0_370] : memref<32x16xf32, #tpu.memory_space<vmem>>, vector<32x16xf32>
      %cst_371 = arith.constant dense<0.000000e+00> : vector<8x16xf32>
      %405 = tpu.matmul %399, %404, %cst_371 {dimension_numbers = #tpu.dot_dimension_numbers<[1], [0], [0], [1], [0, 0, 1, 1], [], []>} : vector<8x32xf32>, vector<32x16xf32>, vector<8x16xf32> -> vector<8x16xf32>
      %c0_372 = arith.constant 0 : index
      %c0_373 = arith.constant 0 : index
      %406 = vector.load %arg8[%c0_372, %c0_373] : memref<1x16xf32, #tpu.memory_space<vmem>>, vector<1x16xf32>
      %407 = vector.broadcast %406 : vector<1x16xf32> to vector<8x16xf32>
      %408 = arith.addf %405, %407 : vector<8x16xf32>
      %c0_374 = arith.constant 0 : index
      %c0_375 = arith.constant 0 : index
      %c0_376 = arith.constant 0 : index
      %409 = vector.load %arg35[%c0_374, %c0_375, %c0_376] : memref<1x8x16xf32, #tpu.memory_space<vmem>>, vector<1x8x16xf32>
      %410 = vector.shape_cast %409 : vector<1x8x16xf32> to vector<8x16xf32>
      %411 = vector.shape_cast %408 : vector<8x16xf32> to vector<1x8x16xf32>
      tpu.vector_store %arg35[%c0_374, %c0_375, %c0_376], %411 {strides = array<i32>} : memref<1x8x16xf32, #tpu.memory_space<vmem>>, vector<1x8x16xf32>,
    } else {
    }
    return
  }
  func.func @transform_0(%arg0: i32, %arg1: i32) -> (i32, i32, i32) {
    %c0_i32 = arith.constant 0 : i32
    %c0_i32_0 = arith.constant 0 : i32
    %c0_i32_1 = arith.constant 0 : i32
    return %arg0, %c0_i32, %c0_i32_0 : i32, i32, i32
  }
  func.func @transform_1(%arg0: i32, %arg1: i32) -> (i32, i32) {
    %c0_i32 = arith.constant 0 : i32
    %c0_i32_0 = arith.constant 0 : i32
    %c0_i32_1 = arith.constant 0 : i32
    return %c0_i32, %c0_i32_0 : i32, i32
  }
  func.func @transform_2(%arg0: i32, %arg1: i32) -> (i32, i32, i32) {
    %c0_i32 = arith.constant 0 : i32
    %c0_i32_0 = arith.constant 0 : i32
    %c0_i32_1 = arith.constant 0 : i32
    return %arg0, %c0_i32, %c0_i32_0 : i32, i32, i32
  }
  func.func @transform_3(%arg0: i32, %arg1: i32) -> (i32, i32) {
    %c0_i32 = arith.constant 0 : i32
    %c0_i32_0 = arith.constant 0 : i32
    %c0_i32_1 = arith.constant 0 : i32
    return %c0_i32, %c0_i32_0 : i32, i32
  }
  func.func @transform_4(%arg0: i32, %arg1: i32) -> (i32, i32) {
    %c0_i32 = arith.constant 0 : i32
    %c0_i32_0 = arith.constant 0 : i32
    %c0_i32_1 = arith.constant 0 : i32
    return %c0_i32, %c0_i32_0 : i32, i32
  }
  func.func @transform_5(%arg0: i32, %arg1: i32) -> (i32, i32) {
    %c0_i32 = arith.constant 0 : i32
    %c0_i32_0 = arith.constant 0 : i32
    %c0_i32_1 = arith.constant 0 : i32
    return %c0_i32, %c0_i32_0 : i32, i32
  }
  func.func @transform_6(%arg0: i32, %arg1: i32) -> (i32, i32) {
    %c0_i32 = arith.constant 0 : i32
    %c0_i32_0 = arith.constant 0 : i32
    %c0_i32_1 = arith.constant 0 : i32
    return %c0_i32, %c0_i32_0 : i32, i32
  }
  func.func @transform_7(%arg0: i32, %arg1: i32) -> (i32, i32, i32, i32) {
    %c0_i32 = arith.constant 0 : i32
    %c0_i32_0 = arith.constant 0 : i32
    %c0_i32_1 = arith.constant 0 : i32
    %c0_i32_2 = arith.constant 0 : i32
    return %arg1, %c0_i32, %c0_i32_0, %c0_i32_1 : i32, i32, i32, i32
  }
  func.func @transform_8(%arg0: i32, %arg1: i32) -> (i32, i32, i32, i32) {
    %c0_i32 = arith.constant 0 : i32
    %c0_i32_0 = arith.constant 0 : i32
    %c0_i32_1 = arith.constant 0 : i32
    %c0_i32_2 = arith.constant 0 : i32
    return %arg1, %c0_i32, %c0_i32_0, %c0_i32_1 : i32, i32, i32, i32
  }
  func.func @transform_9(%arg0: i32, %arg1: i32) -> (i32, i32, i32, i32) {
    %c0_i32 = arith.constant 0 : i32
    %c0_i32_0 = arith.constant 0 : i32
    %c0_i32_1 = arith.constant 0 : i32
    %c0_i32_2 = arith.constant 0 : i32
    return %arg1, %c0_i32, %c0_i32_0, %c0_i32_1 : i32, i32, i32, i32
  }
  func.func @transform_10(%arg0: i32, %arg1: i32) -> (i32, i32, i32, i32) {
    %c0_i32 = arith.constant 0 : i32
    %c0_i32_0 = arith.constant 0 : i32
    %c0_i32_1 = arith.constant 0 : i32
    %c0_i32_2 = arith.constant 0 : i32
    return %arg1, %c0_i32, %c0_i32_0, %c0_i32_1 : i32, i32, i32, i32
  }
  func.func @transform_11(%arg0: i32, %arg1: i32) -> (i32, i32, i32, i32) {
    %c0_i32 = arith.constant 0 : i32
    %c0_i32_0 = arith.constant 0 : i32
    %c0_i32_1 = arith.constant 0 : i32
    %c0_i32_2 = arith.constant 0 : i32
    return %arg1, %c0_i32, %c0_i32_0, %c0_i32_1 : i32, i32, i32, i32
  }
  func.func @transform_12(%arg0: i32, %arg1: i32) -> (i32, i32, i32, i32) {
    %c0_i32 = arith.constant 0 : i32
    %c0_i32_0 = arith.constant 0 : i32
    %c0_i32_1 = arith.constant 0 : i32
    %c0_i32_2 = arith.constant 0 : i32
    return %arg1, %c0_i32, %c0_i32_0, %c0_i32_1 : i32, i32, i32, i32
  }
  func.func @transform_13(%arg0: i32, %arg1: i32) -> (i32, i32, i32, i32) {
    %c0_i32 = arith.constant 0 : i32
    %c0_i32_0 = arith.constant 0 : i32
    %c0_i32_1 = arith.constant 0 : i32
    %c0_i32_2 = arith.constant 0 : i32
    return %arg1, %c0_i32, %c0_i32_0, %c0_i32_1 : i32, i32, i32, i32
  }
  func.func @transform_14(%arg0: i32, %arg1: i32) -> (i32, i32, i32) {
    %c0_i32 = arith.constant 0 : i32
    %c0_i32_0 = arith.constant 0 : i32
    %c0_i32_1 = arith.constant 0 : i32
    return %arg1, %c0_i32, %c0_i32_0 : i32, i32, i32
  }
  func.func @transform_15(%arg0: i32, %arg1: i32) -> (i32, i32, i32, i32) {
    %c0_i32 = arith.constant 0 : i32
    %c0_i32_0 = arith.constant 0 : i32
    %c0_i32_1 = arith.constant 0 : i32
    %c0_i32_2 = arith.constant 0 : i32
    return %arg1, %c0_i32, %c0_i32_0, %c0_i32_1 : i32, i32, i32, i32
  }
  func.func @transform_16(%arg0: i32, %arg1: i32) -> (i32, i32, i32, i32) {
    %c0_i32 = arith.constant 0 : i32
    %c0_i32_0 = arith.constant 0 : i32
    %c0_i32_1 = arith.constant 0 : i32
    %c0_i32_2 = arith.constant 0 : i32
    return %arg1, %c0_i32, %c0_i32_0, %c0_i32_1 : i32, i32, i32, i32
  }
  func.func @transform_17(%arg0: i32, %arg1: i32) -> (i32, i32, i32, i32) {
    %c0_i32 = arith.constant 0 : i32
    %c0_i32_0 = arith.constant 0 : i32
    %c0_i32_1 = arith.constant 0 : i32
    %c0_i32_2 = arith.constant 0 : i32
    return %arg1, %c0_i32, %c0_i32_0, %c0_i32_1 : i32, i32, i32, i32
  }
  func.func @transform_18(%arg0: i32, %arg1: i32) -> (i32, i32, i32, i32) {
    %c0_i32 = arith.constant 0 : i32
    %c0_i32_0 = arith.constant 0 : i32
    %c0_i32_1 = arith.constant 0 : i32
    %c0_i32_2 = arith.constant 0 : i32
    return %arg1, %c0_i32, %c0_i32_0, %c0_i32_1 : i32, i32, i32, i32
  }
  func.func @transform_19(%arg0: i32, %arg1: i32) -> (i32, i32, i32, i32) {
    %c0_i32 = arith.constant 0 : i32
    %c0_i32_0 = arith.constant 0 : i32
    %c0_i32_1 = arith.constant 0 : i32
    %c0_i32_2 = arith.constant 0 : i32
    return %arg1, %c0_i32, %c0_i32_0, %c0_i32_1 : i32, i32, i32, i32
  }
  func.func @transform_20(%arg0: i32, %arg1: i32) -> (i32, i32, i32, i32) {
    %c0_i32 = arith.constant 0 : i32
    %c0_i32_0 = arith.constant 0 : i32
    %c0_i32_1 = arith.constant 0 : i32
    %c0_i32_2 = arith.constant 0 : i32
    return %arg1, %c0_i32, %c0_i32_0, %c0_i32_1 : i32, i32, i32, i32
  }
  func.func @transform_21(%arg0: i32, %arg1: i32) -> (i32, i32, i32, i32) {
    %c0_i32 = arith.constant 0 : i32
    %c0_i32_0 = arith.constant 0 : i32
    %c0_i32_1 = arith.constant 0 : i32
    %c0_i32_2 = arith.constant 0 : i32
    return %arg1, %c0_i32, %c0_i32_0, %c0_i32_1 : i32, i32, i32, i32
  }
  func.func @transform_22(%arg0: i32, %arg1: i32) -> (i32, i32, i32) {
    %c0_i32 = arith.constant 0 : i32
    %c0_i32_0 = arith.constant 0 : i32
    %c0_i32_1 = arith.constant 0 : i32
    return %arg1, %c0_i32, %c0_i32_0 : i32, i32, i32
  }
  func.func @transform_23(%arg0: i32, %arg1: i32) -> (i32, i32, i32) {
    %c0_i32 = arith.constant 0 : i32
    %c0_i32_0 = arith.constant 0 : i32
    %c0_i32_1 = arith.constant 0 : i32
    return %arg1, %c0_i32, %c0_i32_0 : i32, i32, i32
  }
  func.func @transform_24(%arg0: i32, %arg1: i32) -> (i32, i32, i32) {
    %c0_i32 = arith.constant 0 : i32
    %c0_i32_0 = arith.constant 0 : i32
    %c0_i32_1 = arith.constant 0 : i32
    return %arg1, %c0_i32, %c0_i32_0 : i32, i32, i32
  }
  func.func @transform_25(%arg0: i32, %arg1: i32) -> (i32, i32, i32) {
    %c0_i32 = arith.constant 0 : i32
    %c0_i32_0 = arith.constant 0 : i32
    %c0_i32_1 = arith.constant 0 : i32
    return %arg1, %c0_i32, %c0_i32_0 : i32, i32, i32
  }
  func.func @transform_26(%arg0: i32, %arg1: i32) -> (i32, i32, i32) {
    %c0_i32 = arith.constant 0 : i32
    %c0_i32_0 = arith.constant 0 : i32
    %c0_i32_1 = arith.constant 0 : i32
    return %arg1, %c0_i32, %c0_i32_0 : i32, i32, i32
  }
  func.func @transform_27(%arg0: i32, %arg1: i32) -> (i32, i32, i32) {
    %c0_i32 = arith.constant 0 : i32
    %c0_i32_0 = arith.constant 0 : i32
    %c0_i32_1 = arith.constant 0 : i32
    return %arg1, %c0_i32, %c0_i32_0 : i32, i32, i32
  }
  func.func @transform_28(%arg0: i32, %arg1: i32) -> (i32, i32, i32) {
    %c0_i32 = arith.constant 0 : i32
    %c0_i32_0 = arith.constant 0 : i32
    %c0_i32_1 = arith.constant 0 : i32
    return %arg1, %c0_i32, %c0_i32_0 : i32, i32, i32
  }
  func.func @transform_29(%arg0: i32, %arg1: i32) -> (i32, i32, i32) {
    %c0_i32 = arith.constant 0 : i32
    %c0_i32_0 = arith.constant 0 : i32
    %c0_i32_1 = arith.constant 0 : i32
    return %arg1, %c0_i32, %c0_i32_0 : i32, i32, i32
  }
  func.func @transform_30(%arg0: i32, %arg1: i32) -> (i32, i32, i32) {
    %c0_i32 = arith.constant 0 : i32
    %c0_i32_0 = arith.constant 0 : i32
    %c0_i32_1 = arith.constant 0 : i32
    return %arg1, %c0_i32, %c0_i32_0 : i32, i32, i32
  }
  func.func @transform_31(%arg0: i32, %arg1: i32) -> (i32, i32, i32) {
    %c0_i32 = arith.constant 0 : i32
    %c0_i32_0 = arith.constant 0 : i32
    %c0_i32_1 = arith.constant 0 : i32
    return %arg1, %c0_i32, %c0_i32_0 : i32, i32, i32
  }
  func.func @transform_32(%arg0: i32, %arg1: i32) -> (i32, i32, i32) {
    %c0_i32 = arith.constant 0 : i32
    %c0_i32_0 = arith.constant 0 : i32
    %c0_i32_1 = arith.constant 0 : i32
    return %arg1, %c0_i32, %c0_i32_0 : i32, i32, i32
  }
  func.func @transform_33(%arg0: i32, %arg1: i32) -> (i32, i32, i32) {
    %c0_i32 = arith.constant 0 : i32
    %c0_i32_0 = arith.constant 0 : i32
    %c0_i32_1 = arith.constant 0 : i32
    return %arg0, %c0_i32, %c0_i32_0 : i32, i32, i32
  }
}

</mosaic_0001>

<bundles_post_ra>
// kernel: transformer_decoder_forward.1
= control target key start
LH: loop header
LB: loop body
LE: loop exit
PB: predicated region body
PF: predicated region fallthrough
CT: control target
= control target key end

     0   :  { %s5957_s6 = smov 1   ;;  %s5958_s10 = smov 2   ;;  %s6893_s0 = inlined_call_operand.smem [shape: u32[34], index: -1, kind: input, shape index: {}] }
   0x1   :  { %s5999_s5 = sld [smem:[%s6893_s0]]   ;;  %s5959_s14 = smov 3  }
   0x2   :  { %s6004_s9 = sld [smem:[%s6893_s0 + %s5957_s6]]   ;;  %s5960_s18 = smov 4  }
   0x3   :  { %s6009_s13 = sld [smem:[%s6893_s0 + %s5958_s10]]   ;;  %s5961_s22 = smov 5  }
   0x4   :  { %s6014_s17 = sld [smem:[%s6893_s0 + %s5959_s14]]   ;;  %s5962_s26 = smov 6  }
   0x5   :  { %s6019_s21 = sld [smem:[%s6893_s0 + %s5960_s18]]   ;;  %s5963_s30 = smov 7  }
   0x6   :  { %s6024_s25 = sld [smem:[%s6893_s0 + %s5961_s22]]   ;;  %s5964_s4 = smov 8  }
   0x7   :  { %6924 = sst [smem:[#allocation6_spill]] %s5999_s5  ;;  %s5965_s10 = smov 9  }
   0x8   :  { %6925 = sst [smem:[#allocation7_spill]] %s6004_s9  ;;  %s5966_s15 = smov 10  }
   0x9   :  { %6926 = sst [smem:[#allocation8_spill]] %s6009_s13  ;;  %s5967_s20 = smov 11  }
   0xa   :  { %6927 = sst [smem:[#allocation9_spill]] %s6014_s17  ;;  %s5969_s1 = smov 13  }
   0xb   :  { %6928 = sst [smem:[#allocation10_spill]] %s6019_s21  ;;  %s5970_s7 = smov 14  }
   0xc   :  { %6929 = sst [smem:[#allocation11_spill]] %s6024_s25  ;;  %s5972_s22 = smov 16  }
   0xd   :  { %s6029_s29 = sld [smem:[%s6893_s0 + %s5962_s26]]   ;;  %s5968_s26 = smov 12  }
   0xe   :  { %s6034_s3 = sld [smem:[%s6893_s0 + %s5963_s30]]   ;;  %s5973_s28 = smov 17  }
   0xf   :  { %s6039_s8 = sld [smem:[%s6893_s0 + %s5964_s4]]  }
  0x10   :  { %s6044_s14 = sld [smem:[%s6893_s0 + %s5965_s10]]  }
  0x11   :  { %s6049_s19 = sld [smem:[%s6893_s0 + %s5966_s15]]   ;;  %s5971_s15 = smov 15  }
  0x12   :  { %s6054_s24 = sld [smem:[%s6893_s0 + %s5967_s20]]  }
  0x13   :  { %6930 = sst [smem:[#allocation12_spill]] %s6029_s29 }
  0x14   :  { %6931 = sst [smem:[#allocation13_spill]] %s6034_s3 }
  0x15   :  { %6932 = sst [smem:[#allocation14_spill]] %s6039_s8 }
  0x16   :  { %6933 = sst [smem:[#allocation15_spill]] %s6044_s14 }
  0x17   :  { %6934 = sst [smem:[#allocation16_spill]] %s6049_s19 }
  0x18   :  { %6935 = sst [smem:[#allocation17_spill]] %s6054_s24 }
  0x19   :  { %s6059_s30 = sld [smem:[%s6893_s0 + %s5968_s26]]  }
  0x1a   :  { %s6064_s6 = sld [smem:[%s6893_s0 + %s5969_s1]]  }
  0x1b   :  { %s6069_s12 = sld [smem:[%s6893_s0 + %s5970_s7]]   ;;  %s5974_s7 = smov 18  }
  0x1c   :  { %s6074_s20 = sld [smem:[%s6893_s0 + %s5971_s15]]   ;;  %s5975_s15 = smov 19  }
  0x1d   :  { %s6079_s27 = sld [smem:[%s6893_s0 + %s5972_s22]]   ;;  %s5976_s22 = smov 20  }
  0x1e   :  { %s6084_s4 = sld [smem:[%s6893_s0 + %s5973_s28]]   ;;  %s5977_s28 = smov 21  }
  0x1f   :  { %6936 = sst [smem:[#allocation18_spill]] %s6059_s30 }
  0x20   :  { %6937 = sst [smem:[#allocation19_spill]] %s6064_s6 }
  0x21   :  { %6938 = sst [smem:[#allocation20_spill]] %s6069_s12 }
  0x22   :  { %6939 = sst [smem:[#allocation21_spill]] %s6074_s20 }
  0x23   :  { %6940 = sst [smem:[#allocation22_spill]] %s6079_s27 }
  0x24   :  { %6941 = sst [smem:[#allocation23_spill]] %s6084_s4 }
  0x25   :  { %s6089_s29 = sld [smem:[%s6893_s0 + %s5974_s7]]   ;;  %s5978_s7 = smov 22  }
  0x26   :  { %s6094_s25 = sld [smem:[%s6893_s0 + %s5975_s15]]   ;;  %s5979_s15 = smov 23  }
  0x27   :  { %s6099_s9 = sld [smem:[%s6893_s0 + %s5976_s22]]   ;;  %s5980_s22 = smov 24  }
  0x28   :  { %s6104_s21 = sld [smem:[%s6893_s0 + %s5977_s28]]   ;;  %s5981_s28 = smov 25  }
  0x29   :  { %s6109_s17 = sld [smem:[%s6893_s0 + %s5978_s7]]   ;;  %s5982_s7 = smov 26  }
  0x2b   :  { %6942 = sst [smem:[#allocation24_spill]] %s6089_s29 }
  0x2c   :  { %6943 = sst [smem:[#allocation25_spill]] %s6094_s25 }
  0x2d   :  { %6944 = sst [smem:[#allocation26_spill]] %s6099_s9 }
  0x2e   :  { %6945 = sst [smem:[#allocation27_spill]] %s6104_s21 }
  0x2f   :  { %6946 = sst [smem:[#allocation28_spill]] %s6109_s17 }
  0x30   :  { %s6114_s25 = sld [smem:[%s6893_s0 + %s5979_s15]]   ;;  %s5983_s15 = smov 27  }
  0x31   :  { %s6119_s9 = sld [smem:[%s6893_s0 + %s5980_s22]]   ;;  %s5984_s22 = smov 28  }
  0x32   :  { %s6124_s21 = sld [smem:[%s6893_s0 + %s5981_s28]]   ;;  %s5985_s28 = smov 29  }
  0x33   :  { %s6129_s17 = sld [smem:[%s6893_s0 + %s5982_s7]]   ;;  %s5986_s7 = smov 30  }
  0x36   :  { %6947 = sst [smem:[#allocation29_spill]] %s6114_s25 }
  0x37   :  { %6948 = sst [smem:[#allocation30_spill]] %s6119_s9 }
  0x38   :  { %6949 = sst [smem:[#allocation31_spill]] %s6124_s21 }
  0x39   :  { %6950 = sst [smem:[#allocation32_spill]] %s6129_s17 }
  0x3a   :  { %s6134_s25 = sld [smem:[%s6893_s0 + %s5983_s15]]   ;;  %s5987_s15 = smov 31  }
  0x3b   :  { %s6139_s9 = sld [smem:[%s6893_s0 + %s5984_s22]]   ;;  %s5988_s22 = smov 32  }
  0x3c   :  { %s6144_s21 = sld [smem:[%s6893_s0 + %s5985_s28]]   ;;  %s5989_s28 = smov 33  }
  0x3d   :  { %s6149_s17 = sld [smem:[%s6893_s0 + %s5986_s7]]  }
  0x40   :  { %6951 = sst [smem:[#allocation33_spill]] %s6134_s25 }
  0x41   :  { %6952 = sst [smem:[#allocation34_spill]] %s6139_s9 }
  0x42   :  { %6953 = sst [smem:[#allocation35_spill]] %s6144_s21 }
  0x43   :  { %s6154_s25 = sld [smem:[%s6893_s0 + %s5987_s15]]  }
  0x44   :  { %s6159_s9 = sld [smem:[%s6893_s0 + %s5988_s22]]  }
  0x45   :  { %s6164_s21 = sld [smem:[%s6893_s0 + %s5989_s28]]  }
  0x4a   :  { %6954 = sst [smem:[#allocation36_spill]] %s6159_s9 }
  0x4b   :  { %6955 = sst [smem:[#allocation37_spill]] %s6164_s21 }
  0x4c   :  { %72 = vsyncpa [#allocation4], 0 }
  0x4d   :  { %74 = vsyncpa [#allocation4 + $0x1], 0  ;;  %s6166_s7 = smov 0   ;;  %s6168_s10 = smov 0  }
  0x4e   :  { %s6170_s11 = smov 0   ;;  %s6172_s15 = smov 0  }
  0x4f   :  { %s6174_s16 = smov 0   ;;  %s6176_s18 = smov 0  }
  0x50   :  { %s6178_s22 = smov 0   ;;  %s6180_s23 = smov 0  }
  0x51 LB: > { %6956 = sst [smem:[#allocation38_spill]] %s5927_s7  ;;  %s4821_s0 = sadd.s32 4294967295, %s5955_s23   ;;  %s5955_s23 = sphi %s6180_s23, %s80_s23   ;;  %s5951_s22 = sphi %s6178_s22, %s7063_s22   ;;  %s5947_s18 = sphi %s6176_s18, %s7062_s18   ;;  %s5943_s16 = sphi %s6174_s16, %s7061_s16   ;;  %s5939_s15 = sphi %s6172_s15, %s7060_s15   ;;  %s5935_s11 = sphi %s6170_s11, %s7059_s11   ;;  %s5931_s10 = sphi %s6168_s10, %s7058_s10   ;;  %s5927_s7 = sphi %s6166_s7, %s7057_s7  }
  0x52   : > { %6957 = sst [smem:[#allocation39_spill]] %s5931_s10  ;;  %s4822_s26 = sadd.s32 4294967294, %s5955_s23  }
  0x53   : > { %6958 = sst [smem:[#allocation40_spill]] %s5935_s11  ;;  %s89_s28 = sadd.s32 1, %s5947_s18 }
  0x54   : > { %6959 = sst [smem:[#allocation41_spill]] %s5939_s15  ;;  %p90_p0 = scmp.ge.s32.totalorder %s89_s28, 3 }
  0x55   : > { %6960 = sst [smem:[#allocation42_spill]] %s5943_s16  ;;  %s92_s1 = sadd.s32 1, %s5951_s22 }
  0x56   : > { %6961 = sst [smem:[#allocation43_spill]] %s5947_s18  ;;  %p942_p1 = scmp.ne.s32.totalorder %s5935_s11, %s5931_s10 }
  0x57   : > { %6962 = sst [smem:[#allocation44_spill]] %s5951_s22  ;;  %p943_p2 = scmp.eq.s32.totalorder %s4821_s0, 5 }
  0x58   : > { %6963 = sst [smem:[#allocation45_spill]] %s5955_s23  ;;  %s7065_s28 = smov (%p90_p0, %s89_s28), 0 }
  0x59   : > { %6964 = sst [smem:[#allocation46_spill]] %s7065_s28  ;;  %s7067_s1 = smov (!%p90_p0, %s92_s1), %s5951_s22 }
  0x5a   : > { %p6215_p3 = por %p943_p2, %p942_p1  ;;  %p948_p4 = scmp.ne.s32.totalorder %s5931_s10, %s5927_s7 }
  0x5b   : > { %p94_p5 = scmp.ge.s32.totalorder %s7067_s1, 2  ;;  %p949_p6 = scmp.eq.s32.totalorder %s4822_s26, 5 }
  0x5c   : > { %s6965_s2 = scalar_select %p6215_p3, 1, 0 }
  0x5d   : > { %p4825_p7 = scmp.ge.s32.totalorder %s5955_s23, 1  ;;  %p1179_p8 = scmp.lt.s32.totalorder %s5955_s23, 7 }
  0x5e   : > { %6966 = sst [smem:[#allocation47_spill]] %s6965_s2  ;;  %s7069_s1 = smov (%p94_p5, %s7067_s1), 0 }
  0x5f   : > { %6967 = sst [smem:[#allocation48_spill]] %s7069_s1  ;;  %p6225_p9 = por %p949_p6, %p948_p4 }
  0x60   : > { %p1180_p10 = pnand %p4825_p7, %p1179_p8  ;;  %s929_s0 = ssub.s32 %s5951_s22, %s7069_s1 }
  0x61   : > { %s6968_s18 = scalar_select %p6225_p9, 1, 0 }
  0x62   : > { %s932_s28 = sadd.s32 1, %s5935_s11  ;;  %p930_p11 = scmp.eq.s32.totalorder %s929_s0, 0 }
  0x63   : > { %6969 = sst [smem:[#allocation49_spill]] %s6968_s18  ;;  %1183 = sbr.rel (%p1180_p10) target bundleno = 3596 (0xe0c), region = 152 }
  0x64   : > { %s6233_s21 = scalar_select %p930_p11, %s5935_s11, %s932_s28  }
  0x66   : > { %6970 = sst [smem:[#allocation50_spill]] %s6233_s21 }
  0x68   : > { %s6971_s5 = sld [smem:[#allocation6_spill]]  ;;  %s6901_s26 = sand.u32 1, %s5931_s10  }
  0x69   : > { %s6972_s13 = sld [smem:[#allocation8_spill]]  ;;  %p1371_p12 = scmp.lt.s32.totalorder %s5943_s16, 1 }
  0x6a   : > { %s6973_s3 = sld [smem:[#allocation13_spill]]  ;;  %s6239_s28 = sshll.u32 %s6901_s26, 3 }
  0x6b   : > { %s6974_s8 = sld [smem:[#allocation14_spill]]  ;;  %p1379_p13 = scmp.lt.s32.totalorder %s5939_s15, 2 }
  0x6c   : > { %s6975_s14 = sld [smem:[#allocation15_spill]] }
  0x6d   : > { %s6976_s19 = sld [smem:[#allocation16_spill]] }
  0x6e   : > { %s6977_s24 = sld [smem:[#allocation17_spill]] }
  0x6f   : > { %s6978_s30 = sld [smem:[#allocation18_spill]] }
  0x70   : > { %6979 = sst [smem:[#allocation51_spill]] %s6239_s28 }
  0x71   : > { %s6981_s6 = sld [smem:[#allocation19_spill]] }
  0x72   : > { %s1372_s0 = scalar_select %p1371_p12, %s5943_s16, 1 }
  0x73   : > { %s6982_s20 = sld [smem:[#allocation21_spill]] }
  0x74   : > { %s6244_s1 = scalar_select %p1379_p13, %s5939_s15, 2 }
  0x75   : > { %s6983_s27 = sld [smem:[#allocation22_spill]]  ;;  %s4827_s22 = sshll.u32 %s1372_s0, 3 }
  0x76   : > { %s6984_s4 = sld [smem:[#allocation23_spill]]  ;;  %s6247_s21 = scalar_lea.vmem %s6971_s5, %s4827_s22 }
  0x77   : > { %6985 = sst [smem:[#allocation52_spill]] %s6247_s21  ;;  %s6250_s11 = scalar_lea.vmem %s6972_s13, %s4827_s22 }
  0x78   : > { %s6986_s29 = sld [smem:[#allocation24_spill]]  ;;  %s5032_s18 = sshll.u32 %s6244_s1, 7 }
  0x79   : > { %6987 = sst [smem:[#allocation53_spill]] %s6250_s11  ;;  %s4831_s23 = sshll.u32 %s6244_s1, 2 }
  0x7a   : > { %s6988_s26 = sld [smem:[#allocation25_spill]]  ;;  %s6255_s10 = scalar_lea.vmem %s6973_s3, %s5032_s18 }
  0x7b   : > { %s6989_s7 = sld [smem:[#allocation26_spill]]  ;;  %s6258_s15 = scalar_lea.vmem %s6974_s8, %s4831_s23 }
  0x7c   : > { %s6990_s2 = sld [smem:[#allocation27_spill]]  ;;  %s6261_s28 = scalar_lea.vmem %s6975_s14, %s5032_s18 }
  0x7d   : > { %6991 = sst [smem:[#allocation54_spill]] %s6255_s10  ;;  %s6264_s5 = scalar_lea.vmem %s6976_s19, %s4831_s23 }
  0x7e   : > { %s6992_s16 = sld [smem:[#allocation28_spill]]  ;;  %s6267_s22 = scalar_lea.vmem %s6977_s24, %s5032_s18 }
  0x7f   : > { %6993 = sst [smem:[#allocation55_spill]] %s6258_s15  ;;  %s6270_s11 = scalar_lea.vmem %s6978_s30, %s4831_s23 }
  0x80   : > { %6994 = sst [smem:[#allocation56_spill]] %s6261_s28  ;;  %s5035_s21 = sshll.u32 %s6244_s1, 5 }
  0x81   : > { %s6995_s0 = sld [smem:[#allocation29_spill]]  ;;  %s6276_s8 = scalar_lea.vmem %s6981_s6, %s5035_s21 }
  0x82   : > { %6996 = sst [smem:[#allocation57_spill]] %s6264_s5  ;;  %s6279_s15 = scalar_lea.vmem %s6982_s20, %s5032_s18 }
  0x83   : > { %6997 = sst [smem:[#allocation58_spill]] %s6267_s22  ;;  %s6282_s5 = scalar_lea.vmem %s6983_s27, %s4831_s23 }
  0x84   : > { %s6998_s13 = sld [smem:[#allocation30_spill]]  ;;  %s6285_s30 = scalar_lea.vmem %s6984_s4, %s5032_s18 }
  0x85   : > { %6999 = sst [smem:[#allocation59_spill]] %s6270_s11  ;;  %s6288_s11 = scalar_lea.vmem %s6986_s29, %s4831_s23 }
  0x86   : > { %s7000_s3 = sld [smem:[#allocation31_spill]]  ;;  %s6291_s10 = scalar_lea.vmem %s6988_s26, %s5032_s18 }
  0x87   : > { %s7001_s9 = sld [smem:[#allocation32_spill]]  ;;  %s6294_s20 = scalar_lea.vmem %s6989_s7, %s4831_s23 }
  0x88   : > { %7002 = sst [smem:[#allocation60_spill]] %s6276_s8  ;;  %s6297_s12 = scalar_lea.vmem %s6990_s2, %s5035_s21 }
  0x89   : > { %s7003_s14 = sld [smem:[#allocation33_spill]]  ;;  %s1448_s27 = scalar_lea.vmem %s6992_s16, %s6244_s1 }
  0x8a   : > { %7004 = sst [smem:[#allocation61_spill]] %s6279_s15  ;;  %s4853_s4 = sshll.u32 %s6244_s1, 4 }
  0x8b   : > { %s7005_s19 = sld [smem:[#allocation34_spill]]  ;;  %s5041_s29 = sshll.u32 %s6244_s1, 10 }
  0x8c   : > { %7006 = sst [smem:[#allocation62_spill]] %s6282_s5  ;;  %s5040_s5 = sshll.u32 %s6244_s1, 8 }
  0x8d   : > { %s7007_s24 = sld [smem:[#allocation35_spill]]  ;;  %s6303_s8 = scalar_lea.vmem %s6995_s0, %s5040_s5 }
  0x8e   : > { %7008 = sst [smem:[#allocation63_spill]] %s6285_s30  ;;  %s6307_s30 = scalar_lea.vmem %s6998_s13, %s4853_s4 }
  0x8f   : > { %7009 = sst [smem:[#allocation64_spill]] %s6288_s11  ;;  %s6311_s11 = scalar_lea.vmem %s7000_s3, %s5041_s29 }
  0x90   : > { %7010 = sst [smem:[#allocation65_spill]] %s6291_s10  ;;  %s1465_s22 = scalar_lea.vmem %s7001_s9, %s6244_s1 }
  0x91   : > { %s7011_s6 = sld [smem:[#allocation36_spill]]  ;;  %s1468_s18 = scalar_lea.vmem %s7003_s14, %s6244_s1 }
  0x92   : > { %7012 = sst [smem:[#allocation66_spill]] %s6294_s20  ;;  %s1471_s26 = scalar_lea.vmem %s7005_s19, %s6244_s1 }
  0x93   : > { %s7013_s15 = sld [smem:[#allocation51_spill]]  ;;  %s1474_s10 = scalar_lea.vmem %s7007_s24, %s6244_s1 }
  0x94   : > { %s1477_s28 = scalar_lea.vmem %s6149_s17, %s6244_s1  ;;  %s1480_s7 = scalar_lea.vmem %s6154_s25, %s6244_s1 }
  0x95   : > { %s7014_s21 = sld [smem:[#allocation41_spill]] }
  0x97   : > { %s1483_s23 = scalar_lea.vmem %s7011_s6, %s6244_s1 }
  0x99   : > { %s1370_s20 = scalar_lea.vmem [#allocation3], %s7013_s15 }
  0x9b   : > { %p4856_p0 = scmp.ne.s32.totalorder %s7014_s21, 0 }
  0x9c   : > { %s7015_s16 = sld [smem:[#allocation9_spill]] (!%p4856_p0) }
  0x9d   : > { %1487 = sbr.rel (%p4856_p0) target bundleno = 297 (0x129), region = 156  ;;  %s7017_s5 = sld [smem:[#allocation52_spill]] (!%p4856_p0) }
  0x9e   : > { %s7018_s0 = sld [smem:[#allocation10_spill]] (!%p4856_p0) }
  0x9f   : > { %s7019_s13 = sld [smem:[#allocation7_spill]] (!%p4856_p0) }
  0xa2   : > { %s7016_s2 = smov %s7015_s16  ;;  %v1490_v0 = vld [vmem:[%s7015_s16 + $0x8] sm:$0xff]  ;;  %vm1495_vm0 = vcmask 130048   ;;  %vm1521_vm1 = vcmask 261120  }
  0xa3   : > { %v1489_v1 = vld [vmem:[%s7016_s2] sm:$0xff]  ;;  %1513 = vmatpush.msra.mxu0 %v1490_v0 }
  0xa4   : > { %v1488_v2 = vld [vmem:[%s7017_s5] sm:$0xff] }
  0xa5   : > { %1514 = vmatpush.msra.mxu0 %v1489_v1  ;;  %v5786_v3 = vld [vmem:[%s7018_s0] ss:$0 sm:$0xff] }
  0xa6   : > { %4857 = vmatmul.msk.f32.vlgmr.msra.gmra.mxu0 %vm1495_vm0, %v1488_v2  ;;  %v1519_v5 = vld [vmem:[%s7019_s13] sm:$0xff] }
 0x123   : > { %v1516_v4 = vpop.f32.mrf.mxu0 }
 0x124   : > { %v1517_v6 = vadd.f32 %v5786_v3, %v1516_v4 }
 0x126   : > { %v1520_v7 = vadd.f32 %v1519_v5, %v1517_v6 }
 0x128   : > { %1522 = vst.msk [vmem:[#allocation2] sm:$0xff] %vm1521_vm1, %v1520_v7 }
 0x129 PF: > { %s7020_s9 = sld [smem:[#allocation54_spill]]  ;;  %vm1533_vm2 = vcmask 261120   ;;  %vm1883_vm3 = vcmask 64512  }
 0x12a   : > { %s7021_s29 = sld [smem:[#allocation56_spill]] }
 0x12b   : > { %s7022_s3 = sld [smem:[#allocation58_spill]] }
 0x12c   : > { %s7023_s14 = sld [smem:[#allocation57_spill]] }
 0x12d   : > { %s7024_s19 = sld [smem:[#allocation55_spill]] }
 0x12e   : > { %s7025_s24 = sld [smem:[#allocation59_spill]] }
 0x12f   : > { %v1528_v8 = vld [vmem:[%s7020_s9 + $0x18] sm:$0xff]  ;;  %v1527_v12 = vld [vmem:[%s7020_s9 + $0x10] sm:$0xff]  ;;  %v1526_v16 = vld [vmem:[%s7020_s9 + $0x8] sm:$0xff]  ;;  %s7026_s6 = sld [smem:[#allocation60_spill]] }
 0x130   : > { %v1560_v9 = vld [vmem:[%s7021_s29 + $0x18] sm:$0xff]  ;;  %1549 = vmatpush.msra.mxu0 %v1528_v8  ;;  %v1559_v13 = vld [vmem:[%s7021_s29 + $0x10] sm:$0xff]  ;;  %v1558_v17 = vld [vmem:[%s7021_s29 + $0x8] sm:$0xff]  ;;  %s7027_s4 = sld [smem:[#allocation20_spill]] }
 0x131   : > { %v1588_v10 = vld [vmem:[%s7022_s3 + $0x18] sm:$0xff]  ;;  %1577 = vmatpush.msra.mxu1 %v1560_v9  ;;  %v1587_v14 = vld [vmem:[%s7022_s3 + $0x10] sm:$0xff]  ;;  %v1586_v18 = vld [vmem:[%s7022_s3 + $0x8] sm:$0xff]  ;;  %s7029_s21 = sld [smem:[#allocation63_spill]] }
 0x132   : > { %v4864_v11 = vld [vmem:[%s7020_s9 + $0x38] sm:$0xff]  ;;  %1605 = vmatpush.msra.mxu2 %v1588_v10  ;;  %v4863_v15 = vld [vmem:[%s7020_s9 + $0x30] sm:$0xff]  ;;  %1550 = vmatpush.msra.mxu0 %v1527_v12  ;;  %v4862_v19 = vld [vmem:[%s7020_s9 + $0x28] sm:$0xff]  ;;  %s7030_s16 = sld [smem:[#allocation53_spill]] }
 0x133   : > { %1635 = vmatpush.msra.mxu3 %v4864_v11  ;;  %1578 = vmatpush.msra.mxu1 %v1559_v13  ;;  %v1525_v20 = vld [vmem:[%s7020_s9] sm:$0xff]  ;;  %v4870_v25 = vld [vmem:[%s7021_s29 + $0x38] sm:$0xff]  ;;  %v4869_v28 = vld [vmem:[%s7021_s29 + $0x30] sm:$0xff]  ;;  %s7031_s5 = sld [smem:[#allocation65_spill]] }
 0x134   : > { %1606 = vmatpush.msra.mxu2 %v1587_v14  ;;  %v1557_v21 = vld [vmem:[%s7021_s29] sm:$0xff]  ;;  %1551 = vmatpush.msra.mxu0 %v1526_v16  ;;  %v4882_v26 = vld [vmem:[%s7020_s9 + $0x58] sm:$0xff]  ;;  %v4881_v29 = vld [vmem:[%s7020_s9 + $0x50] sm:$0xff]  ;;  %s7032_s0 = sld [smem:[#allocation61_spill]] }
 0x135   : > { %1636 = vmatpush.msra.mxu3 %v4863_v15  ;;  %1579 = vmatpush.msra.mxu1 %v1558_v17  ;;  %v1585_v22 = vld [vmem:[%s7022_s3] sm:$0xff]  ;;  %v4888_v27 = vld [vmem:[%s7021_s29 + $0x58] sm:$0xff]  ;;  %v4887_v31 = vld [vmem:[%s7021_s29 + $0x50] sm:$0xff] }
 0x136   : > { %v4861_v23 = vld [vmem:[%s7020_s9 + $0x20] sm:$0xff]  ;;  %1607 = vmatpush.msra.mxu2 %v1586_v18  ;;  %1552 = vmatpush.msra.mxu0 %v1525_v20  ;;  %v4876_v30 = vld [vmem:[%s7022_s3 + $0x38] sm:$0xff]  ;;  %v4875_v32 = vld [vmem:[%s7022_s3 + $0x30] sm:$0xff]  ;;  %s7028_s15 = scalar_lea.vmem %s7027_s4, %s6244_s1 }
 0x137   : > { %1637 = vmatpush.msra.mxu3 %v4862_v19  ;;  %v6350_v24 = vld [vmem:[#allocation2] sm:$0xff]  ;;  %1580 = vmatpush.msra.mxu1 %v1557_v21  ;;  %v4868_v33 = vld [vmem:[%s7021_s29 + $0x28] sm:$0xff]  ;;  %v4906_v40 = vld [vmem:[%s7021_s29 + $0x78] sm:$0xff] }
 0x138   : > { %1608 = vmatpush.msra.mxu2 %v1585_v22  ;;  %4858 = vmatmul.msk.f32.vlgmr.msra.gmra.mxu0 %vm1533_vm2, %v6350_v24  ;;  %v4880_v34 = vld [vmem:[%s7020_s9 + $0x48] sm:$0xff]  ;;  %v4867_v37 = vld [vmem:[%s7021_s29 + $0x20] sm:$0xff]  ;;  %v4894_v42 = vld [vmem:[%s7022_s3 + $0x58] sm:$0xff] }
 0x139   : > { %1638 = vmatpush.msra.mxu3 %v4861_v23  ;;  %4859 = vmatmul.msk.f32.vlgmr.msra.gmra.mxu1 %vm1533_vm2, %v6350_v24  ;;  %v4886_v35 = vld [vmem:[%s7021_s29 + $0x48] sm:$0xff]  ;;  %v4879_v38 = vld [vmem:[%s7020_s9 + $0x40] sm:$0xff]  ;;  %v4905_v43 = vld [vmem:[%s7021_s29 + $0x70] sm:$0xff] }
 0x13a   : > { %4860 = vmatmul.msk.f32.vlgmr.msra.gmra.mxu2 %vm1533_vm2, %v6350_v24  ;;  %4866 = vmatmul.msk.f32.vlgmr.msra.gmra.mxu3 %vm1533_vm2, %v6350_v24  ;;  %v4874_v36 = vld [vmem:[%s7022_s3 + $0x28] sm:$0xff]  ;;  %v4885_v39 = vld [vmem:[%s7021_s29 + $0x40] sm:$0xff]  ;;  %v4900_v44 = vld [vmem:[%s7020_s9 + $0x78] sm:$0xff] }
 0x13b   : > { %1665 = vmatpush.msrb.mxu0 %v4870_v25  ;;  %1725 = vmatpush.msrb.mxu2 %v4882_v26  ;;  %v4873_v41 = vld [vmem:[%s7022_s3 + $0x20] sm:$0xff]  ;;  %v4893_v45 = vld [vmem:[%s7022_s3 + $0x50] sm:$0xff]  ;;  %v4904_v46 = vld [vmem:[%s7021_s29 + $0x68] sm:$0xff] }
 0x13c   : > { %1755 = vmatpush.msrb.mxu3 %v4888_v27  ;;  %1695 = vmatpush.msrb.mxu1 %v4876_v30  ;;  %v4899_v47 = vld [vmem:[%s7020_s9 + $0x70] sm:$0xff]  ;;  %v4892_v48 = vld [vmem:[%s7022_s3 + $0x48] sm:$0xff]  ;;  %v4903_v49 = vld [vmem:[%s7021_s29 + $0x60] sm:$0xff]  ;;  %s7035_s29 = sld [smem:[#allocation64_spill]] }
 0x13d   : > { %1666 = vmatpush.msrb.mxu0 %v4869_v28  ;;  %1726 = vmatpush.msrb.mxu2 %v4881_v29  ;;  %v4898_v50 = vld [vmem:[%s7020_s9 + $0x68] sm:$0xff]  ;;  %v4891_v51 = vld [vmem:[%s7022_s3 + $0x40] sm:$0xff]  ;;  %v4912_v53 = vld [vmem:[%s7022_s3 + $0x78] sm:$0xff] }
 0x13e   : > { %1756 = vmatpush.msrb.mxu3 %v4887_v31  ;;  %1696 = vmatpush.msrb.mxu1 %v4875_v32  ;;  %v4897_v52 = vld [vmem:[%s7020_s9 + $0x60] sm:$0xff]  ;;  %v4911_v54 = vld [vmem:[%s7022_s3 + $0x70] sm:$0xff]  ;;  %v4910_v55 = vld [vmem:[%s7022_s3 + $0x68] sm:$0xff] }
 0x13f   : > { %1667 = vmatpush.msrb.mxu0 %v4868_v33  ;;  %1727 = vmatpush.msrb.mxu2 %v4880_v34  ;;  %v4909_v56 = vld [vmem:[%s7022_s3 + $0x60] sm:$0xff] }
 0x140   : > { %1757 = vmatpush.msrb.mxu3 %v4886_v35  ;;  %1697 = vmatpush.msrb.mxu1 %v4874_v36  ;;  %v5788_v57 = vld [vmem:[%s7023_s14] ss:$0 sm:$0xff]  ;;  %v5791_v0 = vld [vmem:[%s7023_s14 + $0x1] ss:$0 sm:$0xff]  ;;  %v5793_v9 = vld [vmem:[%s7023_s14 + $0x2] ss:$0 sm:$0xff] }
 0x141   : > { %1668 = vmatpush.msrb.mxu0 %v4867_v37  ;;  %1728 = vmatpush.msrb.mxu2 %v4879_v38  ;;  %v5787_v58 = vld [vmem:[%s7024_s19] ss:$0 sm:$0xff]  ;;  %v5790_v2 = vld [vmem:[%s7024_s19 + $0x1] ss:$0 sm:$0xff]  ;;  %v5792_v11 = vld [vmem:[%s7024_s19 + $0x2] ss:$0 sm:$0xff] }
 0x142   : > { %1758 = vmatpush.msrb.mxu3 %v4885_v39  ;;  %4872 = vmatmul.msk.f32.vlgmr.msrb.gmra.mxu0 %vm1533_vm2, %v6350_v24  ;;  %v5789_v63 = vld [vmem:[%s7025_s24] ss:$0 sm:$0xff]  ;;  %v5794_v8 = vld [vmem:[%s7025_s24 + $0x1] ss:$0 sm:$0xff]  ;;  %v5797_v15 = vld [vmem:[%s7025_s24 + $0x2] ss:$0 sm:$0xff] }
 0x143   : > { %4884 = vmatmul.msk.f32.vlgmr.msrb.gmra.mxu2 %vm1533_vm2, %v6350_v24  ;;  %4890 = vmatmul.msk.f32.vlgmr.msrb.gmra.mxu3 %vm1533_vm2, %v6350_v24  ;;  %v5795_v20 = vld [vmem:[%s7023_s14 + $0x3] ss:$0 sm:$0xff] }
 0x144   : > { %1845 = vmatpush.msra.mxu2 %v4906_v40  ;;  %1698 = vmatpush.msrb.mxu1 %v4873_v41  ;;  %v5796_v21 = vld [vmem:[%s7024_s19 + $0x3] ss:$0 sm:$0xff] }
 0x145   : > { %4878 = vmatmul.msk.f32.vlgmr.msrb.gmra.mxu1 %vm1533_vm2, %v6350_v24  ;;  %1785 = vmatpush.msra.mxu0 %v4894_v42  ;;  %v5798_v27 = vld [vmem:[%s7025_s24 + $0x3] ss:$0 sm:$0xff] }
 0x146   : > { %1846 = vmatpush.msra.mxu2 %v4905_v43  ;;  %1815 = vmatpush.msra.mxu1 %v4900_v44 }
 0x147   : > { %1786 = vmatpush.msra.mxu0 %v4893_v45  ;;  %1875 = vmatpush.msra.mxu3 %v4912_v53 }
 0x148   : > { %1847 = vmatpush.msra.mxu2 %v4904_v46  ;;  %1816 = vmatpush.msra.mxu1 %v4899_v47 }
 0x149   : > { %1787 = vmatpush.msra.mxu0 %v4892_v48  ;;  %1876 = vmatpush.msra.mxu3 %v4911_v54 }
 0x14a   : > { %1848 = vmatpush.msra.mxu2 %v4903_v49  ;;  %1817 = vmatpush.msra.mxu1 %v4898_v50 }
 0x14b   : > { %4908 = vmatmul.msk.f32.vlgmr.msra.gmra.mxu2 %vm1533_vm2, %v6350_v24  ;;  %1788 = vmatpush.msra.mxu0 %v4891_v51 }
 0x14c   : > { %1818 = vmatpush.msra.mxu1 %v4897_v52  ;;  %4896 = vmatmul.msk.f32.vlgmr.msra.gmra.mxu0 %vm1533_vm2, %v6350_v24 }
 0x14d   : > { %4902 = vmatmul.msk.f32.vlgmr.msra.gmra.mxu1 %vm1533_vm2, %v6350_v24  ;;  %1877 = vmatpush.msra.mxu3 %v4910_v55 }
 0x14f   : > { %1878 = vmatpush.msra.mxu3 %v4909_v56 }
 0x150   : > { %4914 = vmatmul.msk.f32.vlgmr.msra.gmra.mxu3 %vm1533_vm2, %v6350_v24 }
 0x1b5   : > { %v1554_v59 = vpop.f32.mrf.mxu0 }
 0x1b6   : > { %v1582_v60 = vpop.f32.mrf.mxu1  ;;  %v1555_v62 = vadd.f32 %v5787_v58, %v1554_v59 }
 0x1b7   : > { %v1583_v61 = vadd.f32 %v5788_v57, %v1582_v60 }
 0x1b9   : > { %4915 = vmatpush.xpose.msk.msrb.mxu0 %vm1883_vm3, %v1583_v61 }
 0x1bc   : > { %4916 = vmatmul.msk.f32.vlgmr.msrb.gmra.mxu0 %vm1883_vm3, %v1555_v62 }
 0x1bd   : > { %v1610_v1 = vpop.f32.mrf.mxu2  ;;  %v1640_v3 = vpop.f32.mrf.mxu3 }
 0x1be   : > { %v1611_v4 = vadd.f32 %v5789_v63, %v1610_v1  ;;  %v1641_v7 = vadd.f32 %v5790_v2, %v1640_v3 }
 0x1bf   : > { %v1670_v5 = vpop.f32.mrf.mxu0 }
 0x1c0   : > { %v1671_v6 = vadd.f32 %v5791_v0, %v1670_v5  ;;  %2055 = vmatpush.msra.mxu0 %v1611_v4 }
 0x1c2   : > { %4917 = vmatpush.xpose.msk.msrb.mxu1 %vm1883_vm3, %v1671_v6  ;;  %v1700_v10 = vpop.f32.mrf.mxu1 }
 0x1c3   : > { %v1701_v14 = vadd.f32 %v5794_v8, %v1700_v10  ;;  %v2060_v10 = vld [vmem:[%s7026_s6] sm:$0xff] }
 0x1c5   : > { %4918 = vmatmul.msk.f32.vlgmr.msrb.gmra.mxu1 %vm1883_vm3, %v1641_v7 }
 0x1c6   : > { %v1730_v12 = vpop.f32.mrf.mxu2  ;;  %v1760_v13 = vpop.f32.mrf.mxu3  ;;  %2079 = vmatpush.msra.mxu1 %v2060_v10  ;;  %v4963_v10 = vld [vmem:[%s7029_s21 + $0x50] sm:$0xff] }
 0x1c7   : > { %v1761_v16 = vadd.f32 %v5793_v9, %v1760_v13  ;;  %v1731_v18 = vadd.f32 %v5792_v11, %v1730_v12  ;;  %v4926_v11 = vld [vmem:[%s7026_s6 + $0x8] sm:$0xff]  ;;  %v4929_v12 = vld [vmem:[%s7026_s6 + $0x10] sm:$0xff]  ;;  %v4932_v13 = vld [vmem:[%s7026_s6 + $0x18] sm:$0xff] }
 0x1c8   : > { %2180 = vmatpush.msrb.mxu1 %v4929_v12 }
 0x1c9   : > { %4919 = vmatpush.xpose.msk.msrb.mxu2 %vm1883_vm3, %v1761_v16  ;;  %v1790_v17 = vpop.f32.mrf.mxu0 }
 0x1ca   : > { %v1791_v19 = vadd.f32 %v5797_v15, %v1790_v17  ;;  %v1820_v22 = vpop.f32.mrf.mxu1 }
 0x1cb   : > { %v1821_v26 = vadd.f32 %v5796_v21, %v1820_v22 }
 0x1cc   : > { %4920 = vmatmul.msk.f32.vlgmr.msrb.gmra.mxu2 %vm1883_vm3, %v1731_v18  ;;  %2155 = vmatpush.msrb.mxu0 %v1791_v19  ;;  %v5799_v18 = vld [vmem:[%s7028_s15] ss:$0 sm:$0xff] }
 0x1cd   : > { %2106 = vmatpush.msra.mxu2 %v1701_v14 }
 0x1ce   : > { %v1850_v23 = vpop.f32.mrf.mxu2 }
 0x1cf   : > { %v1851_v25 = vadd.f32 %v5795_v20, %v1850_v23 }
 0x1d1   : > { %4921 = vmatpush.xpose.msk.msrb.mxu3 %vm1883_vm3, %v1851_v25 }
 0x1d3   : > { %v1880_v28 = vpop.f32.mrf.mxu3 }
 0x1d4   : > { %4922 = vmatmul.msk.f32.vlgmr.msrb.gmra.mxu3 %vm1883_vm3, %v1821_v26  ;;  %v1881_v29 = vadd.f32 %v5798_v27, %v1880_v28 }
 0x1d5   : > { %2131 = vmatpush.msra.mxu3 %v4926_v11  ;;  %v4981_v11 = vld [vmem:[%s7029_s21 + $0x70] sm:$0xff] }
 0x1d6   : > { %2204 = vmatpush.msrb.mxu2 %v1881_v29 }
 0x1d7   : > { %2229 = vmatpush.msrb.mxu3 %v4932_v13  ;;  %v4944_v13 = vld [vmem:[%s7029_s21 + $0x28] sm:$0xff] }
 0x239   : > { %v1907_v30 = vpop.f32.mrf.mxu0 }
 0x23a   : > { %v1988_v31 = vmul.f32 0.35355338, %v1907_v30  ;;  %v5990_v30 = vmov 32.0  }
 0x23c   : > { %v1992_v32 = vsel %vm1883_vm3, %v1988_v31, -inf }
 0x23d   : > { %1993 = vmax.xlane.f32.xlu1 %v1992_v32 }
 0x242   : > { %v1933_v33 = vpop.f32.mrf.mxu1 }
 0x243   : > { %v1989_v34 = vmul.f32 0.35355338, %v1933_v33 }
 0x245   : > { %v1995_v35 = vsel %vm1883_vm3, %v1989_v34, -inf }
 0x246   : > { %1996 = vmax.xlane.f32.xlu0 %v1995_v35 }
 0x24f   : > { %v1959_v36 = vpop.f32.mrf.mxu2 }
 0x250   : > { %v1990_v37 = vmul.f32 0.35355338, %v1959_v36 }
 0x252   : > { %v1998_v38 = vsel %vm1883_vm3, %v1990_v37, -inf }
 0x253   : > { %1999 = vmax.xlane.f32.xlu1 %v1998_v38 }
 0x257   : > { %v1985_v39 = vpop.f32.mrf.mxu3 }
 0x258   : > { %v1991_v40 = vmul.f32 0.35355338, %v1985_v39 }
 0x25a   : > { %v2001_v41 = vsel %vm1883_vm3, %v1991_v40, -inf }
 0x25b   : > { %2002 = vmax.xlane.f32.xlu0 %v2001_v41  ;;  %v2309_v41 = vld [vmem:[%s7029_s21 + $0x18] sm:$0xff] }
 0x2b0   : > { %v1994_v42 = vpop.xlane.xlu1 %1993 }
 0x2b1   : > { %v2004_v43 = vsub.f32 %v1988_v31, %v1994_v42  ;;  %v2308_v42 = vld [vmem:[%s7029_s21 + $0x10] sm:$0xff] }
 0x2b3   : > { %v2008_v44 = vmul.f32 1.442695, %v2004_v43  ;;  %v2307_v43 = vld [vmem:[%s7029_s21 + $0x8] sm:$0xff] }
 0x2b5   : > { %5820 = vpow2.f32 %v2008_v44  ;;  %v2306_v44 = vld [vmem:[%s7029_s21] sm:$0xff] }
 0x2b9   : > { %v1997_v45 = vpop.xlane.xlu0 %1996 }
 0x2ba   : > { %v2005_v46 = vsub.f32 %v1989_v34, %v1997_v45  ;;  %v6466_v45 = vld [vmem:[%s7030_s16] sm:$0xff] }
 0x2bb   : > { %v5821_v47 = vpop.eup %5820 }
 0x2bc   : > { %v2010_v48 = vmul.f32 1.442695, %v2005_v46  ;;  %v2016_v49 = vsel %vm1883_vm3, %v5821_v47, 0.0  ;;  %v2340_v46 = vld [vmem:[%s7031_s5 + $0x18] sm:$0xff] }
 0x2bd   : > { %2017 = vadd.xlane.f32.xlu0 %v2016_v49  ;;  %v4951_v49 = vld [vmem:[%s7031_s5 + $0x30] sm:$0xff] }
 0x2be   : > { %5822 = vpow2.f32 %v2010_v48  ;;  %v2339_v48 = vld [vmem:[%s7031_s5 + $0x10] sm:$0xff] }
 0x2c4   : > { %v5823_v50 = vpop.eup %5822 }
 0x2c5   : > { %v2019_v51 = vsel %vm1883_vm3, %v5823_v50, 0.0 }
 0x2c6   : > { %v2000_v52 = vpop.xlane.xlu1 %1999  ;;  %2020 = vadd.xlane.f32.xlu2 %v2019_v51  ;;  %v4950_v51 = vld [vmem:[%s7031_s5 + $0x28] sm:$0xff] }
 0x2c7   : > { %v2006_v53 = vsub.f32 %v1990_v37, %v2000_v52  ;;  %v2337_v52 = vld [vmem:[%s7031_s5] sm:$0xff] }
 0x2c9   : > { %v2012_v54 = vmul.f32 1.442695, %v2006_v53  ;;  %v4949_v53 = vld [vmem:[%s7031_s5 + $0x20] sm:$0xff] }
 0x2cb   : > { %5824 = vpow2.f32 %v2012_v54  ;;  %v2278_v54 = vld [vmem:[%s7032_s0 + $0x18] sm:$0xff] }
 0x2ce   : > { %v2003_v55 = vpop.xlane.xlu0 %2002 }
 0x2cf   : > { %v2007_v56 = vsub.f32 %v1991_v40, %v2003_v55  ;;  %v4940_v55 = vld [vmem:[%s7032_s0 + $0x38] sm:$0xff] }
 0x2d1   : > { %v5825_v57 = vpop.eup %5824  ;;  %v2014_v58 = vmul.f32 1.442695, %v2007_v56  ;;  %v4958_v56 = vld [vmem:[%s7032_s0 + $0x58] sm:$0xff] }
 0x2d2   : > { %v2022_v59 = vsel %vm1883_vm3, %v5825_v57, 0.0 }
 0x2d3   : > { %5826 = vpow2.f32 %v2014_v58  ;;  %2023 = vadd.xlane.f32.xlu1 %v2022_v59  ;;  %v2277_v58 = vld [vmem:[%s7032_s0 + $0x10] sm:$0xff] }
 0x2d4   : > { %v4939_v59 = vld [vmem:[%s7032_s0 + $0x30] sm:$0xff] }
 0x2d9   : > { %v5827_v60 = vpop.eup %5826 }
 0x2da   : > { %v2025_v61 = vsel %vm1883_vm3, %v5827_v60, 0.0 }
 0x2db   : > { %2026 = vadd.xlane.f32.xlu2 %v2025_v61  ;;  %v4975_v61 = vld [vmem:[%s7032_s0 + $0x70] sm:$0xff] }
 0x330   : > { %v2018_v62 = vpop.xlane.xlu0 %2017 }
 0x331   : > { %5828 = vrcp.f32 %v2018_v62  ;;  %v2276_v62 = vld [vmem:[%s7032_s0 + $0x8] sm:$0xff] }
 0x337   : > { %v5829_v63 = vpop.eup %5828 }
 0x338   : > { %v2032_v0 = vmul.f32 %v5829_v63, %v5821_v47  ;;  %v4952_v47 = vld [vmem:[%s7031_s5 + $0x38] sm:$0xff]  ;;  %v4938_v63 = vld [vmem:[%s7032_s0 + $0x28] sm:$0xff] }
 0x339   : > { %v2021_v1 = vpop.xlane.xlu2 %2020 }
 0x33a   : > { %5830 = vrcp.f32 %v2021_v1  ;;  %4923 = vmatmul.msk.f32.vlgmr.msra.gmra.mxu0 %vm1883_vm3, %v2032_v0  ;;  %v4956_v0 = vld [vmem:[%s7032_s0 + $0x48] sm:$0xff] }
 0x33b   : > { %2298 = vmatpush.msra.mxu0 %v2278_v54  ;;  %v4974_v1 = vld [vmem:[%s7032_s0 + $0x68] sm:$0xff] }
 0x33d   : > { %2299 = vmatpush.msra.mxu0 %v2277_v58 }
 0x33f   : > { %2300 = vmatpush.msra.mxu0 %v2276_v62 }
 0x340   : > { %v5831_v2 = vpop.eup %5830 }
 0x341   : > { %v2033_v3 = vmul.f32 %v5831_v2, %v5823_v50  ;;  %v2338_v50 = vld [vmem:[%s7031_s5 + $0x8] sm:$0xff]  ;;  %v2275_v2 = vld [vmem:[%s7032_s0] sm:$0xff] }
 0x342   : > { %2301 = vmatpush.msra.mxu0 %v2275_v2 }
 0x343   : > { %4925 = vmatmul.msk.f32.vlgmr.msra.gmra.mxu2 %vm1883_vm3, %v2033_v3  ;;  %v4937_v3 = vld [vmem:[%s7032_s0 + $0x20] sm:$0xff] }
 0x344   : > { %2357 = vmatpush.msra.mxu2 %v2340_v46  ;;  %v4987_v46 = vld [vmem:[%s7031_s5 + $0x70] sm:$0xff] }
 0x346   : > { %v2024_v4 = vpop.xlane.xlu1 %2023  ;;  %2358 = vmatpush.msra.mxu2 %v2339_v48  ;;  %v4985_v48 = vld [vmem:[%s7031_s5 + $0x60] sm:$0xff] }
 0x347   : > { %5832 = vrcp.f32 %v2024_v4  ;;  %v4955_v4 = vld [vmem:[%s7032_s0 + $0x40] sm:$0xff] }
 0x348   : > { %2359 = vmatpush.msra.mxu2 %v2338_v50 }
 0x34a   : > { %2360 = vmatpush.msra.mxu2 %v2337_v52  ;;  %v5809_v52 = vld [vmem:[%s7035_s29 + $0x1] ss:$0 sm:$0xff] }
 0x34d   : > { %v5833_v5 = vpop.eup %5832 }
 0x34e   : > { %v2034_v6 = vmul.f32 %v5833_v5, %v5825_v57  ;;  %v2027_v7 = vpop.xlane.xlu2 %2026  ;;  %v4976_v57 = vld [vmem:[%s7032_s0 + $0x78] sm:$0xff]  ;;  %v4973_v5 = vld [vmem:[%s7032_s0 + $0x60] sm:$0xff] }
 0x34f   : > { %5834 = vrcp.f32 %v2027_v7  ;;  %v4964_v7 = vld [vmem:[%s7029_s21 + $0x58] sm:$0xff] }
 0x350   : > { %4928 = vmatmul.msk.f32.vlgmr.msrb.gmra.mxu0 %vm1883_vm3, %v2034_v6  ;;  %5836 = vrcp.f32 %v5990_v30  ;;  %v4946_v6 = vld [vmem:[%s7029_s21 + $0x38] sm:$0xff] }
 0x351   : > { %2417 = vmatpush.msrb.mxu0 %v4946_v6 }
 0x355   : > { %v5835_v8 = vpop.eup %5834 }
 0x356   : > { %v2035_v9 = vmul.f32 %v5835_v8, %v5827_v60  ;;  %v5837_v31 = vpop.eup %5836  ;;  %v4957_v60 = vld [vmem:[%s7032_s0 + $0x50] sm:$0xff]  ;;  %v4982_v8 = vld [vmem:[%s7029_s21 + $0x78] sm:$0xff] }
 0x357   : > { %v2240_v32 = vmul.f32 32.0, %v5837_v31  ;;  %vm2244_vm4 = vweird.f32 %v5837_v31 }
 0x358   : > { %4931 = vmatmul.msk.f32.vlgmr.msrb.gmra.mxu2 %vm1883_vm3, %v2035_v9  ;;  %v4945_v9 = vld [vmem:[%s7029_s21 + $0x30] sm:$0xff] }
 0x359   : > { %v2241_v33 = vsub.f32 1.0, %v2240_v32  ;;  %2477 = vmatpush.msrb.mxu2 %v4958_v56  ;;  %2418 = vmatpush.msrb.mxu0 %v4945_v9 }
 0x35b   : > { %v2242_v34 = vmul.f32 %v5837_v31, %v2241_v33  ;;  %2478 = vmatpush.msrb.mxu2 %v4957_v60  ;;  %2419 = vmatpush.msrb.mxu0 %v4944_v13 }
 0x35d   : > { %v2243_v35 = vadd.f32 %v5837_v31, %v2242_v34  ;;  %2479 = vmatpush.msrb.mxu2 %v4956_v0  ;;  %v4970_v34 = vld [vmem:[%s7031_s5 + $0x58] sm:$0xff] }
 0x35f   : > { %v6453_v36 = vsel %vm2244_vm4, %v5837_v31, %v2243_v35  ;;  %2480 = vmatpush.msrb.mxu2 %v4955_v4  ;;  %v5801_v31 = vld [vmem:[%s1471_s26] ss:$0 sm:$0xff]  ;;  %v4969_v35 = vld [vmem:[%s7031_s5 + $0x50] sm:$0xff]  ;;  %s7037_s26 = sld [smem:[#allocation62_spill]] }
 0x360   : > { %4936 = vmatmul.msk.f32.vlgmr.msra.gmra.mxu2 %vm1533_vm2, %v6466_v45 }
 0x361   : > { %2597 = vmatpush.msra.mxu2 %v4982_v8 }
 0x363   : > { %2598 = vmatpush.msra.mxu2 %v4981_v11 }
 0x365   : > { %v5807_v56 = vld [vmem:[%s7037_s26 + $0x1] ss:$0 sm:$0xff]  ;;  %v5808_v62 = vld [vmem:[%s7037_s26 + $0x2] ss:$0 sm:$0xff]  ;;  %v5806_v0 = vld [vmem:[%s7037_s26 + $0x3] ss:$0 sm:$0xff] }
 0x3b7   : > { %v2057_v14 = vpop.f32.mrf.mxu0 }
 0x3b8   : > { %4924 = vmatmul.msk.f32.vlgmr.msra.gmra.mxu1 %vm1883_vm3, %v2057_v14  ;;  %v4962_v14 = vld [vmem:[%s7029_s21 + $0x48] sm:$0xff] }
 0x3b9   : > { %2329 = vmatpush.msra.mxu1 %v2309_v41 }
 0x3bb   : > { %2330 = vmatpush.msra.mxu1 %v2308_v42 }
 0x3bd   : > { %2331 = vmatpush.msra.mxu1 %v2307_v43 }
 0x3bf   : > { %2332 = vmatpush.msra.mxu1 %v2306_v44  ;;  %v4988_v44 = vld [vmem:[%s7031_s5 + $0x78] sm:$0xff] }
 0x3c6   : > { %v2108_v15 = vpop.f32.mrf.mxu2 }
 0x3c7   : > { %4927 = vmatmul.msk.f32.vlgmr.msra.gmra.mxu3 %vm1883_vm3, %v2108_v15 }
 0x3c8   : > { %2387 = vmatpush.msra.mxu3 %v4940_v55 }
 0x3ca   : > { %2388 = vmatpush.msra.mxu3 %v4939_v59  ;;  %v5810_v59 = vld [vmem:[%s7035_s29 + $0x2] ss:$0 sm:$0xff] }
 0x3cc   : > { %2389 = vmatpush.msra.mxu3 %v4938_v63 }
 0x3cd   : > { %v2157_v16 = vpop.f32.mrf.mxu0 }
 0x3ce   : > { %4930 = vmatmul.msk.f32.vlgmr.msrb.gmra.mxu1 %vm1883_vm3, %v2157_v16  ;;  %2390 = vmatpush.msra.mxu3 %v4937_v3  ;;  %v4980_v16 = vld [vmem:[%s7029_s21 + $0x68] sm:$0xff] }
 0x3cf   : > { %2447 = vmatpush.msrb.mxu1 %v4952_v47  ;;  %2599 = vmatpush.msra.mxu2 %v4980_v16  ;;  %v4986_v47 = vld [vmem:[%s7031_s5 + $0x68] sm:$0xff] }
 0x3d1   : > { %2448 = vmatpush.msrb.mxu1 %v4951_v49  ;;  %v5805_v49 = vld [vmem:[%s7037_s26] ss:$0 sm:$0xff] }
 0x3d3   : > { %2449 = vmatpush.msrb.mxu1 %v4950_v51 }
 0x3d5   : > { %2450 = vmatpush.msrb.mxu1 %v4949_v53 }
 0x3d6   : > { %4935 = vmatmul.msk.f32.vlgmr.msra.gmra.mxu1 %vm1533_vm2, %v6466_v45 }
 0x3d7   : > { %2567 = vmatpush.msra.mxu1 %v4976_v57 }
 0x3d9   : > { %2568 = vmatpush.msra.mxu1 %v4975_v61  ;;  %v5811_v61 = vld [vmem:[%s7035_s29 + $0x3] ss:$0 sm:$0xff] }
 0x3db   : > { %v2206_v17 = vpop.f32.mrf.mxu2  ;;  %2569 = vmatpush.msra.mxu1 %v4974_v1 }
 0x3dc   : > { %4933 = vmatmul.msk.f32.vlgmr.msrb.gmra.mxu3 %vm1883_vm3, %v2206_v17  ;;  %v4943_v17 = vld [vmem:[%s7029_s21 + $0x20] sm:$0xff] }
 0x3dd   : > { %2570 = vmatpush.msra.mxu1 %v4973_v5  ;;  %2507 = vmatpush.msrb.mxu3 %v4964_v7 }
 0x3de   : > { %4954 = vmatmul.msk.f32.vlgmr.msrb.gmra.mxu1 %vm1533_vm2, %v6466_v45  ;;  %2420 = vmatpush.msrb.mxu0 %v4943_v17 }
 0x3df   : > { %2508 = vmatpush.msrb.mxu3 %v4963_v10 }
 0x3e1   : > { %2509 = vmatpush.msrb.mxu3 %v4962_v14 }
 0x3e3   : > { %v2362_v42 = vpop.f32.mrf.mxu2 }
 0x435   : > { %v2081_v19 = vpop.f32.mrf.mxu1 }
 0x436   : > { %v2087_v21 = vadd.f32 %v5799_v18, %v2081_v19  ;;  %v4961_v18 = vld [vmem:[%s7029_s21 + $0x40] sm:$0xff] }
 0x437   : > { %2510 = vmatpush.msrb.mxu3 %v4961_v18 }
 0x44a   : > { %v2133_v20 = vpop.f32.mrf.mxu3 }
 0x44b   : > { %v2136_v22 = vadd.f32 %v2133_v20, %v2087_v21  ;;  %v2182_v23 = vpop.f32.mrf.mxu1  ;;  %v4979_v20 = vld [vmem:[%s7029_s21 + $0x60] sm:$0xff] }
 0x44c   : > { %2600 = vmatpush.msra.mxu2 %v4979_v20 }
 0x44d   : > { %v2185_v25 = vadd.f32 %v2182_v23, %v2136_v22 }
 0x45f   : > { %v2231_v26 = vpop.f32.mrf.mxu3 }
 0x460   : > { %v2234_v27 = vadd.f32 %v2231_v26, %v2185_v25 }
 0x462   : > { %v2235_v28 = vadd.f32 %v2234_v27, %v6350_v24 }
 0x464   : > { %v2236_v29 = vsel %vm1533_vm2, %v2235_v28, 0.0 }
 0x465   : > { %2237 = vadd.xlane.f32.xlu2 %v2236_v29 }
 0x4d8   : > { %v2238_v37 = vpop.xlane.xlu2 %2237 }
 0x4d9   : > { %v2246_v24 = vmul.f32 %v6453_v36, %v2238_v37  ;;  %v4968_v37 = vld [vmem:[%s7031_s5 + $0x48] sm:$0xff] }
 0x4db   : > { %v6456_v38 = vsub.f32 %v2235_v28, %v2246_v24  ;;  %v5800_v28 = vld [vmem:[%s1468_s18] ss:$0 sm:$0xff]  ;;  %s7036_s18 = sld [smem:[#allocation66_spill]] }
 0x4dc   : > { %v4967_v24 = vld [vmem:[%s7031_s5 + $0x40] sm:$0xff] }
 0x4dd   : > { %v2248_v39 = vmul.f32 %v6456_v38, %v6456_v38 }
 0x4df   : > { %v2249_v40 = vsel %vm1533_vm2, %v2248_v39, 0.0  ;;  %v2334_v39 = vpop.f32.mrf.mxu1 }
 0x4e0   : > { %2250 = vadd.xlane.f32.xlu0 %v2249_v40 }
 0x4e1   : > { %v5804_v41 = vld [vmem:[%s7036_s18] ss:$0 sm:$0xff]  ;;  %v5803_v60 = vld [vmem:[%s7036_s18 + $0x1] ss:$0 sm:$0xff]  ;;  %v5812_v8 = vld [vmem:[%s7036_s18 + $0x2] ss:$0 sm:$0xff] }
 0x4e2   : > { %v2363_v43 = vadd.f32 %v5804_v41, %v2362_v42  ;;  %v5813_v11 = vld [vmem:[%s7036_s18 + $0x3] ss:$0 sm:$0xff] }
 0x4e7   : > { %v2452_v53 = vpop.f32.mrf.mxu1 }
 0x4e8   : > { %v2453_v3 = vadd.f32 %v5803_v60, %v2452_v53 }
 0x553   : > { %v2251_v12 = vpop.xlane.xlu0 %2250 }
 0x554   : > { %v2252_v15 = vmul.f32 %v2251_v12, %v6453_v36 }
 0x556   : > { %v2253_v19 = vadd.f32 1e-05, %v2252_v15 }
 0x558   : > { %5838 = vrsqrt.f32 %v2253_v19  ;;  %vm2260_vm6 = vweird.f32 %v2253_v19 }
 0x55e   : > { %v5839_v21 = vpop.eup %5838 }
 0x55f   : > { %v2255_v22 = vmul.f32 %v5839_v21, %v2253_v19  ;;  %vm2261_vm5 = vweird.f32 %v5839_v21 }
 0x560   : > { %vm2262_vm7 = vmor %vm2260_vm6, %vm2261_vm5 }
 0x561   : > { %v2256_v23 = vmul.f32 %v5839_v21, %v2255_v22 }
 0x563   : > { %v2257_v25 = vmul.f32 0.5, %v2256_v23 }
 0x565   : > { %v2258_v26 = vsub.f32 1.5, %v2257_v25 }
 0x567   : > { %v2259_v27 = vmul.f32 %v5839_v21, %v2258_v26 }
 0x569   : > { %v2263_v29 = vsel %vm2262_vm7, %v5839_v21, %v2259_v27 }
 0x56a   : > { %v2264_v30 = vmul.f32 %v2263_v29, %v6456_v38  ;;  %v5802_v38 = vld [vmem:[%s7035_s29] ss:$0 sm:$0xff] }
 0x56b   : > { %v2335_v40 = vadd.f32 %v5802_v38, %v2334_v39 }
 0x56c   : > { %v2269_v32 = vmul.f32 %v5800_v28, %v2264_v30 }
 0x56e   : > { %v6518_v33 = vadd.f32 %v5801_v31, %v2269_v32 }
 0x570   : > { %4934 = vmatmul.msk.f32.vlgmr.msra.gmra.mxu0 %vm1533_vm2, %v6518_v33  ;;  %4942 = vmatmul.msk.f32.vlgmr.msra.gmra.mxu3 %vm1533_vm2, %v6518_v33 }
 0x571   : > { %4960 = vmatmul.msk.f32.vlgmr.msrb.gmra.mxu2 %vm1533_vm2, %v6518_v33  ;;  %4978 = vmatmul.msk.f32.vlgmr.msra.gmra.mxu1 %vm1533_vm2, %v6518_v33 }
 0x572   : > { %2537 = vmatpush.msra.mxu0 %v4970_v34  ;;  %2627 = vmatpush.msra.mxu3 %v4988_v44 }
 0x574   : > { %2538 = vmatpush.msra.mxu0 %v4969_v35  ;;  %2628 = vmatpush.msra.mxu3 %v4987_v46 }
 0x576   : > { %2539 = vmatpush.msra.mxu0 %v4968_v37  ;;  %2629 = vmatpush.msra.mxu3 %v4986_v47 }
 0x578   : > { %4948 = vmatmul.msk.f32.vlgmr.msrb.gmra.mxu0 %vm1533_vm2, %v6466_v45  ;;  %4966 = vmatmul.msk.f32.vlgmr.msrb.gmra.mxu3 %vm1533_vm2, %v6466_v45 }
 0x579   : > { %4984 = vmatmul.msk.f32.vlgmr.msra.gmra.mxu2 %vm1533_vm2, %v6466_v45  ;;  %2540 = vmatpush.msra.mxu0 %v4967_v24 }
 0x57a   : > { %2630 = vmatpush.msra.mxu3 %v4985_v48 }
 0x57b   : > { %4991 = vmatpush.xpose.msk.msrb.mxu0 %vm1883_vm3, %v2335_v40 }
 0x580   : > { %4972 = vmatmul.msk.f32.vlgmr.msra.gmra.mxu0 %vm1533_vm2, %v6466_v45  ;;  %4990 = vmatmul.msk.f32.vlgmr.msra.gmra.mxu3 %vm1533_vm2, %v6466_v45 }
 0x581   : > { %2806 = vmatpush.msra.mxu0 %v2363_v43 }
 0x5ed   : > { %v2303_v50 = vpop.f32.mrf.mxu0 }
 0x5ee   : > { %v2304_v51 = vadd.f32 %v5805_v49, %v2303_v50  ;;  %v2572_v4 = vpop.f32.mrf.mxu1 }
 0x5ef   : > { %v2573_v7 = vadd.f32 %v5806_v0, %v2572_v4  ;;  %v5814_v4 = vld [vmem:[%s1448_s27] ss:$0 sm:$0xff]  ;;  %s7042_s27 = sld [smem:[#allocation41_spill]] }
 0x5f0   : > { %4992 = vmatmul.msk.f32.vlgmr.msrb.gmra.mxu0 %vm1883_vm3, %v2304_v51 }
 0x5f3   : > { %v2392_v54 = vpop.f32.mrf.mxu3 }
 0x5f4   : > { %v2482_v55 = vpop.f32.mrf.mxu2  ;;  %v2393_v45 = vadd.f32 %v5807_v56, %v2392_v54 }
 0x5f5   : > { %v2422_v57 = vpop.f32.mrf.mxu0  ;;  %v2483_v6 = vadd.f32 %v5808_v62, %v2482_v55  ;;  %v5005_v62 = vld [vmem:[%s6297_s12 + $0x10] sm:$0xff]  ;;  %p5026_p1 = scmp.ne.s32.totalorder %s7042_s27, 2 }
 0x5f6   : > { %v2423_v58 = vadd.f32 %v5809_v52, %v2422_v57 }
 0x5f8   : > { %4993 = vmatpush.xpose.msk.msrb.mxu1 %vm1883_vm3, %v2423_v58 }
 0x5fb   : > { %v2512_v63 = vpop.f32.mrf.mxu3  ;;  %4994 = vmatmul.msk.f32.vlgmr.msrb.gmra.mxu1 %vm1883_vm3, %v2393_v45  ;;  %v2811_v45 = vld [vmem:[%s6297_s12] sm:$0xff] }
 0x5fc   : > { %v2513_v1 = vadd.f32 %v5810_v59, %v2512_v63  ;;  %v2602_v2 = vpop.f32.mrf.mxu2  ;;  %2830 = vmatpush.msra.mxu1 %v2811_v45  ;;  %v5008_v63 = vld [vmem:[%s6297_s12 + $0x18] sm:$0xff] }
 0x5fd   : > { %v2603_v5 = vadd.f32 %v5811_v61, %v2602_v2  ;;  %v2542_v9 = vpop.f32.mrf.mxu0  ;;  %v5002_v61 = vld [vmem:[%s6297_s12 + $0x8] sm:$0xff] }
 0x5fe   : > { %4995 = vmatpush.xpose.msk.msrb.mxu2 %vm1883_vm3, %v2513_v1  ;;  %v2543_v10 = vadd.f32 %v5812_v8, %v2542_v9  ;;  %2931 = vmatpush.msrb.mxu1 %v5005_v62  ;;  %v5583_v62 = vld [vmem:[%s6311_s11 + $0xf0] sm:$0xff]  }
 0x5ff   : > { %4997 = vmatpush.xpose.msk.msrb.mxu3 %vm1883_vm3, %v2603_v5 }
 0x600   : > { %2906 = vmatpush.msrb.mxu0 %v2543_v10 }
 0x601   : > { %4996 = vmatmul.msk.f32.vlgmr.msrb.gmra.mxu2 %vm1883_vm3, %v2483_v6 }
 0x602   : > { %2857 = vmatpush.msra.mxu2 %v2453_v3  ;;  %4998 = vmatmul.msk.f32.vlgmr.msrb.gmra.mxu3 %vm1883_vm3, %v2573_v7 }
 0x603   : > { %v2632_v12 = vpop.f32.mrf.mxu3  ;;  %2882 = vmatpush.msra.mxu3 %v5002_v61  ;;  %v5575_v61 = vld [vmem:[%s6311_s11 + $0xb0] sm:$0xff]  }
 0x604   : > { %v2633_v13 = vadd.f32 %v5813_v11, %v2632_v12 }
 0x605   : > { %2980 = vmatpush.msrb.mxu3 %v5008_v63  ;;  %v5558_v63 = vld [vmem:[%s6311_s11 + $0x28] sm:$0xff]  }
 0x606   : > { %2955 = vmatpush.msrb.mxu2 %v2633_v13 }
 0x66d   : > { %v2658_v14 = vpop.f32.mrf.mxu0 }
 0x66e   : > { %v2739_v15 = vmul.f32 0.35355338, %v2658_v14 }
 0x670   : > { %v2743_v16 = vsel %vm1883_vm3, %v2739_v15, -inf }
 0x671   : > { %2744 = vmax.xlane.f32.xlu0 %v2743_v16 }
 0x678   : > { %v2684_v17 = vpop.f32.mrf.mxu1 }
 0x679   : > { %v2740_v18 = vmul.f32 0.35355338, %v2684_v17 }
 0x67b   : > { %v2746_v19 = vsel %vm1883_vm3, %v2740_v18, -inf }
 0x67c   : > { %2747 = vmax.xlane.f32.xlu1 %v2746_v19 }
 0x684   : > { %v2710_v20 = vpop.f32.mrf.mxu2 }
 0x685   : > { %v2741_v21 = vmul.f32 0.35355338, %v2710_v20  ;;  %v2736_v22 = vpop.f32.mrf.mxu3  ;;  %v3030_v20 = vld [vmem:[%s6303_s8 + $0xc0] sm:$0xff] }
 0x686   : > { %v2742_v23 = vmul.f32 0.35355338, %v2736_v22  ;;  %v3045_v22 = vunpack.c.h.bf16 %v3030_v20 }
 0x687   : > { %v2749_v25 = vsel %vm1883_vm3, %v2741_v21, -inf }
 0x688   : > { %v2752_v26 = vsel %vm1883_vm3, %v2742_v23, -inf  ;;  %2750 = vmax.xlane.f32.xlu1 %v2749_v25 }
 0x689   : > { %2753 = vmax.xlane.f32.xlu2 %v2752_v26  ;;  %v3028_v26 = vld [vmem:[%s6303_s8 + $0x80] sm:$0xff] }
 0x6e4   : > { %v2745_v27 = vpop.xlane.xlu0 %2744 }
 0x6e5   : > { %v2755_v28 = vsub.f32 %v2739_v15, %v2745_v27  ;;  %v3029_v27 = vld [vmem:[%s6303_s8 + $0x88] sm:$0xff] }
 0x6e7   : > { %v2759_v29 = vmul.f32 1.442695, %v2755_v28  ;;  %v3040_v28 = vunpack.c.l.bf16 %v3028_v26 }
 0x6e9   : > { %5840 = vpow2.f32 %v2759_v29  ;;  %v3041_v29 = vunpack.c.h.bf16 %v3028_v26  ;;  %v5564_v26 = vld [vmem:[%s6311_s11 + $0x58] sm:$0xff]  }
 0x6ef   : > { %v5841_v30 = vpop.eup %5840  ;;  %v2748_v31 = vpop.xlane.xlu1 %2747 }
 0x6f0   : > { %v2756_v32 = vsub.f32 %v2740_v18, %v2748_v31  ;;  %v2767_v34 = vsel %vm1883_vm3, %v5841_v30, 0.0  ;;  %v3043_v31 = vunpack.c.h.bf16 %v3029_v27 }
 0x6f1   : > { %2768 = vadd.xlane.f32.xlu1 %v2767_v34  ;;  %v3027_v34 = vld [vmem:[%s6303_s8 + $0x48] sm:$0xff] }
 0x6f2   : > { %v2761_v35 = vmul.f32 1.442695, %v2756_v32  ;;  %v3026_v32 = vld [vmem:[%s6303_s8 + $0x40] sm:$0xff] }
 0x6f4   : > { %5842 = vpow2.f32 %v2761_v35  ;;  %v3036_v35 = vunpack.c.l.bf16 %v3026_v32 }
 0x6fa   : > { %v5843_v37 = vpop.eup %5842 }
 0x6fb   : > { %v2751_v24 = vpop.xlane.xlu1 %2750  ;;  %v2770_v38 = vsel %vm1883_vm3, %v5843_v37, 0.0 }
 0x6fc   : > { %v2754_v39 = vpop.xlane.xlu2 %2753  ;;  %v2757_v40 = vsub.f32 %v2741_v21, %v2751_v24  ;;  %2771 = vadd.xlane.f32.xlu2 %v2770_v38  ;;  %v3031_v21 = vld [vmem:[%s6303_s8 + $0xc8] sm:$0xff]  ;;  %v3038_v24 = vunpack.c.l.bf16 %v3027_v34  ;;  %v3039_v38 = vunpack.c.h.bf16 %v3027_v34 }
 0x6fd   : > { %v2758_v41 = vsub.f32 %v2742_v23, %v2754_v39  ;;  %v3046_v23 = vunpack.c.l.bf16 %v3031_v21  ;;  %v3047_v25 = vunpack.c.h.bf16 %v3031_v21  ;;  %v3024_v39 = vld [vmem:[%s6303_s8] sm:$0xff] }
 0x6fe   : > { %v2763_v42 = vmul.f32 1.442695, %v2757_v40  ;;  %v3025_v40 = vld [vmem:[%s6303_s8 + $0x8] sm:$0xff] }
 0x6ff   : > { %v2765_v43 = vmul.f32 1.442695, %v2758_v41  ;;  %v3032_v41 = vunpack.c.l.bf16 %v3024_v39 }
 0x700   : > { %5844 = vpow2.f32 %v2763_v42  ;;  %v3033_v42 = vunpack.c.h.bf16 %v3024_v39  ;;  %v5580_v39 = vld [vmem:[%s6311_s11 + $0xd8] sm:$0xff]  }
 0x701   : > { %5846 = vpow2.f32 %v2765_v43  ;;  %v3034_v43 = vunpack.c.l.bf16 %v3025_v40 }
 0x706   : > { %v5845_v44 = vpop.eup %5844 }
 0x707   : > { %v5847_v46 = vpop.eup %5846  ;;  %v2773_v47 = vsel %vm1883_vm3, %v5845_v44, 0.0 }
 0x708   : > { %2774 = vadd.xlane.f32.xlu2 %v2773_v47  ;;  %v2776_v48 = vsel %vm1883_vm3, %v5847_v46, 0.0  ;;  %v5568_v47 = vld [vmem:[%s6311_s11 + $0x78] sm:$0xff]  }
 0x709   : > { %2777 = vadd.xlane.f32.xlu0 %v2776_v48  ;;  %v5559_v48 = vld [vmem:[%s6311_s11 + $0x30] sm:$0xff]  }
 0x764   : > { %v2769_v49 = vpop.xlane.xlu1 %2768 }
 0x765   : > { %5848 = vrcp.f32 %v2769_v49 }
 0x76b   : > { %v5849_v50 = vpop.eup %5848 }
 0x76c   : > { %v2783_v51 = vmul.f32 %v5849_v50, %v5841_v30  ;;  %v3042_v30 = vunpack.c.l.bf16 %v3029_v27  ;;  %v5105_v50 = vunpack.c.h.bf16 %v5568_v47 }
 0x76e   : > { %4999 = vmatmul.msk.f32.vlgmr.msra.gmra.mxu0 %vm1883_vm3, %v2783_v51 }
 0x76f   : > { %v2772_v52 = vpop.xlane.xlu2 %2771 }
 0x770   : > { %5850 = vrcp.f32 %v2772_v52  ;;  %v5104_v52 = vunpack.c.l.bf16 %v5568_v47  ;;  %v5088_v47 = vunpack.c.l.bf16 %v5564_v26 }
 0x776   : > { %v5851_v53 = vpop.eup %5850 }
 0x777   : > { %v2784_v54 = vmul.f32 %v5851_v53, %v5843_v37  ;;  %v3037_v37 = vunpack.c.h.bf16 %v3026_v32  ;;  %v5567_v53 = vld [vmem:[%s6311_s11 + $0x70] sm:$0xff]  }
 0x779   : > { %5001 = vmatmul.msk.f32.vlgmr.msra.gmra.mxu2 %vm1883_vm3, %v2784_v54  ;;  %v5576_v54 = vld [vmem:[%s6311_s11 + $0xb8] sm:$0xff]  }
 0x77a   : > { %3241 = vmatpush.msra.mxu2 %v3046_v23  ;;  %v5581_v23 = vld [vmem:[%s6311_s11 + $0xe0] sm:$0xff]  }
 0x77b   : > { %v2775_v55 = vpop.xlane.xlu2 %2774 }
 0x77c   : > { %5852 = vrcp.f32 %v2775_v55  ;;  %v2778_v56 = vpop.xlane.xlu0 %2777  ;;  %3242 = vmatpush.msra.mxu2 %v3042_v30  ;;  %v5584_v55 = vld [vmem:[%s6311_s11 + $0xf8] sm:$0xff]  }
 0x77d   : > { %5854 = vrcp.f32 %v2778_v56  ;;  %v5169_v45 = vunpack.c.h.bf16 %v5584_v55 }
 0x77e   : > { %3243 = vmatpush.msra.mxu2 %v3038_v24  ;;  %v5089_v24 = vunpack.c.h.bf16 %v5564_v26 }
 0x780   : > { %3244 = vmatpush.msra.mxu2 %v3034_v43 }
 0x782   : > { %v5853_v57 = vpop.eup %5852 }
 0x783   : > { %v5855_v58 = vpop.eup %5854  ;;  %v2785_v59 = vmul.f32 %v5853_v57, %v5845_v44  ;;  %v3035_v44 = vunpack.c.h.bf16 %v3025_v40  ;;  %v5069_v57 = vunpack.c.h.bf16 %v5559_v48 }
 0x784   : > { %v2786_v60 = vmul.f32 %v5855_v58, %v5847_v46  ;;  %v5560_v46 = vld [vmem:[%s6311_s11 + $0x38] sm:$0xff]  }
 0x785   : > { %5004 = vmatmul.msk.f32.vlgmr.msrb.gmra.mxu0 %vm1883_vm3, %v2785_v59  ;;  %v5073_v49 = vunpack.c.h.bf16 %v5560_v46  ;;  %v5072_v51 = vunpack.c.l.bf16 %v5560_v46  ;;  %v5101_v59 = vunpack.c.h.bf16 %v5567_v53 }
 0x786   : > { %5007 = vmatmul.msk.f32.vlgmr.msrb.gmra.mxu2 %vm1883_vm3, %v2786_v60  ;;  %v5137_v60 = vunpack.c.h.bf16 %v5576_v54 }
 0x788   : > { %3313 = vmatpush.msrb.mxu2 %v5137_v60 }
 0x7eb   : > { %v2808_v0 = vpop.f32.mrf.mxu0 }
 0x7ec   : > { %5000 = vmatmul.msk.f32.vlgmr.msra.gmra.mxu1 %vm1883_vm3, %v2808_v0  ;;  %v5566_v0 = vld [vmem:[%s6311_s11 + $0x68] sm:$0xff]  }
 0x7ed   : > { %3221 = vmatpush.msra.mxu1 %v3045_v22  ;;  %v5573_v22 = vld [vmem:[%s6311_s11 + $0xa0] sm:$0xff]  }
 0x7ee   : > { %v5125_v34 = vunpack.c.h.bf16 %v5573_v22  ;;  %v5124_v43 = vunpack.c.l.bf16 %v5573_v22 }
 0x7ef   : > { %3222 = vmatpush.msra.mxu1 %v3041_v29 }
 0x7f1   : > { %3223 = vmatpush.msra.mxu1 %v3037_v37 }
 0x7f3   : > { %3224 = vmatpush.msra.mxu1 %v3033_v42  ;;  %v5563_v42 = vld [vmem:[%s6311_s11 + $0x50] sm:$0xff]  }
 0x7fc   : > { %v2859_v1 = vpop.f32.mrf.mxu2 }
 0x7fd   : > { %5003 = vmatmul.msk.f32.vlgmr.msra.gmra.mxu3 %vm1883_vm3, %v2859_v1  ;;  %v5136_v1 = vunpack.c.l.bf16 %v5576_v54  ;;  %v5554_v54 = vld [vmem:[%s6311_s11 + $0x8] sm:$0xff]  }
 0x7fe   : > { %3261 = vmatpush.msra.mxu3 %v3047_v25  ;;  %v5556_v25 = vld [vmem:[%s6311_s11 + $0x18] sm:$0xff]  }
 0x7ff   : > { %3314 = vmatpush.msrb.mxu2 %v5136_v1  ;;  %v5057_v37 = vunpack.c.h.bf16 %v5556_v25  ;;  %v5056_v46 = vunpack.c.l.bf16 %v5556_v25 }
 0x800   : > { %3262 = vmatpush.msra.mxu3 %v3043_v31 }
 0x802   : > { %v2908_v2 = vpop.f32.mrf.mxu0  ;;  %3263 = vmatpush.msra.mxu3 %v3039_v38  ;;  %v5572_v38 = vld [vmem:[%s6311_s11 + $0x98] sm:$0xff]  }
 0x803   : > { %5006 = vmatmul.msk.f32.vlgmr.msrb.gmra.mxu1 %vm1883_vm3, %v2908_v2  ;;  %v5168_v2 = vunpack.c.l.bf16 %v5584_v55  ;;  %v5562_v55 = vld [vmem:[%s6311_s11 + $0x48] sm:$0xff]  }
 0x804   : > { %3264 = vmatpush.msra.mxu3 %v3035_v44  ;;  %3293 = vmatpush.msrb.mxu1 %v5105_v50  ;;  %v5156_v44 = vunpack.c.l.bf16 %v5581_v23  ;;  %v5153_v50 = vunpack.c.h.bf16 %v5580_v39 }
 0x806   : > { %3294 = vmatpush.msrb.mxu1 %v5104_v52  ;;  %v5085_v52 = vunpack.c.h.bf16 %v5563_v42 }
 0x808   : > { %3295 = vmatpush.msrb.mxu1 %v5101_v59  ;;  %v5084_v59 = vunpack.c.l.bf16 %v5563_v42 }
 0x809   : > { %v2957_v3 = vpop.f32.mrf.mxu2 }
 0x80a   : > { %5009 = vmatmul.msk.f32.vlgmr.msrb.gmra.mxu3 %vm1883_vm3, %v2957_v3 }
 0x80b   : > { %3333 = vmatpush.msrb.mxu3 %v5169_v45  ;;  %v5815_v45 = vld [vmem:[%s1474_s10] ss:$0 sm:$0xff]  ;;  %s7043_s10 = sld [smem:[#allocation11_spill]] (!%p5026_p1) }
 0x80d   : > { %3334 = vmatpush.msrb.mxu3 %v5168_v2 }
 0x869   : > { %v2832_v5 = vpop.f32.mrf.mxu1 }
 0x86a   : > { %v2838_v7 = vadd.f32 %v5814_v4, %v2832_v5  ;;  %v5068_v4 = vunpack.c.l.bf16 %v5559_v48  ;;  %v5100_v5 = vunpack.c.l.bf16 %v5567_v53 }
 0x86c   : > { %3296 = vmatpush.msrb.mxu1 %v5100_v5  ;;  %v5048_v5 = vunpack.c.l.bf16 %v5554_v54 }
 0x880   : > { %v2884_v6 = vpop.f32.mrf.mxu3  ;;  %v2933_v9 = vpop.f32.mrf.mxu1 }
 0x881   : > { %v2887_v8 = vadd.f32 %v2884_v6, %v2838_v7  ;;  %v5133_v6 = vunpack.c.h.bf16 %v5575_v61  ;;  %v5165_v7 = vunpack.c.h.bf16 %v5583_v62 }
 0x883   : > { %v2936_v10 = vadd.f32 %v2933_v9, %v2887_v8  ;;  %v5065_v8 = vunpack.c.h.bf16 %v5558_v63  ;;  %v5097_v9 = vunpack.c.h.bf16 %v5566_v0  ;;  %3315 = vmatpush.msrb.mxu2 %v5133_v6  ;;  %3335 = vmatpush.msrb.mxu3 %v5165_v7  ;;  %v5080_v6 = vunpack.c.l.bf16 %v5562_v55 }
 0x885   : > { %3297 = vmatpush.msrb.mxu1 %v5097_v9  ;;  %v5043_v9 = vld [vmem:[%s6311_s11] sm:$0xff]  }
 0x88d   : > { %v2982_v11 = vpop.f32.mrf.mxu3 }
 0x88e   : > { %v2985_v12 = vadd.f32 %v2982_v11, %v2936_v10  ;;  %v5574_v10 = vld [vmem:[%s6311_s11 + $0xa8] sm:$0xff]  }
 0x88f   : > { %v5582_v11 = vld [vmem:[%s6311_s11 + $0xe8] sm:$0xff]   ;;  %v5128_v27 = vunpack.c.l.bf16 %v5574_v10 }
 0x890   : > { %v2986_v13 = vadd.f32 %v2985_v12, %v6518_v33  ;;  %v3044_v33 = vunpack.c.l.bf16 %v3030_v20  ;;  %v5557_v12 = vld [vmem:[%s6311_s11 + $0x20] sm:$0xff]   ;;  %v5161_v20 = vunpack.c.h.bf16 %v5582_v11 }
 0x891   : > { %v5061_v21 = vunpack.c.h.bf16 %v5557_v12  ;;  %v5060_v30 = vunpack.c.l.bf16 %v5557_v12 }
 0x892   : > { %v2987_v14 = vsel %vm1533_vm2, %v2986_v13, 0.0  ;;  %3201 = vmatpush.msra.mxu0 %v3044_v33 }
 0x893   : > { %2988 = vadd.xlane.f32.xlu0 %v2987_v14  ;;  %v5132_v14 = vunpack.c.l.bf16 %v5575_v61  ;;  %v5049_v61 = vunpack.c.h.bf16 %v5554_v54 }
 0x894   : > { %3202 = vmatpush.msra.mxu0 %v3040_v28  ;;  %v5160_v28 = vunpack.c.l.bf16 %v5582_v11  ;;  %v5045_v11 = vunpack.c.h.bf16 %v5043_v9 }
 0x895   : > { %3316 = vmatpush.msrb.mxu2 %v5132_v14 }
 0x896   : > { %3203 = vmatpush.msra.mxu0 %v3036_v35  ;;  %v5157_v35 = vunpack.c.h.bf16 %v5581_v23 }
 0x898   : > { %3204 = vmatpush.msra.mxu0 %v3032_v41  ;;  %v5555_v41 = vld [vmem:[%s6311_s11 + $0x10] sm:$0xff]  }
 0x89a   : > { %3273 = vmatpush.msrb.mxu0 %v5073_v49  ;;  %v5121_v49 = vunpack.c.h.bf16 %v5572_v38 }
 0x89c   : > { %3274 = vmatpush.msrb.mxu0 %v5072_v51  ;;  %v5053_v51 = vunpack.c.h.bf16 %v5555_v41 }
 0x89e   : > { %3275 = vmatpush.msrb.mxu0 %v5069_v57  ;;  %v5152_v57 = vunpack.c.l.bf16 %v5580_v39 }
 0x8a0   : > { %3276 = vmatpush.msrb.mxu0 %v5068_v4  ;;  %v5579_v4 = vld [vmem:[%s6311_s11 + $0xd0] sm:$0xff]  }
 0x8a1   : > { %v5148_v14 = vunpack.c.l.bf16 %v5579_v4 }
 0x8a2   : > { %3277 = vmatpush.msrb.mxu0 %v5065_v8  ;;  %v5149_v8 = vunpack.c.h.bf16 %v5579_v4  ;;  %v5591_v4 = vld [vmem:[%s6311_s11 + $0x130] sm:$0xff]  }
 0x906   : > { %v2989_v15 = vpop.xlane.xlu0 %2988 }
 0x907   : > { %v2990_v16 = vmul.f32 %v2989_v15, %v6453_v36  ;;  %v5164_v15 = vunpack.c.l.bf16 %v5583_v62  ;;  %v5081_v62 = vunpack.c.h.bf16 %v5562_v55 }
 0x909   : > { %v6592_v17 = vsub.f32 %v2986_v13, %v2990_v16  ;;  %v5565_v13 = vld [vmem:[%s6311_s11 + $0x60] sm:$0xff]   ;;  %v5064_v16 = vunpack.c.l.bf16 %v5558_v63  ;;  %3336 = vmatpush.msrb.mxu3 %v5164_v15  ;;  %v5570_v15 = vld [vmem:[%s6311_s11 + $0x88] sm:$0xff]  }
 0x90a   : > { %v5093_v33 = vunpack.c.h.bf16 %v5565_v13  ;;  %v5092_v31 = vunpack.c.l.bf16 %v5565_v13  ;;  %v5112_v22 = vunpack.c.l.bf16 %v5570_v15 }
 0x90b   : > { %v2992_v18 = vmul.f32 %v6592_v17, %v6592_v17  ;;  %3278 = vmatpush.msrb.mxu0 %v5064_v16  ;;  %3337 = vmatpush.msrb.mxu3 %v5161_v20  ;;  %v5578_v16 = vld [vmem:[%s6311_s11 + $0xc8] sm:$0xff]   ;;  %v5113_v20 = vunpack.c.h.bf16 %v5570_v15 }
 0x90c   : > { %v5144_v23 = vunpack.c.l.bf16 %v5578_v16 }
 0x90d   : > { %v2993_v19 = vsel %vm1533_vm2, %v2992_v18, 0.0  ;;  %v5096_v18 = vunpack.c.l.bf16 %v5566_v0  ;;  %3279 = vmatpush.msrb.mxu0 %v5061_v21  ;;  %3338 = vmatpush.msrb.mxu3 %v5160_v28  ;;  %v5816_v0 = vld [vmem:[%s1477_s28] ss:$0 sm:$0xff]  ;;  %v5145_v21 = vunpack.c.h.bf16 %v5578_v16  ;;  %v5608_v16 = vld [vmem:[%s6311_s11 + $0x1b8] sm:$0xff]   ;;  %s7044_s28 = smov (!%p5026_p1), %s7043_s10 }
 0x90e   : > { %2994 = vadd.xlane.f32.xlu1 %v2993_v19  ;;  %v5129_v19 = vunpack.c.h.bf16 %v5574_v10  ;;  %v5561_v10 = vld [vmem:[%s6311_s11 + $0x40] sm:$0xff]  }
 0x90f   : > { %3298 = vmatpush.msrb.mxu1 %v5096_v18  ;;  %3280 = vmatpush.msrb.mxu0 %v5060_v30  ;;  %v5077_v12 = vunpack.c.h.bf16 %v5561_v10  ;;  %v5044_v18 = vunpack.c.l.bf16 %v5043_v9  ;;  %v5577_v28 = vld [vmem:[%s6311_s11 + $0xc0] sm:$0xff]  }
 0x910   : > { %3317 = vmatpush.msrb.mxu2 %v5129_v19  ;;  %3339 = vmatpush.msrb.mxu3 %v5157_v35  ;;  %v5076_v19 = vunpack.c.l.bf16 %v5561_v10  ;;  %v3356_v35 = vld [vmem:[%s6303_s8 + $0x50] sm:$0xff]  ;;  %v5197_v10 = vunpack.c.h.bf16 %v5591_v4 }
 0x911   : > { %3299 = vmatpush.msrb.mxu1 %v5093_v33  ;;  %3281 = vmatpush.msrb.mxu0 %v5057_v37  ;;  %v3360_v33 = vld [vmem:[%s6303_s8 + $0xd0] sm:$0xff]  ;;  %v3367_v39 = vunpack.c.h.bf16 %v3356_v35 }
 0x912   : > { %3318 = vmatpush.msrb.mxu2 %v5128_v27  ;;  %3340 = vmatpush.msrb.mxu3 %v5156_v44  ;;  %v3374_v25 = vunpack.c.l.bf16 %v3360_v33  ;;  %v3375_v26 = vunpack.c.h.bf16 %v3360_v33  ;;  %v5569_v27 = vld [vmem:[%s6311_s11 + $0x80] sm:$0xff]  }
 0x913   : > { %3300 = vmatpush.msrb.mxu1 %v5092_v31  ;;  %3282 = vmatpush.msrb.mxu0 %v5056_v46  ;;  %v5109_v30 = vunpack.c.h.bf16 %v5569_v27  ;;  %v5141_v31 = vunpack.c.h.bf16 %v5577_v28  ;;  %v5108_v37 = vunpack.c.l.bf16 %v5569_v27 }
 0x914   : > { %3319 = vmatpush.msrb.mxu2 %v5125_v34  ;;  %3341 = vmatpush.msrb.mxu3 %v5153_v50  ;;  %v3357_v50 = vld [vmem:[%s6303_s8 + $0x58] sm:$0xff] }
 0x915   : > { %3301 = vmatpush.msrb.mxu1 %v5089_v24  ;;  %3283 = vmatpush.msrb.mxu0 %v5053_v51  ;;  %v5140_v24 = vunpack.c.l.bf16 %v5577_v28  ;;  %v3355_v51 = vld [vmem:[%s6303_s8 + $0x18] sm:$0xff] }
 0x916   : > { %3320 = vmatpush.msrb.mxu2 %v5124_v43  ;;  %3342 = vmatpush.msrb.mxu3 %v5152_v57  ;;  %v3364_v54 = vunpack.c.l.bf16 %v3355_v51  ;;  %v3365_v55 = vunpack.c.h.bf16 %v3355_v51 }
 0x917   : > { %3302 = vmatpush.msrb.mxu1 %v5088_v47  ;;  %v3359_v47 = vld [vmem:[%s6303_s8 + $0x98] sm:$0xff] }
 0x918   : > { %3321 = vmatpush.msrb.mxu2 %v5121_v49  ;;  %3343 = vmatpush.msrb.mxu3 %v5149_v8  ;;  %v3373_v49 = vunpack.c.h.bf16 %v3359_v47 }
 0x919   : > { %3303 = vmatpush.msrb.mxu1 %v5085_v52  ;;  %v3368_v52 = vunpack.c.l.bf16 %v3357_v50 }
 0x91a   : > { %3344 = vmatpush.msrb.mxu3 %v5148_v14 }
 0x91b   : > { %3304 = vmatpush.msrb.mxu1 %v5084_v59  ;;  %v5592_v59 = vld [vmem:[%s6311_s11 + $0x138] sm:$0xff]  }
 0x91c   : > { %3345 = vmatpush.msrb.mxu3 %v5145_v21  ;;  %v5200_v8 = vunpack.c.l.bf16 %v5592_v59 }
 0x91d   : > { %3305 = vmatpush.msrb.mxu1 %v5081_v62 }
 0x91e   : > { %3346 = vmatpush.msrb.mxu3 %v5144_v23 }
 0x91f   : > { %3306 = vmatpush.msrb.mxu1 %v5080_v6 }
 0x920   : > { %3347 = vmatpush.msrb.mxu3 %v5141_v31  ;;  %v5264_v31 = vunpack.c.l.bf16 %v5608_v16 }
 0x921   : > { %3307 = vmatpush.msrb.mxu1 %v5077_v12 }
 0x922   : > { %3348 = vmatpush.msrb.mxu3 %v5140_v24  ;;  %v5597_v24 = vld [vmem:[%s6311_s11 + $0x160] sm:$0xff]  }
 0x923   : > { %3308 = vmatpush.msrb.mxu1 %v5076_v19  ;;  %v5590_v19 = vld [vmem:[%s6311_s11 + $0x128] sm:$0xff]  }
 0x924   : > { %v5193_v27 = vunpack.c.h.bf16 %v5590_v19 }
 0x981   : > { %v2995_v56 = vpop.xlane.xlu1 %2994 }
 0x982   : > { %v2996_v58 = vmul.f32 %v2995_v56, %v6453_v36  ;;  %v5120_v56 = vunpack.c.l.bf16 %v5572_v38  ;;  %v3366_v38 = vunpack.c.l.bf16 %v3356_v35 }
 0x984   : > { %v6616_v3 = vadd.f32 1e-05, %v2996_v58  ;;  %v5052_v58 = vunpack.c.l.bf16 %v5555_v41  ;;  %3322 = vmatpush.msrb.mxu2 %v5120_v56  ;;  %v3361_v41 = vld [vmem:[%s6303_s8 + $0xd8] sm:$0xff]  ;;  %v3048_v56 = vld [vmem:[%s6307_s30] sm:$0xf] }
 0x985   : > { %v3376_v44 = vunpack.c.l.bf16 %v3361_v41  ;;  %v3377_v46 = vunpack.c.h.bf16 %v3361_v41  ;;  %v3178_v57 = vperm.slane %v3048_v56, 0  ;;  %v3180_v6 = vperm.slane %v3048_v56, 2 }
 0x986   : > { %5856 = vrsqrt.f32 %v6616_v3  ;;  %vm3004_vm9 = vweird.f32 %v6616_v3  ;;  %3284 = vmatpush.msrb.mxu0 %v5052_v58  ;;  %v3179_v58 = vperm.slane %v3048_v56, 1  ;;  %v5221_v41 = vunpack.c.h.bf16 %v5597_v24 }
 0x988   : > { %3285 = vmatpush.msrb.mxu0 %v5049_v61 }
 0x98a   : > { %3286 = vmatpush.msrb.mxu0 %v5048_v5  ;;  %v5599_v5 = vld [vmem:[%s6311_s11 + $0x170] sm:$0xff]  }
 0x98b   : > { %v5228_v23 = vunpack.c.l.bf16 %v5599_v5 }
 0x98c   : > { %v6627_v29 = vpop.eup %5856  ;;  %3287 = vmatpush.msrb.mxu0 %v5045_v11  ;;  %v5229_v11 = vunpack.c.h.bf16 %v5599_v5 }
 0x98d   : > { %v2999_v32 = vmul.f32 %v6627_v29, %v6616_v3  ;;  %vm3005_vm8 = vweird.f32 %v6627_v29 }
 0x98e   : > { %vm3006_vm10 = vmor %vm3004_vm9, %vm3005_vm8  ;;  %3288 = vmatpush.msrb.mxu0 %v5044_v18  ;;  %v5616_v18 = vld [vmem:[%s6311_s11 + $0x1f8] sm:$0xff]  }
 0x98f   : > { %v3000_v40 = vmul.f32 %v6627_v29, %v2999_v32 }
 0x991   : > { %v3001_v48 = vmul.f32 0.5, %v3000_v40  ;;  %v3354_v40 = vld [vmem:[%s6303_s8 + $0x10] sm:$0xff] }
 0x992   : > { %v3362_v42 = vunpack.c.l.bf16 %v3354_v40  ;;  %v3363_v43 = vunpack.c.h.bf16 %v3354_v40 }
 0x993   : > { %v3002_v53 = vsub.f32 1.5, %v3001_v48  ;;  %v3372_v48 = vunpack.c.l.bf16 %v3359_v47 }
 0x995   : > { %v3003_v60 = vmul.f32 %v6627_v29, %v3002_v53  ;;  %v3369_v53 = vunpack.c.h.bf16 %v3357_v50 }
 0x997   : > { %v3007_v63 = vsel %vm3006_vm10, %v6627_v29, %v3003_v60  ;;  %v3358_v29 = vld [vmem:[%s6303_s8 + $0x90] sm:$0xff]  ;;  %v5600_v60 = vld [vmem:[%s6311_s11 + $0x178] sm:$0xff]  }
 0x998   : > { %v3008_v1 = vmul.f32 %v3007_v63, %v6592_v17  ;;  %v5571_v17 = vld [vmem:[%s6311_s11 + $0x90] sm:$0xff]   ;;  %v3370_v32 = vunpack.c.l.bf16 %v3358_v29  ;;  %v3371_v34 = vunpack.c.h.bf16 %v3358_v29  ;;  %v5232_v9 = vunpack.c.l.bf16 %v5600_v60 }
 0x999   : > { %v5117_v7 = vunpack.c.h.bf16 %v5571_v17  ;;  %v5116_v13 = vunpack.c.l.bf16 %v5571_v17  ;;  %v5607_v29 = vld [vmem:[%s6311_s11 + $0x1b0] sm:$0xff]  }
 0x99a   : > { %v3013_v2 = vmul.f32 %v5815_v45, %v3008_v1  ;;  %v5233_v1 = vunpack.c.h.bf16 %v5600_v60  ;;  %v5260_v51 = vunpack.c.l.bf16 %v5607_v29 }
 0x99b   : > { %3323 = vmatpush.msrb.mxu2 %v5117_v7  ;;  %v3181_v7 = vperm.slane %v3048_v56, 3 }
 0x99c   : > { %v6651_v3 = vadd.f32 %v5816_v0, %v3013_v2  ;;  %v5201_v0 = vunpack.c.h.bf16 %v5592_v59  ;;  %v5614_v59 = vld [vmem:[%s6311_s11 + $0x1e8] sm:$0xff]  }
 0x99d   : > { %3324 = vmatpush.msrb.mxu2 %v5116_v13 }
 0x99e   : > { %5010 = vmatmul.msk.f32.vlgmr.msra.gmra.mxu0 %vm1533_vm2, %v6651_v3  ;;  %5011 = vmatmul.msk.f32.vlgmr.msra.gmra.mxu1 %vm1533_vm2, %v6651_v3 }
 0x99f   : > { %5012 = vmatmul.msk.f32.vlgmr.msra.gmra.mxu2 %vm1533_vm2, %v6651_v3  ;;  %5013 = vmatmul.msk.f32.vlgmr.msra.gmra.mxu3 %vm1533_vm2, %v6651_v3 }
 0x9a0   : > { %3325 = vmatpush.msrb.mxu2 %v5113_v20  ;;  %3528 = vmatpush.msra.mxu0 %v3374_v25  ;;  %v5598_v20 = vld [vmem:[%s6311_s11 + $0x168] sm:$0xff]   ;;  %v5265_v25 = vunpack.c.h.bf16 %v5608_v16 }
 0x9a1   : > { %3548 = vmatpush.msra.mxu1 %v3375_v26  ;;  %3588 = vmatpush.msra.mxu3 %v3377_v46  ;;  %v5297_v26 = vunpack.c.h.bf16 %v5616_v18  ;;  %v5225_v28 = vunpack.c.h.bf16 %v5598_v20  ;;  %v5224_v35 = vunpack.c.l.bf16 %v5598_v20  ;;  %v5220_v46 = vunpack.c.l.bf16 %v5597_v24 }
 0x9a2   : > { %3326 = vmatpush.msrb.mxu2 %v5112_v22  ;;  %3529 = vmatpush.msra.mxu0 %v3370_v32  ;;  %v5196_v22 = vunpack.c.l.bf16 %v5591_v4  ;;  %v5296_v32 = vunpack.c.l.bf16 %v5616_v18 }
 0x9a3   : > { %3549 = vmatpush.msra.mxu1 %v3371_v34  ;;  %3589 = vmatpush.msra.mxu3 %v3373_v49  ;;  %v5192_v34 = vunpack.c.l.bf16 %v5590_v19  ;;  %v5612_v19 = vld [vmem:[%s6311_s11 + $0x1d8] sm:$0xff]  }
 0x9a4   : > { %3327 = vmatpush.msrb.mxu2 %v5109_v30  ;;  %3530 = vmatpush.msra.mxu0 %v3366_v38  ;;  %v5615_v30 = vld [vmem:[%s6311_s11 + $0x1f0] sm:$0xff]   ;;  %v5261_v38 = vunpack.c.h.bf16 %v5607_v29  ;;  %v5281_v20 = vunpack.c.h.bf16 %v5612_v19 }
 0x9a5   : > { %3550 = vmatpush.msra.mxu1 %v3367_v39  ;;  %3590 = vmatpush.msra.mxu3 %v3369_v53  ;;  %v5293_v39 = vunpack.c.h.bf16 %v5615_v30  ;;  %v5587_v53 = vld [vmem:[%s6311_s11 + $0x110] sm:$0xff]  }
 0x9a6   : > { %3328 = vmatpush.msrb.mxu2 %v5108_v37  ;;  %3531 = vmatpush.msra.mxu0 %v3362_v42  ;;  %v5589_v37 = vld [vmem:[%s6311_s11 + $0x120] sm:$0xff]   ;;  %v5588_v42 = vld [vmem:[%s6311_s11 + $0x118] sm:$0xff]   ;;  %v5181_v56 = vunpack.c.h.bf16 %v5587_v53  ;;  %v5180_v60 = vunpack.c.l.bf16 %v5587_v53 }
 0x9a7   : > { %3551 = vmatpush.msra.mxu1 %v3363_v43  ;;  %3591 = vmatpush.msra.mxu3 %v3365_v55  ;;  %v5189_v40 = vunpack.c.h.bf16 %v5589_v37  ;;  %v5596_v43 = vld [vmem:[%s6311_s11 + $0x158] sm:$0xff]   ;;  %v5185_v47 = vunpack.c.h.bf16 %v5588_v42  ;;  %v5184_v49 = vunpack.c.l.bf16 %v5588_v42  ;;  %v5606_v55 = vld [vmem:[%s6311_s11 + $0x1a8] sm:$0xff]  }
 0x9a8   : > { %3568 = vmatpush.msra.mxu2 %v3376_v44  ;;  %v5188_v44 = vunpack.c.l.bf16 %v5589_v37  ;;  %v5216_v50 = vunpack.c.l.bf16 %v5596_v43 }
 0x9aa   : > { %3569 = vmatpush.msra.mxu2 %v3372_v48  ;;  %v5217_v48 = vunpack.c.h.bf16 %v5596_v43 }
 0x9ac   : > { %3570 = vmatpush.msra.mxu2 %v3368_v52  ;;  %v5292_v52 = vunpack.c.l.bf16 %v5615_v30 }
 0x9ae   : > { %3571 = vmatpush.msra.mxu2 %v3364_v54  ;;  %v5595_v54 = vld [vmem:[%s6311_s11 + $0x150] sm:$0xff]  }
 0xa1b   : > { %v3206_v45 = vpop.f32.mrf.mxu0  ;;  %v3226_v61 = vpop.f32.mrf.mxu1 }
 0xa1c   : > { %v3207_v62 = vadd.f32 %v3206_v45, %v3178_v57  ;;  %v3227_v63 = vadd.f32 %v3226_v61, %v3179_v58  ;;  %v5213_v57 = vunpack.c.h.bf16 %v5595_v54  ;;  %v5257_v58 = vunpack.c.h.bf16 %v5606_v55  ;;  %v5586_v45 = vld [vmem:[%s6311_s11 + $0x108] sm:$0xff]  }
 0xa1d   : > { %v5594_v61 = vld [vmem:[%s6311_s11 + $0x148] sm:$0xff]   ;;  %v5177_v4 = vunpack.c.h.bf16 %v5586_v45 }
 0xa1e   : > { %v3269_v2 = vmax.f32 %v3207_v62, 0.0  ;;  %v3270_v17 = vmax.f32 %v3227_v63, 0.0  ;;  %v5289_v62 = vunpack.c.h.bf16 %v5614_v59  ;;  %v5212_v63 = vunpack.c.l.bf16 %v5595_v54 }
 0xa1f   : > { %v5209_v5 = vunpack.c.h.bf16 %v5594_v61 }
 0xa20   : > { %3289 = vmatmul.f32.vlgmr.msrb.gmra.mxu0 %v3269_v2  ;;  %3309 = vmatmul.f32.vlgmr.msrb.gmra.mxu1 %v3270_v17  ;;  %v5605_v2 = vld [vmem:[%s6311_s11 + $0x1a0] sm:$0xff]  }
 0xa21   : > { %3600 = vmatpush.msrb.mxu0 %v5201_v0  ;;  %3620 = vmatpush.msrb.mxu1 %v5233_v1  ;;  %v5256_v0 = vunpack.c.l.bf16 %v5606_v55  ;;  %v5288_v1 = vunpack.c.l.bf16 %v5614_v59  ;;  %v5613_v17 = vld [vmem:[%s6311_s11 + $0x1e0] sm:$0xff]  }
 0xa22   : > { %v3246_v12 = vpop.f32.mrf.mxu2  ;;  %v3266_v13 = vpop.f32.mrf.mxu3 }
 0xa23   : > { %v3247_v14 = vadd.f32 %v3246_v12, %v3180_v6  ;;  %v3267_v15 = vadd.f32 %v3266_v13, %v3181_v7  ;;  %3601 = vmatpush.msrb.mxu0 %v5200_v8  ;;  %3621 = vmatpush.msrb.mxu1 %v5232_v9  ;;  %v5253_v6 = vunpack.c.h.bf16 %v5605_v2  ;;  %v5285_v7 = vunpack.c.h.bf16 %v5613_v17  ;;  %v5585_v12 = vld [vmem:[%s6311_s11 + $0x100] sm:$0xff]  }
 0xa24   : > { %v5176_v8 = vunpack.c.l.bf16 %v5586_v45  ;;  %v5208_v9 = vunpack.c.l.bf16 %v5594_v61  ;;  %v5593_v13 = vld [vmem:[%s6311_s11 + $0x140] sm:$0xff]   ;;  %v3684_v45 = vld [vmem:[%s6303_s8 + $0x68] sm:$0xff] }
 0xa25   : > { %v3271_v21 = vmax.f32 %v3247_v14, 0.0  ;;  %v3272_v33 = vmax.f32 %v3267_v15, 0.0  ;;  %3602 = vmatpush.msrb.mxu0 %v5197_v10  ;;  %3622 = vmatpush.msrb.mxu1 %v5229_v11  ;;  %v5252_v10 = vunpack.c.l.bf16 %v5605_v2  ;;  %v5284_v11 = vunpack.c.l.bf16 %v5613_v17  ;;  %v5604_v14 = vld [vmem:[%s6311_s11 + $0x198] sm:$0xff]   ;;  %v3682_v61 = vld [vmem:[%s6303_s8 + $0x28] sm:$0xff] }
 0xa26   : > { %v5173_v15 = vunpack.c.h.bf16 %v5585_v12  ;;  %v5205_v16 = vunpack.c.h.bf16 %v5593_v13  ;;  %v5249_v18 = vunpack.c.h.bf16 %v5604_v14  ;;  %v3691_v2 = vunpack.c.l.bf16 %v3682_v61 }
 0xa27   : > { %3329 = vmatmul.f32.vlgmr.msrb.gmra.mxu2 %v3271_v21  ;;  %3349 = vmatmul.f32.vlgmr.msrb.gmra.mxu3 %v3272_v33  ;;  %v5172_v21 = vunpack.c.l.bf16 %v5585_v12  ;;  %v5204_v33 = vunpack.c.l.bf16 %v5593_v13  ;;  %v3692_v17 = vunpack.c.h.bf16 %v3682_v61 }
 0xa28   : > { %5014 = vmatmul.msk.f32.vlgmr.msra.gmra.mxu0 %vm1533_vm2, %v6651_v3  ;;  %5015 = vmatmul.msk.f32.vlgmr.msra.gmra.mxu1 %vm1533_vm2, %v6651_v3 }
 0xa29   : > { %3603 = vmatpush.msrb.mxu0 %v5196_v22  ;;  %3623 = vmatpush.msrb.mxu1 %v5228_v23  ;;  %v5248_v22 = vunpack.c.l.bf16 %v5604_v14  ;;  %v5280_v23 = vunpack.c.l.bf16 %v5612_v19 }
 0xa2a   : > { %3640 = vmatpush.msrb.mxu2 %v5265_v25  ;;  %3660 = vmatpush.msrb.mxu3 %v5297_v26  ;;  %v5603_v25 = vld [vmem:[%s6311_s11 + $0x190] sm:$0xff]  }
 0xa2b   : > { %3604 = vmatpush.msrb.mxu0 %v5193_v27  ;;  %3624 = vmatpush.msrb.mxu1 %v5225_v28  ;;  %v5611_v26 = vld [vmem:[%s6311_s11 + $0x1d0] sm:$0xff]   ;;  %v3687_v27 = vld [vmem:[%s6303_s8 + $0xe0] sm:$0xff]  ;;  %v5245_v28 = vunpack.c.h.bf16 %v5603_v25 }
 0xa2c   : > { %3641 = vmatpush.msrb.mxu2 %v5264_v31  ;;  %3661 = vmatpush.msrb.mxu3 %v5296_v32  ;;  %v5277_v29 = vunpack.c.h.bf16 %v5611_v26  ;;  %v3701_v30 = vunpack.c.l.bf16 %v3687_v27  ;;  %v3702_v31 = vunpack.c.h.bf16 %v3687_v27  ;;  %v3685_v32 = vld [vmem:[%s6303_s8 + $0xa0] sm:$0xff] }
 0xa2d   : > { %3605 = vmatpush.msrb.mxu0 %v5192_v34  ;;  %3625 = vmatpush.msrb.mxu1 %v5224_v35  ;;  %v5244_v34 = vunpack.c.l.bf16 %v5603_v25  ;;  %v5276_v35 = vunpack.c.l.bf16 %v5611_v26  ;;  %v3697_v37 = vunpack.c.l.bf16 %v3685_v32  ;;  %v3698_v24 = vunpack.c.h.bf16 %v3685_v32 }
 0xa2e   : > { %3642 = vmatpush.msrb.mxu2 %v5261_v38  ;;  %3662 = vmatpush.msrb.mxu3 %v5293_v39  ;;  %v5602_v38 = vld [vmem:[%s6311_s11 + $0x188] sm:$0xff]  }
 0xa2f   : > { %5016 = vmatmul.msk.f32.vlgmr.msra.gmra.mxu2 %vm1533_vm2, %v6651_v3  ;;  %5017 = vmatmul.msk.f32.vlgmr.msra.gmra.mxu3 %vm1533_vm2, %v6651_v3  ;;  %v5610_v39 = vld [vmem:[%s6311_s11 + $0x1c8] sm:$0xff]  }
 0xa30   : > { %3606 = vmatpush.msrb.mxu0 %v5189_v40  ;;  %3626 = vmatpush.msrb.mxu1 %v5221_v41  ;;  %v3683_v40 = vld [vmem:[%s6303_s8 + $0x60] sm:$0xff]  ;;  %v5241_v41 = vunpack.c.h.bf16 %v5602_v38  ;;  %v5273_v42 = vunpack.c.h.bf16 %v5610_v39 }
 0xa31   : > { %3643 = vmatpush.msrb.mxu2 %v5260_v51  ;;  %3663 = vmatpush.msrb.mxu3 %v5292_v52  ;;  %v3693_v43 = vunpack.c.l.bf16 %v3683_v40  ;;  %v5601_v51 = vld [vmem:[%s6311_s11 + $0x180] sm:$0xff]  }
 0xa32   : > { %3607 = vmatpush.msrb.mxu0 %v5188_v44  ;;  %3627 = vmatpush.msrb.mxu1 %v5220_v46  ;;  %v3694_v44 = vunpack.c.h.bf16 %v3683_v40  ;;  %v3681_v46 = vld [vmem:[%s6303_s8 + $0x20] sm:$0xff]  ;;  %v5237_v53 = vunpack.c.h.bf16 %v5601_v51  ;;  %v5236_v55 = vunpack.c.l.bf16 %v5601_v51 }
 0xa33   : > { %3644 = vmatpush.msrb.mxu2 %v5257_v58  ;;  %3664 = vmatpush.msrb.mxu3 %v5289_v62  ;;  %v5609_v52 = vld [vmem:[%s6311_s11 + $0x1c0] sm:$0xff]  }
 0xa34   : > { %3608 = vmatpush.msrb.mxu0 %v5185_v47  ;;  %3628 = vmatpush.msrb.mxu1 %v5217_v48  ;;  %v5240_v47 = vunpack.c.l.bf16 %v5602_v38  ;;  %v5272_v48 = vunpack.c.l.bf16 %v5610_v39  ;;  %v5269_v54 = vunpack.c.h.bf16 %v5609_v52 }
 0xa35   : > { %3645 = vmatpush.msrb.mxu2 %v5256_v0  ;;  %3665 = vmatpush.msrb.mxu3 %v5288_v1  ;;  %v3695_v0 = vunpack.c.l.bf16 %v3684_v45  ;;  %v3696_v1 = vunpack.c.h.bf16 %v3684_v45 }
 0xa36   : > { %3609 = vmatpush.msrb.mxu0 %v5184_v49  ;;  %3629 = vmatpush.msrb.mxu1 %v5216_v50  ;;  %v3689_v49 = vunpack.c.l.bf16 %v3681_v46  ;;  %v3690_v50 = vunpack.c.h.bf16 %v3681_v46 }
 0xa37   : > { %3646 = vmatpush.msrb.mxu2 %v5253_v6  ;;  %3666 = vmatpush.msrb.mxu3 %v5285_v7  ;;  %v3378_v7 = vld [vmem:[%s6307_s30 + $0x4] sm:$0xf] }
 0xa38   : > { %3610 = vmatpush.msrb.mxu0 %v5181_v56  ;;  %3630 = vmatpush.msrb.mxu1 %v5213_v57  ;;  %v5268_v56 = vunpack.c.l.bf16 %v5609_v52  ;;  %v3688_v57 = vld [vmem:[%s6303_s8 + $0xe8] sm:$0xff] }
 0xa39   : > { %3647 = vmatpush.msrb.mxu2 %v5252_v10  ;;  %3667 = vmatpush.msrb.mxu3 %v5284_v11  ;;  %v3703_v58 = vunpack.c.l.bf16 %v3688_v57  ;;  %v3704_v59 = vunpack.c.h.bf16 %v3688_v57  ;;  %v5624_v10 = vld [vmem:[%s6311_s11 + $0x238] sm:$0xff]  }
 0xa3a   : > { %3611 = vmatpush.msrb.mxu0 %v5180_v60  ;;  %3631 = vmatpush.msrb.mxu1 %v5212_v63  ;;  %v3686_v60 = vld [vmem:[%s6303_s8 + $0xa8] sm:$0xff]  ;;  %v5632_v11 = vld [vmem:[%s6311_s11 + $0x278] sm:$0xff]  }
 0xa3b   : > { %3648 = vmatpush.msrb.mxu2 %v5249_v18  ;;  %3668 = vmatpush.msrb.mxu3 %v5281_v20  ;;  %v3699_v62 = vunpack.c.l.bf16 %v3686_v60  ;;  %v3700_v63 = vunpack.c.h.bf16 %v3686_v60  ;;  %v5361_v18 = vunpack.c.h.bf16 %v5632_v11  ;;  %v5648_v60 = vld [vmem:[%s6311_s11 + $0x2f8] sm:$0xff]  }
 0xa3c   : > { %3612 = vmatpush.msrb.mxu0 %v5177_v4  ;;  %3632 = vmatpush.msrb.mxu1 %v5209_v5 }
 0xa3d   : > { %3649 = vmatpush.msrb.mxu2 %v5248_v22  ;;  %3669 = vmatpush.msrb.mxu3 %v5280_v23  ;;  %v5328_v22 = vunpack.c.l.bf16 %v5624_v10  ;;  %v5360_v23 = vunpack.c.l.bf16 %v5632_v11 }
 0xa3e   : > { %3613 = vmatpush.msrb.mxu0 %v5176_v8  ;;  %3633 = vmatpush.msrb.mxu1 %v5208_v9  ;;  %v3508_v8 = vperm.slane %v3378_v7, 0  ;;  %v3509_v9 = vperm.slane %v3378_v7, 1 }
 0xa3f   : > { %3650 = vmatpush.msrb.mxu2 %v5245_v28  ;;  %3670 = vmatpush.msrb.mxu3 %v5277_v29 }
 0xa40   : > { %3614 = vmatpush.msrb.mxu0 %v5173_v15  ;;  %3634 = vmatpush.msrb.mxu1 %v5205_v16  ;;  %v5329_v16 = vunpack.c.h.bf16 %v5624_v10 }
 0xa41   : > { %3651 = vmatpush.msrb.mxu2 %v5244_v34  ;;  %3671 = vmatpush.msrb.mxu3 %v5276_v35 }
 0xa42   : > { %3615 = vmatpush.msrb.mxu0 %v5172_v21  ;;  %3635 = vmatpush.msrb.mxu1 %v5204_v33  ;;  %v5623_v21 = vld [vmem:[%s6311_s11 + $0x230] sm:$0xff]  }
 0xa43   : > { %3652 = vmatpush.msrb.mxu2 %v5241_v41  ;;  %3672 = vmatpush.msrb.mxu3 %v5273_v42  ;;  %v5631_v33 = vld [vmem:[%s6311_s11 + $0x270] sm:$0xff]   ;;  %v5325_v28 = vunpack.c.h.bf16 %v5623_v21  ;;  %v5324_v34 = vunpack.c.l.bf16 %v5623_v21  ;;  %v5621_v42 = vld [vmem:[%s6311_s11 + $0x220] sm:$0xff]  }
 0xa44   : > { %3855 = vmatpush.msra.mxu0 %v3701_v30  ;;  %3875 = vmatpush.msra.mxu1 %v3702_v31  ;;  %v5357_v29 = vunpack.c.h.bf16 %v5631_v33  ;;  %v5622_v30 = vld [vmem:[%s6311_s11 + $0x228] sm:$0xff]   ;;  %v5356_v35 = vunpack.c.l.bf16 %v5631_v33 }
 0xa45   : > { %3653 = vmatpush.msrb.mxu2 %v5240_v47  ;;  %3673 = vmatpush.msrb.mxu3 %v5272_v48  ;;  %v5630_v31 = vld [vmem:[%s6311_s11 + $0x268] sm:$0xff]   ;;  %v5321_v38 = vunpack.c.h.bf16 %v5622_v30  ;;  %v5320_v40 = vunpack.c.l.bf16 %v5622_v30 }
 0xa46   : > { %3856 = vmatpush.msra.mxu0 %v3697_v37  ;;  %3876 = vmatpush.msra.mxu1 %v3698_v24  ;;  %v3510_v37 = vperm.slane %v3378_v7, 2  ;;  %v3511_v24 = vperm.slane %v3378_v7, 3  ;;  %v5353_v39 = vunpack.c.h.bf16 %v5630_v31  ;;  %v5352_v41 = vunpack.c.l.bf16 %v5630_v31  ;;  %v5647_v7 = vld [vmem:[%s6311_s11 + $0x2f0] sm:$0xff]   ;;  %v5637_v31 = vld [vmem:[%s6311_s11 + $0x2a0] sm:$0xff]  }
 0xa47   : > { %3654 = vmatpush.msrb.mxu2 %v5237_v53  ;;  %3674 = vmatpush.msrb.mxu3 %v5269_v54  ;;  %v5620_v53 = vld [vmem:[%s6311_s11 + $0x218] sm:$0xff]  }
 0xa48   : > { %3857 = vmatpush.msra.mxu0 %v3693_v43  ;;  %3877 = vmatpush.msra.mxu1 %v3694_v44  ;;  %v5629_v43 = vld [vmem:[%s6311_s11 + $0x260] sm:$0xff]   ;;  %v5628_v54 = vld [vmem:[%s6311_s11 + $0x258] sm:$0xff]   ;;  %v5313_v57 = vunpack.c.h.bf16 %v5620_v53  ;;  %v5312_v45 = vunpack.c.l.bf16 %v5620_v53 }
 0xa49   : > { %3655 = vmatpush.msrb.mxu2 %v5236_v55  ;;  %3675 = vmatpush.msrb.mxu3 %v5268_v56  ;;  %v5316_v55 = vunpack.c.l.bf16 %v5621_v42  ;;  %v5348_v56 = vunpack.c.l.bf16 %v5629_v43  ;;  %v5344_v61 = vunpack.c.l.bf16 %v5628_v54 }
 0xa4a   : > { %3858 = vmatpush.msra.mxu0 %v3689_v49  ;;  %3878 = vmatpush.msra.mxu1 %v3690_v50  ;;  %v5317_v49 = vunpack.c.h.bf16 %v5621_v42  ;;  %v5349_v50 = vunpack.c.h.bf16 %v5629_v43 }
 0xa4b   : > { %3895 = vmatpush.msra.mxu2 %v3703_v58  ;;  %3915 = vmatpush.msra.mxu3 %v3704_v59  ;;  %v5345_v58 = vunpack.c.h.bf16 %v5628_v54  ;;  %v5640_v59 = vld [vmem:[%s6311_s11 + $0x2b8] sm:$0xff]  }
 0xa4d   : > { %3896 = vmatpush.msra.mxu2 %v3699_v62  ;;  %3916 = vmatpush.msra.mxu3 %v3700_v63  ;;  %v5393_v62 = vunpack.c.h.bf16 %v5640_v59  ;;  %v5425_v63 = vunpack.c.h.bf16 %v5648_v60 }
 0xa4f   : > { %3897 = vmatpush.msra.mxu2 %v3695_v0  ;;  %3917 = vmatpush.msra.mxu3 %v3696_v1  ;;  %v5619_v0 = vld [vmem:[%s6311_s11 + $0x210] sm:$0xff]  }
 0xa50   : > { %v5627_v1 = vld [vmem:[%s6311_s11 + $0x250] sm:$0xff]  }
 0xa51   : > { %3898 = vmatpush.msra.mxu2 %v3691_v2  ;;  %3918 = vmatpush.msra.mxu3 %v3692_v17  ;;  %v5309_v2 = vunpack.c.h.bf16 %v5619_v0  ;;  %v5341_v17 = vunpack.c.h.bf16 %v5627_v1  ;;  %v5340_v10 = vunpack.c.l.bf16 %v5627_v1  ;;  %v5634_v1 = vld [vmem:[%s6311_s11 + $0x288] sm:$0xff]  }
 0xa9d   : > { %v3290_v4 = vpop.f32.mrf.mxu0  ;;  %v3310_v5 = vpop.f32.mrf.mxu1 }
 0xa9e   : > { %v3311_v6 = vadd.f32 %v3310_v5, %v3290_v4  ;;  %v5392_v4 = vunpack.c.l.bf16 %v5640_v59  ;;  %v5424_v5 = vunpack.c.l.bf16 %v5648_v60  ;;  %v4008_v59 = vld [vmem:[%s6303_s8 + $0x30] sm:$0xff] }
 0xaa5   : > { %v3533_v12 = vpop.f32.mrf.mxu0  ;;  %v3553_v13 = vpop.f32.mrf.mxu1 }
 0xaa6   : > { %v3534_v14 = vadd.f32 %v3533_v12, %v3508_v8  ;;  %v3554_v15 = vadd.f32 %v3553_v13, %v3509_v9  ;;  %v5618_v8 = vld [vmem:[%s6311_s11 + $0x208] sm:$0xff]   ;;  %v5308_v9 = vunpack.c.l.bf16 %v5619_v0  ;;  %v5421_v12 = vunpack.c.h.bf16 %v5647_v7 }
 0xaa7   : > { %v5626_v13 = vld [vmem:[%s6311_s11 + $0x248] sm:$0xff]   ;;  %v5304_v21 = vunpack.c.l.bf16 %v5618_v8 }
 0xaa8   : > { %v3596_v19 = vmax.f32 %v3534_v14, 0.0  ;;  %v3597_v20 = vmax.f32 %v3554_v15, 0.0  ;;  %v5305_v14 = vunpack.c.h.bf16 %v5618_v8  ;;  %v5337_v15 = vunpack.c.h.bf16 %v5626_v13  ;;  %v5641_v8 = vld [vmem:[%s6311_s11 + $0x2c0] sm:$0xff]  }
 0xaa9   : > { %v5336_v33 = vunpack.c.l.bf16 %v5626_v13  ;;  %v4015_v13 = vld [vmem:[%s6303_s8 + $0xf8] sm:$0xff] }
 0xaaa   : > { %v3330_v25 = vpop.f32.mrf.mxu2  ;;  %v3350_v26 = vpop.f32.mrf.mxu3  ;;  %3616 = vmatmul.f32.vlgmr.msrb.gmra.mxu0 %v3596_v19  ;;  %3636 = vmatmul.f32.vlgmr.msrb.gmra.mxu1 %v3597_v20  ;;  %v5638_v19 = vld [vmem:[%s6311_s11 + $0x2a8] sm:$0xff]  }
 0xaab   : > { %v3331_v27 = vadd.f32 %v3330_v25, %v3311_v6  ;;  %3927 = vmatpush.msrb.mxu0 %v5329_v16  ;;  %3947 = vmatpush.msrb.mxu1 %v5361_v18  ;;  %v5639_v6 = vld [vmem:[%s6311_s11 + $0x2b0] sm:$0xff]   ;;  %v5420_v18 = vunpack.c.l.bf16 %v5647_v7  ;;  %v5646_v20 = vld [vmem:[%s6311_s11 + $0x2e8] sm:$0xff]   ;;  %v5617_v25 = vld [vmem:[%s6311_s11 + $0x200] sm:$0xff]  }
 0xaac   : > { %v5389_v11 = vunpack.c.h.bf16 %v5639_v6  ;;  %v5388_v16 = vunpack.c.l.bf16 %v5639_v6  ;;  %v5416_v30 = vunpack.c.l.bf16 %v5646_v20  ;;  %v5633_v7 = vld [vmem:[%s6311_s11 + $0x280] sm:$0xff]  }
 0xaad   : > { %v6733_v32 = vadd.f32 %v3350_v26, %v3331_v27  ;;  %3928 = vmatpush.msrb.mxu0 %v5328_v22  ;;  %3948 = vmatpush.msrb.mxu1 %v5360_v23  ;;  %v5385_v22 = vunpack.c.h.bf16 %v5638_v19  ;;  %v5417_v23 = vunpack.c.h.bf16 %v5646_v20  ;;  %v5625_v26 = vld [vmem:[%s6311_s11 + $0x240] sm:$0xff]   ;;  %v5301_v27 = vunpack.c.h.bf16 %v5617_v25  ;;  %v4011_v20 = vld [vmem:[%s6303_s8 + $0x78] sm:$0xff] }
 0xaaf   : > { %3929 = vmatpush.msrb.mxu0 %v5325_v28  ;;  %3949 = vmatpush.msrb.mxu1 %v5357_v29  ;;  %v5333_v28 = vunpack.c.h.bf16 %v5625_v26  ;;  %v5384_v29 = vunpack.c.l.bf16 %v5638_v19  ;;  %v4013_v19 = vld [vmem:[%s6303_s8 + $0xb8] sm:$0xff] }
 0xab1   : > { %3930 = vmatpush.msrb.mxu0 %v5324_v34  ;;  %3950 = vmatpush.msrb.mxu1 %v5356_v35  ;;  %v5645_v34 = vld [vmem:[%s6311_s11 + $0x2e0] sm:$0xff]   ;;  %v5300_v35 = vunpack.c.l.bf16 %v5617_v25  ;;  %v4022_v25 = vunpack.c.l.bf16 %v4011_v20 }
 0xab2   : > { %v3573_v44 = vpop.f32.mrf.mxu2  ;;  %v3593_v46 = vpop.f32.mrf.mxu3  ;;  %5018 = vmatmul.msk.f32.vlgmr.msra.gmra.mxu0 %vm1533_vm2, %v6651_v3  ;;  %5019 = vmatmul.msk.f32.vlgmr.msra.gmra.mxu1 %vm1533_vm2, %v6651_v3 }
 0xab3   : > { %v3574_v47 = vadd.f32 %v3573_v44, %v3510_v37  ;;  %v3594_v48 = vadd.f32 %v3593_v46, %v3511_v24  ;;  %3931 = vmatpush.msrb.mxu0 %v5321_v38  ;;  %3951 = vmatpush.msrb.mxu1 %v5353_v39  ;;  %v5332_v37 = vunpack.c.l.bf16 %v5625_v26  ;;  %v5381_v24 = vunpack.c.h.bf16 %v5637_v31  ;;  %v4014_v39 = vld [vmem:[%s6303_s8 + $0xf0] sm:$0xff]  ;;  %v5636_v44 = vld [vmem:[%s6311_s11 + $0x298] sm:$0xff]   ;;  %v6778_v26 = vld [vmem:[%s6307_s30 + $0x8] sm:$0xf] }
 0xab4   : > { %v5413_v38 = vunpack.c.h.bf16 %v5645_v34  ;;  %v4028_v42 = vunpack.c.l.bf16 %v4014_v39  ;;  %v4029_v43 = vunpack.c.h.bf16 %v4014_v39  ;;  %v5644_v46 = vld [vmem:[%s6311_s11 + $0x2d8] sm:$0xff]   ;;  %v5376_v53 = vunpack.c.l.bf16 %v5636_v44 }
 0xab5   : > { %v3598_v51 = vmax.f32 %v3574_v47, 0.0  ;;  %v3599_v52 = vmax.f32 %v3594_v48, 0.0  ;;  %3932 = vmatpush.msrb.mxu0 %v5320_v40  ;;  %3952 = vmatpush.msrb.mxu1 %v5352_v41  ;;  %v5380_v40 = vunpack.c.l.bf16 %v5637_v31  ;;  %v5412_v41 = vunpack.c.l.bf16 %v5645_v34  ;;  %v4012_v47 = vld [vmem:[%s6303_s8 + $0xb0] sm:$0xff] }
 0xab6   : > { %v5377_v48 = vunpack.c.h.bf16 %v5636_v44  ;;  %v5408_v54 = vunpack.c.l.bf16 %v5644_v46  ;;  %v3836_v31 = vperm.slane %v6778_v26, 1  ;;  %v5655_v44 = vld [vmem:[%s6311_s11 + $0x330] sm:$0xff]  }
 0xab7   : > { %3656 = vmatmul.f32.vlgmr.msrb.gmra.mxu2 %v3598_v51  ;;  %3676 = vmatmul.f32.vlgmr.msrb.gmra.mxu3 %v3599_v52  ;;  %v4025_v51 = vunpack.c.h.bf16 %v4012_v47  ;;  %v4010_v52 = vld [vmem:[%s6303_s8 + $0x70] sm:$0xff] }
 0xab8   : > { %3933 = vmatpush.msrb.mxu0 %v5317_v49  ;;  %3953 = vmatpush.msrb.mxu1 %v5349_v50  ;;  %v5409_v49 = vunpack.c.h.bf16 %v5644_v46  ;;  %v4024_v50 = vunpack.c.l.bf16 %v4012_v47  ;;  %v5663_v46 = vld [vmem:[%s6311_s11 + $0x370] sm:$0xff]  }
 0xab9   : > { %3967 = vmatpush.msrb.mxu2 %v5393_v62  ;;  %3987 = vmatpush.msrb.mxu3 %v5425_v63  ;;  %v4017_v62 = vunpack.c.h.bf16 %v4008_v59 }
 0xaba   : > { %3934 = vmatpush.msrb.mxu0 %v5316_v55  ;;  %3954 = vmatpush.msrb.mxu1 %v5348_v56  ;;  %v4020_v55 = vunpack.c.l.bf16 %v4010_v52  ;;  %v4021_v56 = vunpack.c.h.bf16 %v4010_v52  ;;  %v5662_v52 = vld [vmem:[%s6311_s11 + $0x368] sm:$0xff]  }
 0xabb   : > { %3968 = vmatpush.msrb.mxu2 %v5392_v4  ;;  %3988 = vmatpush.msrb.mxu3 %v5424_v5  ;;  %v5368_v5 = vunpack.c.l.bf16 %v5634_v1 }
 0xabc   : > { %3935 = vmatpush.msrb.mxu0 %v5313_v57  ;;  %3955 = vmatpush.msrb.mxu1 %v5345_v58  ;;  %v5635_v57 = vld [vmem:[%s6311_s11 + $0x290] sm:$0xff]  }
 0xabd   : > { %3969 = vmatpush.msrb.mxu2 %v5389_v11  ;;  %3989 = vmatpush.msrb.mxu3 %v5421_v12  ;;  %v5643_v58 = vld [vmem:[%s6311_s11 + $0x2d0] sm:$0xff]   ;;  %v5373_v60 = vunpack.c.h.bf16 %v5635_v57  ;;  %v5372_v63 = vunpack.c.l.bf16 %v5635_v57  ;;  %v5364_v11 = vunpack.c.l.bf16 %v5633_v7  ;;  %v5396_v12 = vunpack.c.l.bf16 %v5641_v8 }
 0xabe   : > { %3936 = vmatpush.msrb.mxu0 %v5312_v45  ;;  %3956 = vmatpush.msrb.mxu1 %v5344_v61  ;;  %v5405_v45 = vunpack.c.h.bf16 %v5643_v58  ;;  %v4016_v61 = vunpack.c.l.bf16 %v4008_v59  ;;  %v5404_v0 = vunpack.c.l.bf16 %v5643_v58  ;;  %v5481_v57 = vunpack.c.h.bf16 %v5662_v52 }
 0xabf   : > { %5020 = vmatmul.msk.f32.vlgmr.msra.gmra.mxu2 %vm1533_vm2, %v6651_v3  ;;  %5021 = vmatmul.msk.f32.vlgmr.msra.gmra.mxu3 %vm1533_vm2, %v6651_v3 }
 0xac0   : > { %3937 = vmatpush.msrb.mxu0 %v5309_v2  ;;  %3957 = vmatpush.msrb.mxu1 %v5341_v17  ;;  %v5642_v2 = vld [vmem:[%s6311_s11 + $0x2c8] sm:$0xff]   ;;  %v5369_v17 = vunpack.c.h.bf16 %v5634_v1 }
 0xac1   : > { %3970 = vmatpush.msrb.mxu2 %v5388_v16  ;;  %3990 = vmatpush.msrb.mxu3 %v5420_v18  ;;  %v5401_v4 = vunpack.c.h.bf16 %v5642_v2  ;;  %v5400_v6 = vunpack.c.l.bf16 %v5642_v2 }
 0xac2   : > { %3938 = vmatpush.msrb.mxu0 %v5308_v9  ;;  %3958 = vmatpush.msrb.mxu1 %v5340_v10  ;;  %v5365_v9 = vunpack.c.h.bf16 %v5633_v7  ;;  %v5397_v10 = vunpack.c.h.bf16 %v5641_v8  ;;  %v5660_v7 = vld [vmem:[%s6311_s11 + $0x358] sm:$0xff]  }
 0xac3   : > { %3971 = vmatpush.msrb.mxu2 %v5385_v22  ;;  %3991 = vmatpush.msrb.mxu3 %v5417_v23  ;;  %v4026_v22 = vunpack.c.l.bf16 %v4013_v19  ;;  %v4027_v23 = vunpack.c.h.bf16 %v4013_v19 }
 0xac4   : > { %3939 = vmatpush.msrb.mxu0 %v5305_v14  ;;  %3959 = vmatpush.msrb.mxu1 %v5337_v15  ;;  %v4030_v14 = vunpack.c.l.bf16 %v4015_v13  ;;  %v4031_v15 = vunpack.c.h.bf16 %v4015_v13 }
 0xac5   : > { %3972 = vmatpush.msrb.mxu2 %v5384_v29  ;;  %3992 = vmatpush.msrb.mxu3 %v5416_v30  ;;  %v3835_v30 = vperm.slane %v6778_v26, 0 }
 0xac6   : > { %3940 = vmatpush.msrb.mxu0 %v5304_v21  ;;  %3960 = vmatpush.msrb.mxu1 %v5336_v33  ;;  %v4009_v21 = vld [vmem:[%s6303_s8 + $0x38] sm:$0xff] }
 0xac7   : > { %3973 = vmatpush.msrb.mxu2 %v5381_v24  ;;  %3993 = vmatpush.msrb.mxu3 %v5413_v38  ;;  %v4019_v29 = vunpack.c.h.bf16 %v4009_v21  ;;  %v5664_v24 = vld [vmem:[%s6311_s11 + $0x378] sm:$0xff]  }
 0xac8   : > { %3941 = vmatpush.msrb.mxu0 %v5301_v27  ;;  %3961 = vmatpush.msrb.mxu1 %v5333_v28  ;;  %v4023_v27 = vunpack.c.h.bf16 %v4011_v20  ;;  %v4018_v28 = vunpack.c.l.bf16 %v4009_v21  ;;  %v5472_v21 = vunpack.c.l.bf16 %v5660_v7 }
 0xac9   : > { %3974 = vmatpush.msrb.mxu2 %v5380_v40  ;;  %3994 = vmatpush.msrb.mxu3 %v5412_v41  ;;  %v5489_v41 = vunpack.c.h.bf16 %v5664_v24 }
 0xaca   : > { %3942 = vmatpush.msrb.mxu0 %v5300_v35  ;;  %3962 = vmatpush.msrb.mxu1 %v5332_v37  ;;  %v5656_v37 = vld [vmem:[%s6311_s11 + $0x338] sm:$0xff]  }
 0xacb   : > { %3975 = vmatpush.msrb.mxu2 %v5377_v48  ;;  %3995 = vmatpush.msrb.mxu3 %v5409_v49  ;;  %v5457_v40 = vunpack.c.h.bf16 %v5656_v37  ;;  %v5456_v47 = vunpack.c.l.bf16 %v5656_v37  ;;  %v5488_v48 = vunpack.c.l.bf16 %v5664_v24  ;;  %v5453_v49 = vunpack.c.h.bf16 %v5655_v44 }
 0xacc   : > { %4182 = vmatpush.msra.mxu0 %v4028_v42  ;;  %4202 = vmatpush.msra.mxu1 %v4029_v43 }
 0xacd   : > { %3976 = vmatpush.msrb.mxu2 %v5376_v53  ;;  %3996 = vmatpush.msrb.mxu3 %v5408_v54  ;;  %v5817_v53 = vld [vmem:[%s1465_s22] ss:$0 sm:$0xff]  ;;  %v5452_v54 = vunpack.c.l.bf16 %v5655_v44 }
 0xace   : > { %4183 = vmatpush.msra.mxu0 %v4024_v50  ;;  %4203 = vmatpush.msra.mxu1 %v4025_v51  ;;  %v5485_v50 = vunpack.c.h.bf16 %v5663_v46  ;;  %v5654_v51 = vld [vmem:[%s6311_s11 + $0x328] sm:$0xff]  }
 0xacf   : > { %3977 = vmatpush.msrb.mxu2 %v5373_v60  ;;  %3997 = vmatpush.msrb.mxu3 %v5405_v45  ;;  %v5653_v60 = vld [vmem:[%s6311_s11 + $0x320] sm:$0xff]  }
 0xad0   : > { %4184 = vmatpush.msra.mxu0 %v4020_v55  ;;  %4204 = vmatpush.msra.mxu1 %v4021_v56  ;;  %v5484_v55 = vunpack.c.l.bf16 %v5663_v46  ;;  %v5449_v56 = vunpack.c.h.bf16 %v5654_v51  ;;  %v5661_v45 = vld [vmem:[%s6311_s11 + $0x360] sm:$0xff]  }
 0xad1   : > { %3978 = vmatpush.msrb.mxu2 %v5372_v63  ;;  %3998 = vmatpush.msrb.mxu3 %v5404_v0  ;;  %v5448_v63 = vunpack.c.l.bf16 %v5654_v51  ;;  %v5480_v0 = vunpack.c.l.bf16 %v5662_v52 }
 0xad2   : > { %4185 = vmatpush.msra.mxu0 %v4016_v61  ;;  %4205 = vmatpush.msra.mxu1 %v4017_v62  ;;  %v3023_v61 = vadd.f32 %v5817_v53, %v6651_v3 }
 0xad3   : > { %3979 = vmatpush.msrb.mxu2 %v5369_v17  ;;  %3999 = vmatpush.msrb.mxu3 %v5401_v4  ;;  %v5445_v17 = vunpack.c.h.bf16 %v5653_v60  ;;  %v5477_v4 = vunpack.c.h.bf16 %v5661_v45 }
 0xad4   : > { %v3353_v1 = vadd.f32 %v6733_v32, %v3023_v61 }
 0xad5   : > { %3980 = vmatpush.msrb.mxu2 %v5368_v5  ;;  %4000 = vmatpush.msrb.mxu3 %v5400_v6  ;;  %v3837_v5 = vperm.slane %v6778_v26, 2  ;;  %v5652_v6 = vld [vmem:[%s6311_s11 + $0x318] sm:$0xff]  }
 0xad6   : > { %v5441_v32 = vunpack.c.h.bf16 %v5652_v6  ;;  %v5440_v20 = vunpack.c.l.bf16 %v5652_v6 }
 0xad7   : > { %3981 = vmatpush.msrb.mxu2 %v5365_v9  ;;  %4001 = vmatpush.msrb.mxu3 %v5397_v10  ;;  %v3838_v9 = vperm.slane %v6778_v26, 3  ;;  %v5444_v10 = vunpack.c.l.bf16 %v5653_v60 }
 0xad9   : > { %3982 = vmatpush.msrb.mxu2 %v5364_v11  ;;  %4002 = vmatpush.msrb.mxu3 %v5396_v12  ;;  %v5476_v11 = vunpack.c.l.bf16 %v5661_v45  ;;  %v5473_v12 = vunpack.c.h.bf16 %v5660_v7  ;;  %v5667_v7 = vld [vmem:[%s6311_s11 + $0x390] sm:$0xff]  }
 0xadb   : > { %4222 = vmatpush.msra.mxu2 %v4030_v14  ;;  %4242 = vmatpush.msra.mxu3 %v4031_v15 }
 0xadd   : > { %4223 = vmatpush.msra.mxu2 %v4026_v22  ;;  %4243 = vmatpush.msra.mxu3 %v4027_v23  ;;  %v5659_v22 = vld [vmem:[%s6311_s11 + $0x350] sm:$0xff]  }
 0xadf   : > { %4224 = vmatpush.msra.mxu2 %v4022_v25  ;;  %4244 = vmatpush.msra.mxu3 %v4023_v27  ;;  %v5469_v25 = vunpack.c.h.bf16 %v5659_v22  ;;  %v5468_v27 = vunpack.c.l.bf16 %v5659_v22  ;;  %v5673_v22 = vld [vmem:[%s6311_s11 + $0x3c0] sm:$0xff]  }
 0xae1   : > { %4225 = vmatpush.msra.mxu2 %v4018_v28  ;;  %4245 = vmatpush.msra.mxu3 %v4019_v29  ;;  %v5650_v28 = vld [vmem:[%s6311_s11 + $0x308] sm:$0xff]  }
 0xae2   : > { %v5658_v29 = vld [vmem:[%s6311_s11 + $0x348] sm:$0xff]   ;;  %v5432_v24 = vunpack.c.l.bf16 %v5650_v28 }
 0xb27   : > { %v3617_v16 = vpop.f32.mrf.mxu0  ;;  %v3637_v18 = vpop.f32.mrf.mxu1 }
 0xb28   : > { %v3638_v33 = vadd.f32 %v3637_v18, %v3617_v16 }
 0xb2f   : > { %v3860_v34 = vpop.f32.mrf.mxu0  ;;  %v3880_v35 = vpop.f32.mrf.mxu1 }
 0xb30   : > { %v3861_v38 = vadd.f32 %v3860_v34, %v3835_v30  ;;  %v3881_v39 = vadd.f32 %v3880_v35, %v3836_v31  ;;  %v5672_v30 = vld [vmem:[%s6311_s11 + $0x3b8] sm:$0xff]   ;;  %v5465_v35 = vunpack.c.h.bf16 %v5658_v29 }
 0xb31   : > { %v5521_v31 = vunpack.c.h.bf16 %v5672_v30  ;;  %v5680_v34 = vld [vmem:[%s6311_s11 + $0x3f8] sm:$0xff]  }
 0xb32   : > { %v3923_v42 = vmax.f32 %v3861_v38, 0.0  ;;  %v3924_v43 = vmax.f32 %v3881_v39, 0.0  ;;  %v5553_v37 = vunpack.c.h.bf16 %v5680_v34  ;;  %v5464_v38 = vunpack.c.l.bf16 %v5658_v29 }
 0xb33   : > { %v5520_v39 = vunpack.c.l.bf16 %v5672_v30  ;;  %v5524_v29 = vunpack.c.l.bf16 %v5673_v22 }
 0xb34   : > { %3943 = vmatmul.f32.vlgmr.msrb.gmra.mxu0 %v3923_v42  ;;  %3963 = vmatmul.f32.vlgmr.msrb.gmra.mxu1 %v3924_v43  ;;  %v5657_v42 = vld [vmem:[%s6311_s11 + $0x340] sm:$0xff]   ;;  %v5671_v43 = vld [vmem:[%s6311_s11 + $0x3b0] sm:$0xff]  }
 0xb35   : > { %4254 = vmatpush.msrb.mxu0 %v5457_v40  ;;  %4274 = vmatpush.msrb.mxu1 %v5489_v41  ;;  %v5552_v40 = vunpack.c.l.bf16 %v5680_v34  ;;  %v5649_v41 = vld [vmem:[%s6311_s11 + $0x300] sm:$0xff]   ;;  %v5461_v46 = vunpack.c.h.bf16 %v5657_v42  ;;  %v5460_v51 = vunpack.c.l.bf16 %v5657_v42  ;;  %v5516_v52 = vunpack.c.l.bf16 %v5671_v43 }
 0xb36   : > { %v5429_v44 = vunpack.c.h.bf16 %v5649_v41 }
 0xb37   : > { %4255 = vmatpush.msrb.mxu0 %v5456_v47  ;;  %4275 = vmatpush.msrb.mxu1 %v5488_v48  ;;  %v5517_v47 = vunpack.c.h.bf16 %v5671_v43  ;;  %v5679_v48 = vld [vmem:[%s6311_s11 + $0x3f0] sm:$0xff]  }
 0xb38   : > { %v5548_v53 = vunpack.c.l.bf16 %v5679_v48 }
 0xb39   : > { %4256 = vmatpush.msrb.mxu0 %v5453_v49  ;;  %4276 = vmatpush.msrb.mxu1 %v5485_v50  ;;  %v5549_v49 = vunpack.c.h.bf16 %v5679_v48  ;;  %v5428_v50 = vunpack.c.l.bf16 %v5649_v41 }
 0xb3a   : > { %v3657_v58 = vpop.f32.mrf.mxu2  ;;  %v3677_v59 = vpop.f32.mrf.mxu3 }
 0xb3b   : > { %v3658_v62 = vadd.f32 %v3657_v58, %v3638_v33  ;;  %4257 = vmatpush.msrb.mxu0 %v5452_v54  ;;  %4277 = vmatpush.msrb.mxu1 %v5484_v55  ;;  %v5651_v33 = vld [vmem:[%s6311_s11 + $0x310] sm:$0xff]   ;;  %v5670_v54 = vld [vmem:[%s6311_s11 + $0x3a8] sm:$0xff]   ;;  %v5669_v58 = vld [vmem:[%s6311_s11 + $0x3a0] sm:$0xff]  }
 0xb3c   : > { %5022 = vmatmul.msk.f32.vlgmr.msra.gmra.mxu0 %vm1533_vm2, %v6651_v3  ;;  %5023 = vmatmul.msk.f32.vlgmr.msra.gmra.mxu1 %vm1533_vm2, %v6651_v3  ;;  %v5437_v23 = vunpack.c.h.bf16 %v5651_v33  ;;  %v5436_v26 = vunpack.c.l.bf16 %v5651_v33  ;;  %v5678_v55 = vld [vmem:[%s6311_s11 + $0x3e8] sm:$0xff]   ;;  %v5512_v60 = vunpack.c.l.bf16 %v5670_v54  ;;  %v5509_v61 = vunpack.c.h.bf16 %v5669_v58  ;;  %v5665_v33 = vld [vmem:[%s6311_s11 + $0x380] sm:$0xff]  }
 0xb3d   : > { %v3678_v2 = vadd.f32 %v3677_v59, %v3658_v62  ;;  %4258 = vmatpush.msrb.mxu0 %v5449_v56  ;;  %4278 = vmatpush.msrb.mxu1 %v5481_v57  ;;  %v5513_v56 = vunpack.c.h.bf16 %v5670_v54  ;;  %v5545_v57 = vunpack.c.h.bf16 %v5678_v55  ;;  %v5677_v59 = vld [vmem:[%s6311_s11 + $0x3e0] sm:$0xff]   ;;  %v5544_v45 = vunpack.c.l.bf16 %v5678_v55 }
 0xb3e   : > { %v5541_v62 = vunpack.c.h.bf16 %v5677_v59 }
 0xb3f   : > { %v6802_v8 = vadd.f32 %v3678_v2, %v3353_v1  ;;  %4259 = vmatpush.msrb.mxu0 %v5448_v63  ;;  %4279 = vmatpush.msrb.mxu1 %v5480_v0  ;;  %v5668_v63 = vld [vmem:[%s6311_s11 + $0x398] sm:$0xff]   ;;  %v5508_v1 = vunpack.c.l.bf16 %v5669_v58  ;;  %v5540_v2 = vunpack.c.l.bf16 %v5677_v59 }
 0xb40   : > { %v5676_v0 = vld [vmem:[%s6311_s11 + $0x3d8] sm:$0xff]  }
 0xb41   : > { %4260 = vmatpush.msrb.mxu0 %v5445_v17  ;;  %4280 = vmatpush.msrb.mxu1 %v5477_v4  ;;  %v5505_v17 = vunpack.c.h.bf16 %v5668_v63  ;;  %v5537_v4 = vunpack.c.h.bf16 %v5676_v0  ;;  %v5536_v6 = vunpack.c.l.bf16 %v5676_v0 }
 0xb42   : > { %v3900_v13 = vpop.f32.mrf.mxu2  ;;  %v3920_v14 = vpop.f32.mrf.mxu3 }
 0xb43   : > { %v3901_v15 = vadd.f32 %v3900_v13, %v3837_v5  ;;  %v3921_v16 = vadd.f32 %v3920_v14, %v3838_v9  ;;  %4261 = vmatpush.msrb.mxu0 %v5444_v10  ;;  %4281 = vmatpush.msrb.mxu1 %v5476_v11  ;;  %v5504_v5 = vunpack.c.l.bf16 %v5668_v63  ;;  %v5675_v9 = vld [vmem:[%s6311_s11 + $0x3d0] sm:$0xff]   ;;  %v5501_v10 = vunpack.c.h.bf16 %v5667_v7  ;;  %v5666_v13 = vld [vmem:[%s6311_s11 + $0x388] sm:$0xff]  }
 0xb44   : > { %v5533_v11 = vunpack.c.h.bf16 %v5675_v9  ;;  %v5674_v14 = vld [vmem:[%s6311_s11 + $0x3c8] sm:$0xff]   ;;  %s7045_s11 = sld [smem:[#allocation12_spill]] (!%p5026_p1) }
 0xb45   : > { %v3925_v18 = vmax.f32 %v3901_v15, 0.0  ;;  %v3926_v19 = vmax.f32 %v3921_v16, 0.0  ;;  %4262 = vmatpush.msrb.mxu0 %v5441_v32  ;;  %4282 = vmatpush.msrb.mxu1 %v5473_v12  ;;  %v5500_v32 = vunpack.c.l.bf16 %v5667_v7  ;;  %v5532_v12 = vunpack.c.l.bf16 %v5675_v9 }
 0xb46   : > { %v5497_v15 = vunpack.c.h.bf16 %v5666_v13  ;;  %v5529_v16 = vunpack.c.h.bf16 %v5674_v14 }
 0xb47   : > { %3983 = vmatmul.f32.vlgmr.msrb.gmra.mxu2 %v3925_v18  ;;  %4003 = vmatmul.f32.vlgmr.msrb.gmra.mxu3 %v3926_v19  ;;  %v5496_v18 = vunpack.c.l.bf16 %v5666_v13  ;;  %v5528_v19 = vunpack.c.l.bf16 %v5674_v14 }
 0xb48   : > { %4263 = vmatpush.msrb.mxu0 %v5440_v20  ;;  %4283 = vmatpush.msrb.mxu1 %v5472_v21 }
 0xb49   : > { %4294 = vmatpush.msrb.mxu2 %v5521_v31  ;;  %4314 = vmatpush.msrb.mxu3 %v5553_v37 }
 0xb4a   : > { %4264 = vmatpush.msrb.mxu0 %v5437_v23  ;;  %4284 = vmatpush.msrb.mxu1 %v5469_v25  ;;  %v5493_v25 = vunpack.c.h.bf16 %v5665_v33 }
 0xb4b   : > { %4295 = vmatpush.msrb.mxu2 %v5520_v39  ;;  %4315 = vmatpush.msrb.mxu3 %v5552_v40 }
 0xb4c   : > { %4265 = vmatpush.msrb.mxu0 %v5436_v26  ;;  %4285 = vmatpush.msrb.mxu1 %v5468_v27  ;;  %v5525_v26 = vunpack.c.h.bf16 %v5673_v22  ;;  %v4032_v27 = vld [vmem:[%s6307_s30 + $0xc] sm:$0xf] }
 0xb4d   : > { %4296 = vmatpush.msrb.mxu2 %v5517_v47  ;;  %4316 = vmatpush.msrb.mxu3 %v5549_v49  ;;  %v4162_v30 = vperm.slane %v4032_v27, 0  ;;  %v4163_v31 = vperm.slane %v4032_v27, 1 }
 0xb4e   : > { %4286 = vmatpush.msrb.mxu1 %v5465_v35 }
 0xb4f   : > { %5024 = vmatmul.msk.f32.vlgmr.msra.gmra.mxu2 %vm1533_vm2, %v6651_v3  ;;  %5025 = vmatmul.msk.f32.vlgmr.msra.gmra.mxu3 %vm1533_vm2, %v6651_v3  ;;  %v5433_v3 = vunpack.c.h.bf16 %v5650_v28  ;;  %v5492_v28 = vunpack.c.l.bf16 %v5665_v33 }
 0xb50   : > { %4287 = vmatpush.msrb.mxu1 %v5464_v38  ;;  %4297 = vmatpush.msrb.mxu2 %v5516_v52 }
 0xb51   : > { %4266 = vmatpush.msrb.mxu0 %v5433_v3  ;;  %4317 = vmatpush.msrb.mxu3 %v5548_v53 }
 0xb52   : > { %4288 = vmatpush.msrb.mxu1 %v5461_v46  ;;  %4298 = vmatpush.msrb.mxu2 %v5513_v56  ;;  %v4165_v46 = vperm.slane %v4032_v27, 3 }
 0xb53   : > { %4267 = vmatpush.msrb.mxu0 %v5432_v24  ;;  %4318 = vmatpush.msrb.mxu3 %v5545_v57 }
 0xb54   : > { %4289 = vmatpush.msrb.mxu1 %v5460_v51  ;;  %4299 = vmatpush.msrb.mxu2 %v5512_v60 }
 0xb55   : > { %4268 = vmatpush.msrb.mxu0 %v5429_v44  ;;  %4319 = vmatpush.msrb.mxu3 %v5544_v45  ;;  %v4164_v44 = vperm.slane %v4032_v27, 2 }
 0xb56   : > { %4300 = vmatpush.msrb.mxu2 %v5509_v61 }
 0xb57   : > { %4269 = vmatpush.msrb.mxu0 %v5428_v50  ;;  %4320 = vmatpush.msrb.mxu3 %v5541_v62 }
 0xb58   : > { %4301 = vmatpush.msrb.mxu2 %v5508_v1 }
 0xb59   : > { %4321 = vmatpush.msrb.mxu3 %v5540_v2 }
 0xb5a   : > { %4302 = vmatpush.msrb.mxu2 %v5505_v17 }
 0xb5b   : > { %4322 = vmatpush.msrb.mxu3 %v5537_v4 }
 0xb5c   : > { %4303 = vmatpush.msrb.mxu2 %v5504_v5 }
 0xb5d   : > { %4323 = vmatpush.msrb.mxu3 %v5536_v6 }
 0xb5e   : > { %4304 = vmatpush.msrb.mxu2 %v5501_v10 }
 0xb5f   : > { %4324 = vmatpush.msrb.mxu3 %v5533_v11  ;;  %v5818_v11 = vld [vmem:[%s1480_s7] ss:$0 sm:$0xff] }
 0xb60   : > { %4305 = vmatpush.msrb.mxu2 %v5500_v32 }
 0xb61   : > { %4325 = vmatpush.msrb.mxu3 %v5532_v12  ;;  %v5819_v12 = vld [vmem:[%s1483_s23] ss:$0 sm:$0xff] }
 0xb62   : > { %4306 = vmatpush.msrb.mxu2 %v5497_v15 }
 0xb63   : > { %4326 = vmatpush.msrb.mxu3 %v5529_v16 }
 0xb64   : > { %4307 = vmatpush.msrb.mxu2 %v5496_v18 }
 0xb65   : > { %4327 = vmatpush.msrb.mxu3 %v5528_v19 }
 0xb66   : > { %4308 = vmatpush.msrb.mxu2 %v5493_v25 }
 0xb67   : > { %4328 = vmatpush.msrb.mxu3 %v5525_v26 }
 0xb68   : > { %4309 = vmatpush.msrb.mxu2 %v5492_v28 }
 0xb69   : > { %4329 = vmatpush.msrb.mxu3 %v5524_v29 }
 0xbb1   : > { %v3944_v20 = vpop.f32.mrf.mxu0  ;;  %v3964_v21 = vpop.f32.mrf.mxu1 }
 0xbb2   : > { %v3965_v23 = vadd.f32 %v3964_v21, %v3944_v20 }
 0xbb9   : > { %v4187_v34 = vpop.f32.mrf.mxu0  ;;  %v4207_v3 = vpop.f32.mrf.mxu1 }
 0xbba   : > { %v4188_v35 = vadd.f32 %v4187_v34, %v4162_v30  ;;  %v4208_v37 = vadd.f32 %v4207_v3, %v4163_v31 }
 0xbbc   : > { %v4250_v24 = vmax.f32 %v4188_v35, 0.0  ;;  %v4251_v38 = vmax.f32 %v4208_v37, 0.0 }
 0xbbe   : > { %4270 = vmatmul.f32.vlgmr.msrb.gmra.mxu0 %v4250_v24  ;;  %4290 = vmatmul.f32.vlgmr.msrb.gmra.mxu1 %v4251_v38 }
 0xbca   : > { %v3984_v39 = vpop.f32.mrf.mxu2  ;;  %v4004_v40 = vpop.f32.mrf.mxu3 }
 0xbcb   : > { %v3985_v41 = vadd.f32 %v3984_v39, %v3965_v23 }
 0xbcd   : > { %v4005_v42 = vadd.f32 %v4004_v40, %v3985_v41 }
 0xbcf   : > { %v4007_v43 = vadd.f32 %v4005_v42, %v6802_v8 }
 0xbd2   : > { %v4227_v47 = vpop.f32.mrf.mxu2  ;;  %v4247_v48 = vpop.f32.mrf.mxu3 }
 0xbd3   : > { %v4228_v49 = vadd.f32 %v4227_v47, %v4164_v44  ;;  %v4248_v50 = vadd.f32 %v4247_v48, %v4165_v46 }
 0xbd5   : > { %v4252_v51 = vmax.f32 %v4228_v49, 0.0  ;;  %v4253_v52 = vmax.f32 %v4248_v50, 0.0 }
 0xbd7   : > { %4310 = vmatmul.f32.vlgmr.msrb.gmra.mxu2 %v4252_v51  ;;  %4330 = vmatmul.f32.vlgmr.msrb.gmra.mxu3 %v4253_v52 }
 0xc3b   : > { %v4271_v53 = vpop.f32.mrf.mxu0  ;;  %v4291_v54 = vpop.f32.mrf.mxu1 }
 0xc3c   : > { %v4292_v55 = vadd.f32 %v4291_v54, %v4271_v53 }
 0xc5a   : > { %v4311_v56 = vpop.f32.mrf.mxu2  ;;  %v4331_v58 = vpop.f32.mrf.mxu3 }
 0xc5b   : > { %v4312_v57 = vadd.f32 %v4311_v56, %v4292_v55 }
 0xc5d   : > { %v4332_v59 = vadd.f32 %v4331_v58, %v4312_v57 }
 0xc5f   : > { %v4334_v60 = vadd.f32 %v4332_v59, %v4007_v43 }
 0xc61   : > { %v4335_v8 = vsel %vm1533_vm2, %v4334_v60, 0.0 }
 0xc62   : > { %4336 = vadd.xlane.f32.xlu2 %v4335_v8 }
 0xcd5   : > { %v4337_v45 = vpop.xlane.xlu2 %4336 }
 0xcd6   : > { %v4338_v61 = vmul.f32 %v4337_v45, %v6453_v36 }
 0xcd8   : > { %v4339_v62 = vsub.f32 %v4334_v60, %v4338_v61 }
 0xcda   : > { %v4340_v63 = vmul.f32 %v4339_v62, %v4339_v62 }
 0xcdc   : > { %v4341_v0 = vsel %vm1533_vm2, %v4340_v63, 0.0 }
 0xcdd   : > { %4342 = vadd.xlane.f32.xlu0 %v4341_v0 }
 0xd50   : > { %v4343_v1 = vpop.xlane.xlu0 %4342 }
 0xd51   : > { %v4344_v2 = vmul.f32 %v4343_v1, %v6453_v36 }
 0xd53   : > { %v4345_v17 = vadd.f32 1e-05, %v4344_v2 }
 0xd55   : > { %5858 = vrsqrt.f32 %v4345_v17  ;;  %vm4352_vm12 = vweird.f32 %v4345_v17 }
 0xd5b   : > { %v5859_v4 = vpop.eup %5858 }
 0xd5c   : > { %v4347_v5 = vmul.f32 %v5859_v4, %v4345_v17  ;;  %vm4353_vm11 = vweird.f32 %v5859_v4 }
 0xd5d   : > { %vm4354_vm13 = vmor %vm4352_vm12, %vm4353_vm11 }
 0xd5e   : > { %v4348_v6 = vmul.f32 %v5859_v4, %v4347_v5 }
 0xd60   : > { %v4349_v7 = vmul.f32 0.5, %v4348_v6 }
 0xd62   : > { %v4350_v9 = vsub.f32 1.5, %v4349_v7 }
 0xd64   : > { %v4351_v10 = vmul.f32 %v5859_v4, %v4350_v9 }
 0xd66   : > { %v4355_v32 = vsel %vm4354_vm13, %v5859_v4, %v4351_v10 }
 0xd67   : > { %v4356_v13 = vmul.f32 %v4355_v32, %v4339_v62 }
 0xd69   : > { %v4361_v14 = vmul.f32 %v5818_v11, %v4356_v13  ;;  %4371 = sbr.rel (%p5026_p1) target bundleno = 3575 (0xdf7), region = 160 }
 0xd6b   : > { %v4366_v15 = vadd.f32 %v5819_v12, %v4361_v14 }
 0xd6d   : > { %4367 = vst.msk [vmem:[#allocation2] sm:$0xff] %vm1533_vm2, %v4366_v15 }
 0xd6e   : > { %v4375_v36 = vld [vmem:[%s7043_s10 + $0x18] sm:$0xff]  ;;  %v4374_v16 = vld [vmem:[%s7044_s28 + $0x10] sm:$0xff]  ;;  %v4373_v18 = vld [vmem:[%s7044_s28 + $0x8] sm:$0xff]  ;;  %vm4403_vm14 = vcmask 130048  }
 0xd6f   : > { %4395 = vmatpush.msra.mxu0 %v4375_v36  ;;  %v4372_v19 = vld [vmem:[%s7044_s28] sm:$0xff] }
 0xd70   : > { %v5860_v20 = vld [vmem:[%s7045_s11] ss:$0 sm:$0xff] }
 0xd71   : > { %4396 = vmatpush.msra.mxu0 %v4374_v16 }
 0xd73   : > { %4397 = vmatpush.msra.mxu0 %v4373_v18 }
 0xd75   : > { %4398 = vmatpush.msra.mxu0 %v4372_v19 }
 0xd76   : > { %5027 = vmatmul.msk.f32.vlgmr.msra.gmra.mxu0 %vm1533_vm2, %v4366_v15 }
 0xdf3   : > { %v4400_v21 = vpop.f32.mrf.mxu0 }
 0xdf4   : > { %v4401_v33 = vadd.f32 %v5860_v20, %v4400_v21 }
 0xdf6   : > { %4404 = vst.msk [vmem:[%s1370_s20] sm:$0xff] %vm4403_vm14, %v4401_v33 }
 0xdf7 PF: > { %s7047_s1 = sld [smem:[#allocation42_spill]]  ;;  %s4418_s15 = sshll.u32 %s1370_s20, 4  ;;  %s4419_s15 = int_to_ptr.vmem [resolvable:$true] %s4418_s15 }
 0xdf8   : > { %s7048_s7 = sld [smem:[#allocation37_spill]] }
 0xdf9   : > { %s7051_s19 = sld [smem:[#allocation39_spill]] }
 0xdfd   : > { %s5029_s6 = sshll.u32 %s7047_s1, 3 }
 0xdfe   : > { %s7049_s14 = smov %s7048_s7  ;;  %s4416_s4 = scalar_lea.hbm %s7048_s7, %s5029_s6 }
 0xdff   : > { %s4420_s21 = sshll.u32 %s4416_s4, 4  ;;  %s7053_s16 = sand.u32 1, %s7051_s19   ;;  %s4421_s21 = int_to_ptr.hbm [resolvable:$true] %s4420_s21 }
 0xe00   : > { %s4406_s5 = scalar_lea.sflag [#allocation4], %s7053_s16  ;;  %s5875_s0 = sshra.s32 %s4421_s21, 4  ;;  %s5876_s0 = int_to_ptr.hbm [resolvable:$true] %s5875_s0 }
 0xe01   : > { %s5877_s13 = scalar_lea.hbm %s5876_s0, 8  ;;  %s5881_s9 = scalar_lea.hbm %s7049_s14, 16 }
 0xe02   : > { %p5878_p2 = scmp.ne.s32.totalorder %s5876_s0, %s5877_s13  ;;  %p5882_p6 = scmp.lt.s32.totalorder %s5876_s0, %s7049_s14 }
 0xe03   : > { %p5883_p7 = scmp.lt.s32.totalorder %s5881_s9, %s5877_s13 }
 0xe04   : > { %p5879_p4 = pnand %p5878_p2, %p6215_p3 }
 0xe05   : > { %p5884_p8 = por %p5883_p7, %p5882_p6 }
 0xe06   : > { %p5880_p5 = pneg %p5879_p4 }
 0xe08   : > { %p5885_p10 = pnand %p5884_p8, %p5880_p5 }
 0xe0a   : > { %5888 = shalt.err (!%p5885_p10)
}
 0xe0b   : > { %5681 = dma.vmem_to_hbm [thread:$0]  (%p6215_p3), %s4419_s15, 128, %s4421_s21, %s4406_s5  }
 0xe0c PF: > { %s7054_s20 = sld [smem:[#allocation45_spill]] }
 0xe0d   : > { %s7055_s29 = sld [smem:[#allocation38_spill]] }
 0xe12   : > { %p5687_p11 = scmp.ge.s32.totalorder %s7054_s20, 2 }
 0xe13   : > { %s4432_s26 = sand.u32 1, %s7055_s29  }
 0xe14   : > { %p5684_p12 = pnand %p5687_p11, %p6225_p9  ;;  %s4433_s3 = scalar_lea.sflag [#allocation4], %s4432_s26 }
 0xe16   : > { %p5685_p13 = pneg %p5684_p12 }
 0xe18   : > { %5922 = dma.done.wait (%p5685_p13), %s4433_s3, 128  }
 0xe19   : > { %5924 = vsyncadd (%p5685_p13), %s4433_s3, 4294967168  ;;  %s80_s23 = sadd.s32 1, %s7054_s20   ;;  %s7057_s7 = sld [smem:[#allocation39_spill]] }
 0xe1a   : > { %p77_p0 = scmp.ge.s32.totalorder %s80_s23, 8   ;;  %s7058_s10 = sld [smem:[#allocation40_spill]] }
 0xe1b   : > { %s7059_s11 = sld [smem:[#allocation50_spill]] }
 0xe1c   : > { %s7060_s15 = sld [smem:[#allocation43_spill]]  ;;  %79 = sbr.rel (!%p77_p0) target bundleno = 81 (0x51), region = 351 }
 0xe1d   : > { %s7061_s16 = sld [smem:[#allocation44_spill]] }
 0xe1e   : > { %s7062_s18 = sld [smem:[#allocation46_spill]] }
 0xe1f   : > { %s7063_s22 = sld [smem:[#allocation48_spill]] }
 0xe21   :  { %4439 = vsyncpa [#allocation4], 1 }
 0xe22   :  { %4441 = vsyncpa [#allocation4 + $0x1], 1 }

</bundles_post_ra>
